<compile_context>
chip_gen: v7x
topology: tpu7x:2x2x1
jax: 0.10.0
libtpu: 0.0.40
codegen_flags: <defaults>
</compile_context>

<pallas_src>
import jax
import jax.numpy as jnp
from jax.experimental import pallas as pl
from jax.experimental.pallas import tpu as pltpu

# ---- model hyper-parameters (mirrors the PyTorch module) --------------------
BLOCK_SIZE = 32     # max context length (position table size)
NUM_HEADS = 4
N_LAYERS = 3
LN_EPS = 1e-5       # torch.nn.LayerNorm default
NEG_INF = -1e30


# ----------------------------- kernel helpers --------------------------------
def _layernorm(h, gamma, beta):
    mu = jnp.mean(h, axis=-1, keepdims=True)
    var = jnp.mean((h - mu) ** 2, axis=-1, keepdims=True)
    return (h - mu) * jax.lax.rsqrt(var + LN_EPS) * gamma + beta


# --------------------- fully fused forward kernel ----------------------------
def fused_forward_kernel(x_ref,                     # (T, E) f32   -- one batch element
                         ln1g_ref, ln1b_ref,        # (L, 1, E) f32
                         wq_ref, wk_ref, wv_ref,    # (L, H, E, hs) bf16
                         wo_ref, bo_ref,            # (L, H, hs, E) bf16, (L, 1, E) f32
                         ln2g_ref, ln2b_ref,        # (L, 1, E) f32
                         w1_ref, b1_ref,            # (L, E, 4E) bf16, (L, 1, 4E) f32
                         w2_ref, b2_ref,            # (L, 4E, E) bf16, (L, 1, E) f32
                         lnfg_ref, lnfb_ref,        # (1, E) f32
                         wout_ref, bout_ref,        # (E, Vp) bf16, (1, Vp) f32
                         o_ref):                    # (T, Vp) f32
    x = x_ref[...]                                  # already f32
    T, E = x.shape
    H = NUM_HEADS
    hs = E // H
    scale = hs ** -0.5
    cdt = wq_ref.dtype                              # MXU input dtype (bf16)

    # Per-batch causal mask, hoisted out of the layer loop.
    row = jax.lax.broadcasted_iota(jnp.int32, (T, T), 0)
    col = jax.lax.broadcasted_iota(jnp.int32, (T, T), 1)
    causal = row >= col

    for l in range(N_LAYERS):                       # static unroll, L = 3
        # ---- pre-LN + causal multi-head self-attention (head-batched) ----
        h = _layernorm(x, ln1g_ref[l], ln1b_ref[l]).astype(cdt)        # (T, E)
        hb = jnp.broadcast_to(h, (H, T, E))                            # (H, T, E)
        q = jnp.einsum('hte,hed->htd', hb, wq_ref[l],
                       preferred_element_type=jnp.float32)             # (H, T, hs)
        k = jnp.einsum('hte,hed->htd', hb, wk_ref[l],
                       preferred_element_type=jnp.float32)
        v = jnp.einsum('hte,hed->htd', hb, wv_ref[l],
                       preferred_element_type=jnp.float32)

        s = jnp.einsum('htd,hkd->htk', q, k,
                       preferred_element_type=jnp.float32) * scale     # (H, T, T)
        s = jnp.where(causal[None], s, NEG_INF)
        s = s - jnp.max(s, axis=-1, keepdims=True)
        p = jnp.exp(s)
        p = p / jnp.sum(p, axis=-1, keepdims=True)                     # exact softmax

        a = jnp.einsum('htk,hkd->htd', p.astype(cdt), v.astype(cdt),
                       preferred_element_type=jnp.float32)             # (H, T, hs)
        # concat(heads) @ Wo == sum_h a_h @ Wo[row-block h]; heads merged on the MXU
        # via one head-batched matmul + one major-axis reduction (no serial chain).
        proj = jnp.einsum('htd,hde->hte', a.astype(cdt), wo_ref[l],
                          preferred_element_type=jnp.float32)          # (H, T, E)
        x = x + jnp.sum(proj, axis=0) + bo_ref[l]

        # ---- pre-LN + feed-forward (Linear -> ReLU -> Linear) ----
        h2 = _layernorm(x, ln2g_ref[l], ln2b_ref[l]).astype(cdt)
        f = jnp.dot(h2, w1_ref[l], preferred_element_type=jnp.float32) + b1_ref[l]
        f = jnp.maximum(f, 0.0).astype(cdt)
        x = x + jnp.dot(f, w2_ref[l], preferred_element_type=jnp.float32) + b2_ref[l]

    # ---- final LayerNorm + (lane-dense, padded) vocab projection ----
    h = _layernorm(x, lnfg_ref[...], lnfb_ref[...]).astype(cdt)
    logits = jnp.dot(h, wout_ref[...], preferred_element_type=jnp.float32) + bout_ref[...]
    o_ref[...] = logits


# ------------------------------- wrapper --------------------------------------
def _const_spec(shape):
    zeros = (0,) * len(shape)
    return pl.BlockSpec(shape, lambda b: zeros)     # whole array resident, constant index


@jax.jit
def decoder_forward(xs, params):
    B, T = xs.shape
    assert T <= BLOCK_SIZE, "sequence length exceeds position table"
    # embedding gather (glue, plain JAX)
    tok = jnp.take(params["tok_emb"], xs, axis=0)        # (B, T, E)
    pos = params["pos_emb"][:T][None]                    # (1, T, E)
    x = (tok + pos).astype(jnp.float32).reshape(B * T, -1)
    E = x.shape[-1]
    L, H, hs = N_LAYERS, NUM_HEADS, E // NUM_HEADS
    V = params["w_out"].shape[1]
    Vp = ((V + 127) // 128) * 128                        # lane-dense output width

    cdt = jnp.bfloat16                                   # MXU input storage dtype
    wqkv = params["wqkv"]                                # (L, E, 3E)
    # pre-split per head: (L, H, E, hs) / (L, H, hs, E) -- layout plumbing, done in JAX
    wq = wqkv[:, :, :E].reshape(L, E, H, hs).transpose(0, 2, 1, 3).astype(cdt)
    wk = wqkv[:, :, E:2 * E].reshape(L, E, H, hs).transpose(0, 2, 1, 3).astype(cdt)
    wv = wqkv[:, :, 2 * E:].reshape(L, E, H, hs).transpose(0, 2, 1, 3).astype(cdt)
    wo = params["wo"].reshape(L, H, hs, E).astype(cdt)
    w1 = params["w1"].astype(cdt)
    w2 = params["w2"].astype(cdt)
    wout = jnp.pad(params["w_out"], ((0, 0), (0, Vp - V))).astype(cdt)   # (E, Vp)
    bout = jnp.pad(params["b_out"], ((0, 0), (0, Vp - V)))               # (1, Vp) f32

    weight_args = (
        params["ln1_g"], params["ln1_b"],
        wq, wk, wv, wo, params["bo"],
        params["ln2_g"], params["ln2_b"],
        w1, params["b1"], w2, params["b2"],
        params["lnf_g"], params["lnf_b"],
        wout, bout,
    )
    in_specs = ([pl.BlockSpec((T, E), lambda b: (b, 0))]
                + [_const_spec(w.shape) for w in weight_args])

    logits = pl.pallas_call(
        fused_forward_kernel,
        out_shape=jax.ShapeDtypeStruct((B * T, Vp), jnp.float32),
        grid=(B,),
        in_specs=in_specs,
        out_specs=pl.BlockSpec((T, Vp), lambda b: (b, 0)),
        compiler_params=pltpu.CompilerParams(dimension_semantics=("parallel",)),
    )(x, *weight_args)
    return logits[:, :V].reshape(B, T, V)
    # TODO(synk): cross-entropy loss path (targets != None) stays in plain JAX if needed.


# --------------------------- parameter construction ---------------------------
def init_params(key, vocab_size, n_embed):
    ks = iter(jax.random.split(key, 32))

    def w(shape, scale=0.02):
        return (scale * jax.random.normal(next(ks), shape)).astype(jnp.float32)

    L = N_LAYERS
    hidden = 4 * n_embed
    return {
        "tok_emb": w((vocab_size, n_embed), 1.0),
        "pos_emb": w((BLOCK_SIZE, n_embed), 1.0),
        # per-layer weights stacked on a leading L axis (single fused kernel)
        "ln1_g": 1.0 + w((L, 1, n_embed), 0.1), "ln1_b": w((L, 1, n_embed), 0.1),
        "wqkv": w((L, n_embed, 3 * n_embed)),            # [Wq | Wk | Wv], no bias
        "wo": w((L, n_embed, n_embed)), "bo": w((L, 1, n_embed)),
        "ln2_g": 1.0 + w((L, 1, n_embed), 0.1), "ln2_b": w((L, 1, n_embed), 0.1),
        "w1": w((L, n_embed, hidden)), "b1": w((L, 1, hidden)),
        "w2": w((L, hidden, n_embed)), "b2": w((L, 1, n_embed)),
        "lnf_g": 1.0 + w((1, n_embed), 0.1), "lnf_b": w((1, n_embed), 0.1),
        # nn.Linear(n_embed, vocab_size) stored pre-transposed as (E, V)
        "w_out": w((n_embed, vocab_size)), "b_out": w((1, vocab_size)),
    }


# --------------------------- pure-JAX reference --------------------------------
def reference_forward(xs, params):
    def ln(h, g, b):
        mu = h.mean(-1, keepdims=True)
        var = ((h - mu) ** 2).mean(-1, keepdims=True)
        return (h - mu) / jnp.sqrt(var + LN_EPS) * g + b

    tok = jnp.take(params["tok_emb"], xs, axis=0)
    x = tok + params["pos_emb"][: xs.shape[1]][None]
    B, T, E = x.shape
    hs = E // NUM_HEADS
    causal = jnp.tril(jnp.ones((T, T), bool))
    for l in range(N_LAYERS):
        h = ln(x, params["ln1_g"][l], params["ln1_b"][l])
        qkv = h @ params["wqkv"][l]
        q, k, v = qkv[..., :E], qkv[..., E:2 * E], qkv[..., 2 * E:]
        q = q.reshape(B, T, NUM_HEADS, hs).transpose(0, 2, 1, 3)
        k = k.reshape(B, T, NUM_HEADS, hs).transpose(0, 2, 1, 3)
        v = v.reshape(B, T, NUM_HEADS, hs).transpose(0, 2, 1, 3)
        s = jnp.einsum("bhqd,bhkd->bhqk", q, k) * (hs ** -0.5)
        s = jnp.where(causal[None, None], s, NEG_INF)
        p = jax.nn.softmax(s, axis=-1)
        a = jnp.einsum("bhqk,bhkd->bhqd", p, v).transpose(0, 2, 1, 3).reshape(B, T, E)
        x = x + a @ params["wo"][l] + params["bo"][l]
        h2 = ln(x, params["ln2_g"][l], params["ln2_b"][l])
        f = jnp.maximum(h2 @ params["w1"][l] + params["b1"][l], 0.0)
        x = x + f @ params["w2"][l] + params["b2"][l]
    x = ln(x, params["lnf_g"], params["lnf_b"])
    return x @ params["w_out"] + params["b_out"]


# ---------------------------------- main ---------------------------------------
if __name__ == "__main__":
    VOCAB = 64
    N_EMBED = 32
    B, T = 2, 8          # T <= BLOCK_SIZE (and a multiple of 8 for the sublane tile)

    key = jax.random.PRNGKey(0)
    k_par, k_in = jax.random.split(key)
    params = init_params(k_par, VOCAB, N_EMBED)
    xs = jax.random.randint(k_in, (B, T), 0, VOCAB, dtype=jnp.int32)

    logits = jax.block_until_ready(decoder_forward(xs, params))

    ref = reference_forward(xs, params)
    assert logits.shape == (B, T, VOCAB)
    # bf16 MXU inputs / f32 accumulate -> small deviation from the pure-f32 reference
    assert jnp.allclose(logits, ref, atol=2e-2, rtol=2e-2), "mismatch vs reference"

    print("KERNEL_OK")
</pallas_src>

<mosaic_0001>
module attributes {stable_mosaic.version = 11 : i64} {
  func.func @fused_forward_kernel(%arg0: i32, %arg1: memref<8x32xf32, #tpu.memory_space<vmem>>, %arg2: memref<3x1x32xf32, #tpu.memory_space<vmem>>, %arg3: memref<3x1x32xf32, #tpu.memory_space<vmem>>, %arg4: memref<3x4x32x8xbf16, #tpu.memory_space<vmem>>, %arg5: memref<3x4x32x8xbf16, #tpu.memory_space<vmem>>, %arg6: memref<3x4x32x8xbf16, #tpu.memory_space<vmem>>, %arg7: memref<3x4x8x32xbf16, #tpu.memory_space<vmem>>, %arg8: memref<3x1x32xf32, #tpu.memory_space<vmem>>, %arg9: memref<3x1x32xf32, #tpu.memory_space<vmem>>, %arg10: memref<3x1x32xf32, #tpu.memory_space<vmem>>, %arg11: memref<3x32x128xbf16, #tpu.memory_space<vmem>>, %arg12: memref<3x1x128xf32, #tpu.memory_space<vmem>>, %arg13: memref<3x128x32xbf16, #tpu.memory_space<vmem>>, %arg14: memref<3x1x32xf32, #tpu.memory_space<vmem>>, %arg15: memref<1x32xf32, #tpu.memory_space<vmem>>, %arg16: memref<1x32xf32, #tpu.memory_space<vmem>>, %arg17: memref<32x128xbf16, #tpu.memory_space<vmem>>, %arg18: memref<1x128xf32, #tpu.memory_space<vmem>>, %arg19: memref<8x128xf32, #tpu.memory_space<vmem>>) attributes {dimension_semantics = [#tpu.dimension_semantics<parallel>], iteration_bounds = array<i64: 2>, scalar_prefetch = 0 : i64, scratch_operands = 0 : i64, tpu.core_type = #tpu.core_type<tc>, window_params = [{transform_indices = @transform_0, window_bounds = array<i64: 8, 32>}, {pipeline_mode = #tpu.pipeline_mode<synchronous>, transform_indices = @transform_1, window_bounds = array<i64: 3, 1, 32>}, {pipeline_mode = #tpu.pipeline_mode<synchronous>, transform_indices = @transform_2, window_bounds = array<i64: 3, 1, 32>}, {pipeline_mode = #tpu.pipeline_mode<synchronous>, transform_indices = @transform_3, window_bounds = array<i64: 3, 4, 32, 8>}, {pipeline_mode = #tpu.pipeline_mode<synchronous>, transform_indices = @transform_4, window_bounds = array<i64: 3, 4, 32, 8>}, {pipeline_mode = #tpu.pipeline_mode<synchronous>, transform_indices = @transform_5, window_bounds = array<i64: 3, 4, 32, 8>}, {pipeline_mode = #tpu.pipeline_mode<synchronous>, transform_indices = @transform_6, window_bounds = array<i64: 3, 4, 8, 32>}, {pipeline_mode = #tpu.pipeline_mode<synchronous>, transform_indices = @transform_7, window_bounds = array<i64: 3, 1, 32>}, {pipeline_mode = #tpu.pipeline_mode<synchronous>, transform_indices = @transform_8, window_bounds = array<i64: 3, 1, 32>}, {pipeline_mode = #tpu.pipeline_mode<synchronous>, transform_indices = @transform_9, window_bounds = array<i64: 3, 1, 32>}, {pipeline_mode = #tpu.pipeline_mode<synchronous>, transform_indices = @transform_10, window_bounds = array<i64: 3, 32, 128>}, {pipeline_mode = #tpu.pipeline_mode<synchronous>, transform_indices = @transform_11, window_bounds = array<i64: 3, 1, 128>}, {pipeline_mode = #tpu.pipeline_mode<synchronous>, transform_indices = @transform_12, window_bounds = array<i64: 3, 128, 32>}, {pipeline_mode = #tpu.pipeline_mode<synchronous>, transform_indices = @transform_13, window_bounds = array<i64: 3, 1, 32>}, {pipeline_mode = #tpu.pipeline_mode<synchronous>, transform_indices = @transform_14, window_bounds = array<i64: 1, 32>}, {pipeline_mode = #tpu.pipeline_mode<synchronous>, transform_indices = @transform_15, window_bounds = array<i64: 1, 32>}, {pipeline_mode = #tpu.pipeline_mode<synchronous>, transform_indices = @transform_16, window_bounds = array<i64: 32, 128>}, {pipeline_mode = #tpu.pipeline_mode<synchronous>, transform_indices = @transform_17, window_bounds = array<i64: 1, 128>}, {transform_indices = @transform_18, window_bounds = array<i64: 8, 128>}]} {
    %c0 = arith.constant 0 : index
    %c0_0 = arith.constant 0 : index
    %0 = vector.load %arg1[%c0, %c0_0] : memref<8x32xf32, #tpu.memory_space<vmem>>, vector<8x32xf32>
    %1 = tpu.iota {dimensions = array<i32: 0>} : vector<8x8xi32>
    %2 = tpu.iota {dimensions = array<i32: 1>} : vector<8x8xi32>
    %3 = arith.cmpi sge, %1, %2 : vector<8x8xi32>
    %c0_1 = arith.constant 0 : index
    %c0_2 = arith.constant 0 : index
    %c0_3 = arith.constant 0 : index
    %4 = vector.load %arg2[%c0_1, %c0_2, %c0_3] : memref<3x1x32xf32, #tpu.memory_space<vmem>>, vector<1x1x32xf32>
    %5 = vector.shape_cast %4 : vector<1x1x32xf32> to vector<1x32xf32>
    %c0_4 = arith.constant 0 : index
    %c0_5 = arith.constant 0 : index
    %c0_6 = arith.constant 0 : index
    %6 = vector.load %arg3[%c0_4, %c0_5, %c0_6] : memref<3x1x32xf32, #tpu.memory_space<vmem>>, vector<1x1x32xf32>
    %7 = vector.shape_cast %6 : vector<1x1x32xf32> to vector<1x32xf32>
    %cst = arith.constant dense<0.000000e+00> : vector<8xf32>
    %8 = vector.multi_reduction <add>, %0, %cst [1] : vector<8x32xf32> to vector<8xf32>
    %9 = vector.shape_cast %8 : vector<8xf32> to vector<8x1xf32>
    %cst_7 = arith.constant 3.200000e+01 : f32
    %10 = vector.broadcast %cst_7 : f32 to vector<8x1xf32>
    %11 = arith.divf %9, %10 : vector<8x1xf32>
    %12 = vector.broadcast %11 : vector<8x1xf32> to vector<8x32xf32>
    %13 = arith.subf %0, %12 : vector<8x32xf32>
    %14 = arith.mulf %13, %13 : vector<8x32xf32>
    %cst_8 = arith.constant dense<0.000000e+00> : vector<8xf32>
    %15 = vector.multi_reduction <add>, %14, %cst_8 [1] : vector<8x32xf32> to vector<8xf32>
    %16 = vector.shape_cast %15 : vector<8xf32> to vector<8x1xf32>
    %cst_9 = arith.constant 3.200000e+01 : f32
    %17 = vector.broadcast %cst_9 : f32 to vector<8x1xf32>
    %18 = arith.divf %16, %17 : vector<8x1xf32>
    %19 = vector.broadcast %11 : vector<8x1xf32> to vector<8x32xf32>
    %20 = arith.subf %0, %19 : vector<8x32xf32>
    %cst_10 = arith.constant 9.99999974E-6 : f32
    %21 = vector.broadcast %cst_10 : f32 to vector<8x1xf32>
    %22 = arith.addf %18, %21 : vector<8x1xf32>
    %23 = math.rsqrt %22 : vector<8x1xf32>
    %24 = vector.broadcast %23 : vector<8x1xf32> to vector<8x32xf32>
    %25 = arith.mulf %20, %24 : vector<8x32xf32>
    %26 = vector.broadcast %5 : vector<1x32xf32> to vector<8x32xf32>
    %27 = arith.mulf %25, %26 : vector<8x32xf32>
    %28 = vector.broadcast %7 : vector<1x32xf32> to vector<8x32xf32>
    %29 = arith.addf %27, %28 : vector<8x32xf32>
    %30 = arith.truncf %29 : vector<8x32xf32> to vector<8x32xbf16>
    %31 = vector.shape_cast %30 : vector<8x32xbf16> to vector<1x8x32xbf16>
    %32 = vector.broadcast %31 : vector<1x8x32xbf16> to vector<4x8x32xbf16>
    %c0_11 = arith.constant 0 : index
    %c0_12 = arith.constant 0 : index
    %c0_13 = arith.constant 0 : index
    %c0_14 = arith.constant 0 : index
    %33 = vector.load %arg4[%c0_11, %c0_12, %c0_13, %c0_14] : memref<3x4x32x8xbf16, #tpu.memory_space<vmem>>, vector<1x4x32x8xbf16>
    %34 = vector.shape_cast %33 : vector<1x4x32x8xbf16> to vector<4x32x8xbf16>
    "tpu.trace_start"() <{level = 10 : i32, message = "hte,hed->htd"}> : () -> ()
    %cst_15 = arith.constant dense<0.000000e+00> : vector<4x8x8xf32>
    %35 = tpu.matmul %32, %34, %cst_15 {dimension_numbers = #tpu.dot_dimension_numbers<[2], [1], [1], [2], [0, 0, 0, 1, 1, 2], [0], [0]>} : vector<4x8x32xbf16>, vector<4x32x8xbf16>, vector<4x8x8xf32> -> vector<4x8x8xf32>
    "tpu.trace_stop"() : () -> ()
    %c0_16 = arith.constant 0 : index
    %c0_17 = arith.constant 0 : index
    %c0_18 = arith.constant 0 : index
    %c0_19 = arith.constant 0 : index
    %36 = vector.load %arg5[%c0_16, %c0_17, %c0_18, %c0_19] : memref<3x4x32x8xbf16, #tpu.memory_space<vmem>>, vector<1x4x32x8xbf16>
    %37 = vector.shape_cast %36 : vector<1x4x32x8xbf16> to vector<4x32x8xbf16>
    "tpu.trace_start"() <{level = 10 : i32, message = "hte,hed->htd"}> : () -> ()
    %cst_20 = arith.constant dense<0.000000e+00> : vector<4x8x8xf32>
    %38 = tpu.matmul %32, %37, %cst_20 {dimension_numbers = #tpu.dot_dimension_numbers<[2], [1], [1], [2], [0, 0, 0, 1, 1, 2], [0], [0]>} : vector<4x8x32xbf16>, vector<4x32x8xbf16>, vector<4x8x8xf32> -> vector<4x8x8xf32>
    "tpu.trace_stop"() : () -> ()
    %c0_21 = arith.constant 0 : index
    %c0_22 = arith.constant 0 : index
    %c0_23 = arith.constant 0 : index
    %c0_24 = arith.constant 0 : index
    %39 = vector.load %arg6[%c0_21, %c0_22, %c0_23, %c0_24] : memref<3x4x32x8xbf16, #tpu.memory_space<vmem>>, vector<1x4x32x8xbf16>
    %40 = vector.shape_cast %39 : vector<1x4x32x8xbf16> to vector<4x32x8xbf16>
    "tpu.trace_start"() <{level = 10 : i32, message = "hte,hed->htd"}> : () -> ()
    %cst_25 = arith.constant dense<0.000000e+00> : vector<4x8x8xf32>
    %41 = tpu.matmul %32, %40, %cst_25 {dimension_numbers = #tpu.dot_dimension_numbers<[2], [1], [1], [2], [0, 0, 0, 1, 1, 2], [0], [0]>} : vector<4x8x32xbf16>, vector<4x32x8xbf16>, vector<4x8x8xf32> -> vector<4x8x8xf32>
    "tpu.trace_stop"() : () -> ()
    "tpu.trace_start"() <{level = 10 : i32, message = "htd,hkd->htk"}> : () -> ()
    %cst_26 = arith.constant dense<0.000000e+00> : vector<4x8x8xf32>
    %42 = tpu.matmul %35, %38, %cst_26 {dimension_numbers = #tpu.dot_dimension_numbers<[2], [2], [1], [1], [0, 0, 0, 1, 1, 1], [0], [0]>} : vector<4x8x8xf32>, vector<4x8x8xf32>, vector<4x8x8xf32> -> vector<4x8x8xf32>
    "tpu.trace_stop"() : () -> ()
    %cst_27 = arith.constant 0.353553385 : f32
    %43 = vector.broadcast %cst_27 : f32 to vector<4x8x8xf32>
    %44 = arith.mulf %42, %43 : vector<4x8x8xf32>
    %45 = vector.shape_cast %3 : vector<8x8xi1> to vector<1x8x8xi1>
    %cst_28 = arith.constant -1.000000e+30 : f32
    %46 = vector.shape_cast %45 : vector<1x8x8xi1> to vector<1x8x8xi1>
    %47 = vector.broadcast %46 : vector<1x8x8xi1> to vector<4x8x8xi1>
    %48 = vector.broadcast %cst_28 : f32 to vector<4x8x8xf32>
    %49 = arith.select %47, %44, %48 : vector<4x8x8xi1>, vector<4x8x8xf32>
    %cst_29 = arith.constant dense<0xFF800000> : vector<4x8xf32>
    %50 = vector.multi_reduction <maximumf>, %49, %cst_29 [2] : vector<4x8x8xf32> to vector<4x8xf32>
    %51 = vector.shape_cast %50 : vector<4x8xf32> to vector<4x8x1xf32>
    %52 = vector.broadcast %51 : vector<4x8x1xf32> to vector<4x8x8xf32>
    %53 = arith.subf %49, %52 : vector<4x8x8xf32>
    %54 = math.exp %53 : vector<4x8x8xf32>
    %cst_30 = arith.constant dense<0.000000e+00> : vector<4x8xf32>
    %55 = vector.multi_reduction <add>, %54, %cst_30 [2] : vector<4x8x8xf32> to vector<4x8xf32>
    %56 = vector.shape_cast %55 : vector<4x8xf32> to vector<4x8x1xf32>
    %57 = vector.broadcast %56 : vector<4x8x1xf32> to vector<4x8x8xf32>
    %58 = arith.divf %54, %57 : vector<4x8x8xf32>
    %59 = arith.truncf %58 : vector<4x8x8xf32> to vector<4x8x8xbf16>
    %60 = arith.truncf %41 : vector<4x8x8xf32> to vector<4x8x8xbf16>
    "tpu.trace_start"() <{level = 10 : i32, message = "htk,hkd->htd"}> : () -> ()
    %cst_31 = arith.constant dense<0.000000e+00> : vector<4x8x8xf32>
    %61 = tpu.matmul %59, %60, %cst_31 {dimension_numbers = #tpu.dot_dimension_numbers<[2], [1], [1], [2], [0, 0, 0, 1, 1, 2], [0], [0]>} : vector<4x8x8xbf16>, vector<4x8x8xbf16>, vector<4x8x8xf32> -> vector<4x8x8xf32>
    "tpu.trace_stop"() : () -> ()
    %62 = arith.truncf %61 : vector<4x8x8xf32> to vector<4x8x8xbf16>
    %c0_32 = arith.constant 0 : index
    %c0_33 = arith.constant 0 : index
    %c0_34 = arith.constant 0 : index
    %c0_35 = arith.constant 0 : index
    %63 = vector.load %arg7[%c0_32, %c0_33, %c0_34, %c0_35] : memref<3x4x8x32xbf16, #tpu.memory_space<vmem>>, vector<1x4x8x32xbf16>
    %64 = vector.shape_cast %63 : vector<1x4x8x32xbf16> to vector<4x8x32xbf16>
    "tpu.trace_start"() <{level = 10 : i32, message = "htd,hde->hte"}> : () -> ()
    %cst_36 = arith.constant dense<0.000000e+00> : vector<4x8x32xf32>
    %65 = tpu.matmul %62, %64, %cst_36 {dimension_numbers = #tpu.dot_dimension_numbers<[2], [1], [1], [2], [0, 0, 0, 1, 1, 2], [0], [0]>} : vector<4x8x8xbf16>, vector<4x8x32xbf16>, vector<4x8x32xf32> -> vector<4x8x32xf32>
    "tpu.trace_stop"() : () -> ()
    %cst_37 = arith.constant dense<0.000000e+00> : vector<8x32xf32>
    %66 = vector.multi_reduction <add>, %65, %cst_37 [0] : vector<4x8x32xf32> to vector<8x32xf32>
    %67 = arith.addf %0, %66 : vector<8x32xf32>
    %c0_38 = arith.constant 0 : index
    %c0_39 = arith.constant 0 : index
    %c0_40 = arith.constant 0 : index
    %68 = vector.load %arg8[%c0_38, %c0_39, %c0_40] : memref<3x1x32xf32, #tpu.memory_space<vmem>>, vector<1x1x32xf32>
    %69 = vector.shape_cast %68 : vector<1x1x32xf32> to vector<1x32xf32>
    %70 = vector.broadcast %69 : vector<1x32xf32> to vector<8x32xf32>
    %71 = arith.addf %67, %70 : vector<8x32xf32>
    %c0_41 = arith.constant 0 : index
    %c0_42 = arith.constant 0 : index
    %c0_43 = arith.constant 0 : index
    %72 = vector.load %arg9[%c0_41, %c0_42, %c0_43] : memref<3x1x32xf32, #tpu.memory_space<vmem>>, vector<1x1x32xf32>
    %73 = vector.shape_cast %72 : vector<1x1x32xf32> to vector<1x32xf32>
    %c0_44 = arith.constant 0 : index
    %c0_45 = arith.constant 0 : index
    %c0_46 = arith.constant 0 : index
    %74 = vector.load %arg10[%c0_44, %c0_45, %c0_46] : memref<3x1x32xf32, #tpu.memory_space<vmem>>, vector<1x1x32xf32>
    %75 = vector.shape_cast %74 : vector<1x1x32xf32> to vector<1x32xf32>
    %cst_47 = arith.constant dense<0.000000e+00> : vector<8xf32>
    %76 = vector.multi_reduction <add>, %71, %cst_47 [1] : vector<8x32xf32> to vector<8xf32>
    %77 = vector.shape_cast %76 : vector<8xf32> to vector<8x1xf32>
    %cst_48 = arith.constant 3.200000e+01 : f32
    %78 = vector.broadcast %cst_48 : f32 to vector<8x1xf32>
    %79 = arith.divf %77, %78 : vector<8x1xf32>
    %80 = vector.broadcast %79 : vector<8x1xf32> to vector<8x32xf32>
    %81 = arith.subf %71, %80 : vector<8x32xf32>
    %82 = arith.mulf %81, %81 : vector<8x32xf32>
    %cst_49 = arith.constant dense<0.000000e+00> : vector<8xf32>
    %83 = vector.multi_reduction <add>, %82, %cst_49 [1] : vector<8x32xf32> to vector<8xf32>
    %84 = vector.shape_cast %83 : vector<8xf32> to vector<8x1xf32>
    %cst_50 = arith.constant 3.200000e+01 : f32
    %85 = vector.broadcast %cst_50 : f32 to vector<8x1xf32>
    %86 = arith.divf %84, %85 : vector<8x1xf32>
    %87 = vector.broadcast %79 : vector<8x1xf32> to vector<8x32xf32>
    %88 = arith.subf %71, %87 : vector<8x32xf32>
    %cst_51 = arith.constant 9.99999974E-6 : f32
    %89 = vector.broadcast %cst_51 : f32 to vector<8x1xf32>
    %90 = arith.addf %86, %89 : vector<8x1xf32>
    %91 = math.rsqrt %90 : vector<8x1xf32>
    %92 = vector.broadcast %91 : vector<8x1xf32> to vector<8x32xf32>
    %93 = arith.mulf %88, %92 : vector<8x32xf32>
    %94 = vector.broadcast %73 : vector<1x32xf32> to vector<8x32xf32>
    %95 = arith.mulf %93, %94 : vector<8x32xf32>
    %96 = vector.broadcast %75 : vector<1x32xf32> to vector<8x32xf32>
    %97 = arith.addf %95, %96 : vector<8x32xf32>
    %98 = arith.truncf %97 : vector<8x32xf32> to vector<8x32xbf16>
    %c0_52 = arith.constant 0 : index
    %c0_53 = arith.constant 0 : index
    %c0_54 = arith.constant 0 : index
    %99 = vector.load %arg11[%c0_52, %c0_53, %c0_54] : memref<3x32x128xbf16, #tpu.memory_space<vmem>>, vector<1x32x128xbf16>
    %100 = vector.shape_cast %99 : vector<1x32x128xbf16> to vector<32x128xbf16>
    %cst_55 = arith.constant dense<0.000000e+00> : vector<8x128xf32>
    %101 = tpu.matmul %98, %100, %cst_55 {dimension_numbers = #tpu.dot_dimension_numbers<[1], [0], [0], [1], [0, 0, 1, 1], [], []>} : vector<8x32xbf16>, vector<32x128xbf16>, vector<8x128xf32> -> vector<8x128xf32>
    %c0_56 = arith.constant 0 : index
    %c0_57 = arith.constant 0 : index
    %c0_58 = arith.constant 0 : index
    %102 = vector.load %arg12[%c0_56, %c0_57, %c0_58] : memref<3x1x128xf32, #tpu.memory_space<vmem>>, vector<1x1x128xf32>
    %103 = vector.shape_cast %102 : vector<1x1x128xf32> to vector<1x128xf32>
    %104 = vector.broadcast %103 : vector<1x128xf32> to vector<8x128xf32>
    %105 = arith.addf %101, %104 : vector<8x128xf32>
    %cst_59 = arith.constant 0.000000e+00 : f32
    %106 = vector.broadcast %cst_59 : f32 to vector<8x128xf32>
    %107 = arith.maximumf %105, %106 : vector<8x128xf32>
    %108 = arith.truncf %107 : vector<8x128xf32> to vector<8x128xbf16>
    %c0_60 = arith.constant 0 : index
    %c0_61 = arith.constant 0 : index
    %c0_62 = arith.constant 0 : index
    %109 = vector.load %arg13[%c0_60, %c0_61, %c0_62] : memref<3x128x32xbf16, #tpu.memory_space<vmem>>, vector<1x128x32xbf16>
    %110 = vector.shape_cast %109 : vector<1x128x32xbf16> to vector<128x32xbf16>
    %cst_63 = arith.constant dense<0.000000e+00> : vector<8x32xf32>
    %111 = tpu.matmul %108, %110, %cst_63 {dimension_numbers = #tpu.dot_dimension_numbers<[1], [0], [0], [1], [0, 0, 1, 1], [], []>} : vector<8x128xbf16>, vector<128x32xbf16>, vector<8x32xf32> -> vector<8x32xf32>
    %112 = arith.addf %71, %111 : vector<8x32xf32>
    %c0_64 = arith.constant 0 : index
    %c0_65 = arith.constant 0 : index
    %c0_66 = arith.constant 0 : index
    %113 = vector.load %arg14[%c0_64, %c0_65, %c0_66] : memref<3x1x32xf32, #tpu.memory_space<vmem>>, vector<1x1x32xf32>
    %114 = vector.shape_cast %113 : vector<1x1x32xf32> to vector<1x32xf32>
    %115 = vector.broadcast %114 : vector<1x32xf32> to vector<8x32xf32>
    %116 = arith.addf %112, %115 : vector<8x32xf32>
    %c1 = arith.constant 1 : index
    %c0_67 = arith.constant 0 : index
    %c0_68 = arith.constant 0 : index
    %117 = vector.load %arg2[%c1, %c0_67, %c0_68] : memref<3x1x32xf32, #tpu.memory_space<vmem>>, vector<1x1x32xf32>
    %118 = vector.shape_cast %117 : vector<1x1x32xf32> to vector<1x32xf32>
    %c1_69 = arith.constant 1 : index
    %c0_70 = arith.constant 0 : index
    %c0_71 = arith.constant 0 : index
    %119 = vector.load %arg3[%c1_69, %c0_70, %c0_71] : memref<3x1x32xf32, #tpu.memory_space<vmem>>, vector<1x1x32xf32>
    %120 = vector.shape_cast %119 : vector<1x1x32xf32> to vector<1x32xf32>
    %cst_72 = arith.constant dense<0.000000e+00> : vector<8xf32>
    %121 = vector.multi_reduction <add>, %116, %cst_72 [1] : vector<8x32xf32> to vector<8xf32>
    %122 = vector.shape_cast %121 : vector<8xf32> to vector<8x1xf32>
    %cst_73 = arith.constant 3.200000e+01 : f32
    %123 = vector.broadcast %cst_73 : f32 to vector<8x1xf32>
    %124 = arith.divf %122, %123 : vector<8x1xf32>
    %125 = vector.broadcast %124 : vector<8x1xf32> to vector<8x32xf32>
    %126 = arith.subf %116, %125 : vector<8x32xf32>
    %127 = arith.mulf %126, %126 : vector<8x32xf32>
    %cst_74 = arith.constant dense<0.000000e+00> : vector<8xf32>
    %128 = vector.multi_reduction <add>, %127, %cst_74 [1] : vector<8x32xf32> to vector<8xf32>
    %129 = vector.shape_cast %128 : vector<8xf32> to vector<8x1xf32>
    %cst_75 = arith.constant 3.200000e+01 : f32
    %130 = vector.broadcast %cst_75 : f32 to vector<8x1xf32>
    %131 = arith.divf %129, %130 : vector<8x1xf32>
    %132 = vector.broadcast %124 : vector<8x1xf32> to vector<8x32xf32>
    %133 = arith.subf %116, %132 : vector<8x32xf32>
    %cst_76 = arith.constant 9.99999974E-6 : f32
    %134 = vector.broadcast %cst_76 : f32 to vector<8x1xf32>
    %135 = arith.addf %131, %134 : vector<8x1xf32>
    %136 = math.rsqrt %135 : vector<8x1xf32>
    %137 = vector.broadcast %136 : vector<8x1xf32> to vector<8x32xf32>
    %138 = arith.mulf %133, %137 : vector<8x32xf32>
    %139 = vector.broadcast %118 : vector<1x32xf32> to vector<8x32xf32>
    %140 = arith.mulf %138, %139 : vector<8x32xf32>
    %141 = vector.broadcast %120 : vector<1x32xf32> to vector<8x32xf32>
    %142 = arith.addf %140, %141 : vector<8x32xf32>
    %143 = arith.truncf %142 : vector<8x32xf32> to vector<8x32xbf16>
    %144 = vector.shape_cast %143 : vector<8x32xbf16> to vector<1x8x32xbf16>
    %145 = vector.broadcast %144 : vector<1x8x32xbf16> to vector<4x8x32xbf16>
    %c1_77 = arith.constant 1 : index
    %c0_78 = arith.constant 0 : index
    %c0_79 = arith.constant 0 : index
    %c0_80 = arith.constant 0 : index
    %146 = vector.load %arg4[%c1_77, %c0_78, %c0_79, %c0_80] : memref<3x4x32x8xbf16, #tpu.memory_space<vmem>>, vector<1x4x32x8xbf16>
    %147 = vector.shape_cast %146 : vector<1x4x32x8xbf16> to vector<4x32x8xbf16>
    "tpu.trace_start"() <{level = 10 : i32, message = "hte,hed->htd"}> : () -> ()
    %cst_81 = arith.constant dense<0.000000e+00> : vector<4x8x8xf32>
    %148 = tpu.matmul %145, %147, %cst_81 {dimension_numbers = #tpu.dot_dimension_numbers<[2], [1], [1], [2], [0, 0, 0, 1, 1, 2], [0], [0]>} : vector<4x8x32xbf16>, vector<4x32x8xbf16>, vector<4x8x8xf32> -> vector<4x8x8xf32>
    "tpu.trace_stop"() : () -> ()
    %c1_82 = arith.constant 1 : index
    %c0_83 = arith.constant 0 : index
    %c0_84 = arith.constant 0 : index
    %c0_85 = arith.constant 0 : index
    %149 = vector.load %arg5[%c1_82, %c0_83, %c0_84, %c0_85] : memref<3x4x32x8xbf16, #tpu.memory_space<vmem>>, vector<1x4x32x8xbf16>
    %150 = vector.shape_cast %149 : vector<1x4x32x8xbf16> to vector<4x32x8xbf16>
    "tpu.trace_start"() <{level = 10 : i32, message = "hte,hed->htd"}> : () -> ()
    %cst_86 = arith.constant dense<0.000000e+00> : vector<4x8x8xf32>
    %151 = tpu.matmul %145, %150, %cst_86 {dimension_numbers = #tpu.dot_dimension_numbers<[2], [1], [1], [2], [0, 0, 0, 1, 1, 2], [0], [0]>} : vector<4x8x32xbf16>, vector<4x32x8xbf16>, vector<4x8x8xf32> -> vector<4x8x8xf32>
    "tpu.trace_stop"() : () -> ()
    %c1_87 = arith.constant 1 : index
    %c0_88 = arith.constant 0 : index
    %c0_89 = arith.constant 0 : index
    %c0_90 = arith.constant 0 : index
    %152 = vector.load %arg6[%c1_87, %c0_88, %c0_89, %c0_90] : memref<3x4x32x8xbf16, #tpu.memory_space<vmem>>, vector<1x4x32x8xbf16>
    %153 = vector.shape_cast %152 : vector<1x4x32x8xbf16> to vector<4x32x8xbf16>
    "tpu.trace_start"() <{level = 10 : i32, message = "hte,hed->htd"}> : () -> ()
    %cst_91 = arith.constant dense<0.000000e+00> : vector<4x8x8xf32>
    %154 = tpu.matmul %145, %153, %cst_91 {dimension_numbers = #tpu.dot_dimension_numbers<[2], [1], [1], [2], [0, 0, 0, 1, 1, 2], [0], [0]>} : vector<4x8x32xbf16>, vector<4x32x8xbf16>, vector<4x8x8xf32> -> vector<4x8x8xf32>
    "tpu.trace_stop"() : () -> ()
    "tpu.trace_start"() <{level = 10 : i32, message = "htd,hkd->htk"}> : () -> ()
    %cst_92 = arith.constant dense<0.000000e+00> : vector<4x8x8xf32>
    %155 = tpu.matmul %148, %151, %cst_92 {dimension_numbers = #tpu.dot_dimension_numbers<[2], [2], [1], [1], [0, 0, 0, 1, 1, 1], [0], [0]>} : vector<4x8x8xf32>, vector<4x8x8xf32>, vector<4x8x8xf32> -> vector<4x8x8xf32>
    "tpu.trace_stop"() : () -> ()
    %cst_93 = arith.constant 0.353553385 : f32
    %156 = vector.broadcast %cst_93 : f32 to vector<4x8x8xf32>
    %157 = arith.mulf %155, %156 : vector<4x8x8xf32>
    %158 = vector.shape_cast %3 : vector<8x8xi1> to vector<1x8x8xi1>
    %cst_94 = arith.constant -1.000000e+30 : f32
    %159 = vector.shape_cast %158 : vector<1x8x8xi1> to vector<1x8x8xi1>
    %160 = vector.broadcast %159 : vector<1x8x8xi1> to vector<4x8x8xi1>
    %161 = vector.broadcast %cst_94 : f32 to vector<4x8x8xf32>
    %162 = arith.select %160, %157, %161 : vector<4x8x8xi1>, vector<4x8x8xf32>
    %cst_95 = arith.constant dense<0xFF800000> : vector<4x8xf32>
    %163 = vector.multi_reduction <maximumf>, %162, %cst_95 [2] : vector<4x8x8xf32> to vector<4x8xf32>
    %164 = vector.shape_cast %163 : vector<4x8xf32> to vector<4x8x1xf32>
    %165 = vector.broadcast %164 : vector<4x8x1xf32> to vector<4x8x8xf32>
    %166 = arith.subf %162, %165 : vector<4x8x8xf32>
    %167 = math.exp %166 : vector<4x8x8xf32>
    %cst_96 = arith.constant dense<0.000000e+00> : vector<4x8xf32>
    %168 = vector.multi_reduction <add>, %167, %cst_96 [2] : vector<4x8x8xf32> to vector<4x8xf32>
    %169 = vector.shape_cast %168 : vector<4x8xf32> to vector<4x8x1xf32>
    %170 = vector.broadcast %169 : vector<4x8x1xf32> to vector<4x8x8xf32>
    %171 = arith.divf %167, %170 : vector<4x8x8xf32>
    %172 = arith.truncf %171 : vector<4x8x8xf32> to vector<4x8x8xbf16>
    %173 = arith.truncf %154 : vector<4x8x8xf32> to vector<4x8x8xbf16>
    "tpu.trace_start"() <{level = 10 : i32, message = "htk,hkd->htd"}> : () -> ()
    %cst_97 = arith.constant dense<0.000000e+00> : vector<4x8x8xf32>
    %174 = tpu.matmul %172, %173, %cst_97 {dimension_numbers = #tpu.dot_dimension_numbers<[2], [1], [1], [2], [0, 0, 0, 1, 1, 2], [0], [0]>} : vector<4x8x8xbf16>, vector<4x8x8xbf16>, vector<4x8x8xf32> -> vector<4x8x8xf32>
    "tpu.trace_stop"() : () -> ()
    %175 = arith.truncf %174 : vector<4x8x8xf32> to vector<4x8x8xbf16>
    %c1_98 = arith.constant 1 : index
    %c0_99 = arith.constant 0 : index
    %c0_100 = arith.constant 0 : index
    %c0_101 = arith.constant 0 : index
    %176 = vector.load %arg7[%c1_98, %c0_99, %c0_100, %c0_101] : memref<3x4x8x32xbf16, #tpu.memory_space<vmem>>, vector<1x4x8x32xbf16>
    %177 = vector.shape_cast %176 : vector<1x4x8x32xbf16> to vector<4x8x32xbf16>
    "tpu.trace_start"() <{level = 10 : i32, message = "htd,hde->hte"}> : () -> ()
    %cst_102 = arith.constant dense<0.000000e+00> : vector<4x8x32xf32>
    %178 = tpu.matmul %175, %177, %cst_102 {dimension_numbers = #tpu.dot_dimension_numbers<[2], [1], [1], [2], [0, 0, 0, 1, 1, 2], [0], [0]>} : vector<4x8x8xbf16>, vector<4x8x32xbf16>, vector<4x8x32xf32> -> vector<4x8x32xf32>
    "tpu.trace_stop"() : () -> ()
    %cst_103 = arith.constant dense<0.000000e+00> : vector<8x32xf32>
    %179 = vector.multi_reduction <add>, %178, %cst_103 [0] : vector<4x8x32xf32> to vector<8x32xf32>
    %180 = arith.addf %116, %179 : vector<8x32xf32>
    %c1_104 = arith.constant 1 : index
    %c0_105 = arith.constant 0 : index
    %c0_106 = arith.constant 0 : index
    %181 = vector.load %arg8[%c1_104, %c0_105, %c0_106] : memref<3x1x32xf32, #tpu.memory_space<vmem>>, vector<1x1x32xf32>
    %182 = vector.shape_cast %181 : vector<1x1x32xf32> to vector<1x32xf32>
    %183 = vector.broadcast %182 : vector<1x32xf32> to vector<8x32xf32>
    %184 = arith.addf %180, %183 : vector<8x32xf32>
    %c1_107 = arith.constant 1 : index
    %c0_108 = arith.constant 0 : index
    %c0_109 = arith.constant 0 : index
    %185 = vector.load %arg9[%c1_107, %c0_108, %c0_109] : memref<3x1x32xf32, #tpu.memory_space<vmem>>, vector<1x1x32xf32>
    %186 = vector.shape_cast %185 : vector<1x1x32xf32> to vector<1x32xf32>
    %c1_110 = arith.constant 1 : index
    %c0_111 = arith.constant 0 : index
    %c0_112 = arith.constant 0 : index
    %187 = vector.load %arg10[%c1_110, %c0_111, %c0_112] : memref<3x1x32xf32, #tpu.memory_space<vmem>>, vector<1x1x32xf32>
    %188 = vector.shape_cast %187 : vector<1x1x32xf32> to vector<1x32xf32>
    %cst_113 = arith.constant dense<0.000000e+00> : vector<8xf32>
    %189 = vector.multi_reduction <add>, %184, %cst_113 [1] : vector<8x32xf32> to vector<8xf32>
    %190 = vector.shape_cast %189 : vector<8xf32> to vector<8x1xf32>
    %cst_114 = arith.constant 3.200000e+01 : f32
    %191 = vector.broadcast %cst_114 : f32 to vector<8x1xf32>
    %192 = arith.divf %190, %191 : vector<8x1xf32>
    %193 = vector.broadcast %192 : vector<8x1xf32> to vector<8x32xf32>
    %194 = arith.subf %184, %193 : vector<8x32xf32>
    %195 = arith.mulf %194, %194 : vector<8x32xf32>
    %cst_115 = arith.constant dense<0.000000e+00> : vector<8xf32>
    %196 = vector.multi_reduction <add>, %195, %cst_115 [1] : vector<8x32xf32> to vector<8xf32>
    %197 = vector.shape_cast %196 : vector<8xf32> to vector<8x1xf32>
    %cst_116 = arith.constant 3.200000e+01 : f32
    %198 = vector.broadcast %cst_116 : f32 to vector<8x1xf32>
    %199 = arith.divf %197, %198 : vector<8x1xf32>
    %200 = vector.broadcast %192 : vector<8x1xf32> to vector<8x32xf32>
    %201 = arith.subf %184, %200 : vector<8x32xf32>
    %cst_117 = arith.constant 9.99999974E-6 : f32
    %202 = vector.broadcast %cst_117 : f32 to vector<8x1xf32>
    %203 = arith.addf %199, %202 : vector<8x1xf32>
    %204 = math.rsqrt %203 : vector<8x1xf32>
    %205 = vector.broadcast %204 : vector<8x1xf32> to vector<8x32xf32>
    %206 = arith.mulf %201, %205 : vector<8x32xf32>
    %207 = vector.broadcast %186 : vector<1x32xf32> to vector<8x32xf32>
    %208 = arith.mulf %206, %207 : vector<8x32xf32>
    %209 = vector.broadcast %188 : vector<1x32xf32> to vector<8x32xf32>
    %210 = arith.addf %208, %209 : vector<8x32xf32>
    %211 = arith.truncf %210 : vector<8x32xf32> to vector<8x32xbf16>
    %c1_118 = arith.constant 1 : index
    %c0_119 = arith.constant 0 : index
    %c0_120 = arith.constant 0 : index
    %212 = vector.load %arg11[%c1_118, %c0_119, %c0_120] : memref<3x32x128xbf16, #tpu.memory_space<vmem>>, vector<1x32x128xbf16>
    %213 = vector.shape_cast %212 : vector<1x32x128xbf16> to vector<32x128xbf16>
    %cst_121 = arith.constant dense<0.000000e+00> : vector<8x128xf32>
    %214 = tpu.matmul %211, %213, %cst_121 {dimension_numbers = #tpu.dot_dimension_numbers<[1], [0], [0], [1], [0, 0, 1, 1], [], []>} : vector<8x32xbf16>, vector<32x128xbf16>, vector<8x128xf32> -> vector<8x128xf32>
    %c1_122 = arith.constant 1 : index
    %c0_123 = arith.constant 0 : index
    %c0_124 = arith.constant 0 : index
    %215 = vector.load %arg12[%c1_122, %c0_123, %c0_124] : memref<3x1x128xf32, #tpu.memory_space<vmem>>, vector<1x1x128xf32>
    %216 = vector.shape_cast %215 : vector<1x1x128xf32> to vector<1x128xf32>
    %217 = vector.broadcast %216 : vector<1x128xf32> to vector<8x128xf32>
    %218 = arith.addf %214, %217 : vector<8x128xf32>
    %cst_125 = arith.constant 0.000000e+00 : f32
    %219 = vector.broadcast %cst_125 : f32 to vector<8x128xf32>
    %220 = arith.maximumf %218, %219 : vector<8x128xf32>
    %221 = arith.truncf %220 : vector<8x128xf32> to vector<8x128xbf16>
    %c1_126 = arith.constant 1 : index
    %c0_127 = arith.constant 0 : index
    %c0_128 = arith.constant 0 : index
    %222 = vector.load %arg13[%c1_126, %c0_127, %c0_128] : memref<3x128x32xbf16, #tpu.memory_space<vmem>>, vector<1x128x32xbf16>
    %223 = vector.shape_cast %222 : vector<1x128x32xbf16> to vector<128x32xbf16>
    %cst_129 = arith.constant dense<0.000000e+00> : vector<8x32xf32>
    %224 = tpu.matmul %221, %223, %cst_129 {dimension_numbers = #tpu.dot_dimension_numbers<[1], [0], [0], [1], [0, 0, 1, 1], [], []>} : vector<8x128xbf16>, vector<128x32xbf16>, vector<8x32xf32> -> vector<8x32xf32>
    %225 = arith.addf %184, %224 : vector<8x32xf32>
    %c1_130 = arith.constant 1 : index
    %c0_131 = arith.constant 0 : index
    %c0_132 = arith.constant 0 : index
    %226 = vector.load %arg14[%c1_130, %c0_131, %c0_132] : memref<3x1x32xf32, #tpu.memory_space<vmem>>, vector<1x1x32xf32>
    %227 = vector.shape_cast %226 : vector<1x1x32xf32> to vector<1x32xf32>
    %228 = vector.broadcast %227 : vector<1x32xf32> to vector<8x32xf32>
    %229 = arith.addf %225, %228 : vector<8x32xf32>
    %c2 = arith.constant 2 : index
    %c0_133 = arith.constant 0 : index
    %c0_134 = arith.constant 0 : index
    %230 = vector.load %arg2[%c2, %c0_133, %c0_134] : memref<3x1x32xf32, #tpu.memory_space<vmem>>, vector<1x1x32xf32>
    %231 = vector.shape_cast %230 : vector<1x1x32xf32> to vector<1x32xf32>
    %c2_135 = arith.constant 2 : index
    %c0_136 = arith.constant 0 : index
    %c0_137 = arith.constant 0 : index
    %232 = vector.load %arg3[%c2_135, %c0_136, %c0_137] : memref<3x1x32xf32, #tpu.memory_space<vmem>>, vector<1x1x32xf32>
    %233 = vector.shape_cast %232 : vector<1x1x32xf32> to vector<1x32xf32>
    %cst_138 = arith.constant dense<0.000000e+00> : vector<8xf32>
    %234 = vector.multi_reduction <add>, %229, %cst_138 [1] : vector<8x32xf32> to vector<8xf32>
    %235 = vector.shape_cast %234 : vector<8xf32> to vector<8x1xf32>
    %cst_139 = arith.constant 3.200000e+01 : f32
    %236 = vector.broadcast %cst_139 : f32 to vector<8x1xf32>
    %237 = arith.divf %235, %236 : vector<8x1xf32>
    %238 = vector.broadcast %237 : vector<8x1xf32> to vector<8x32xf32>
    %239 = arith.subf %229, %238 : vector<8x32xf32>
    %240 = arith.mulf %239, %239 : vector<8x32xf32>
    %cst_140 = arith.constant dense<0.000000e+00> : vector<8xf32>
    %241 = vector.multi_reduction <add>, %240, %cst_140 [1] : vector<8x32xf32> to vector<8xf32>
    %242 = vector.shape_cast %241 : vector<8xf32> to vector<8x1xf32>
    %cst_141 = arith.constant 3.200000e+01 : f32
    %243 = vector.broadcast %cst_141 : f32 to vector<8x1xf32>
    %244 = arith.divf %242, %243 : vector<8x1xf32>
    %245 = vector.broadcast %237 : vector<8x1xf32> to vector<8x32xf32>
    %246 = arith.subf %229, %245 : vector<8x32xf32>
    %cst_142 = arith.constant 9.99999974E-6 : f32
    %247 = vector.broadcast %cst_142 : f32 to vector<8x1xf32>
    %248 = arith.addf %244, %247 : vector<8x1xf32>
    %249 = math.rsqrt %248 : vector<8x1xf32>
    %250 = vector.broadcast %249 : vector<8x1xf32> to vector<8x32xf32>
    %251 = arith.mulf %246, %250 : vector<8x32xf32>
    %252 = vector.broadcast %231 : vector<1x32xf32> to vector<8x32xf32>
    %253 = arith.mulf %251, %252 : vector<8x32xf32>
    %254 = vector.broadcast %233 : vector<1x32xf32> to vector<8x32xf32>
    %255 = arith.addf %253, %254 : vector<8x32xf32>
    %256 = arith.truncf %255 : vector<8x32xf32> to vector<8x32xbf16>
    %257 = vector.shape_cast %256 : vector<8x32xbf16> to vector<1x8x32xbf16>
    %258 = vector.broadcast %257 : vector<1x8x32xbf16> to vector<4x8x32xbf16>
    %c2_143 = arith.constant 2 : index
    %c0_144 = arith.constant 0 : index
    %c0_145 = arith.constant 0 : index
    %c0_146 = arith.constant 0 : index
    %259 = vector.load %arg4[%c2_143, %c0_144, %c0_145, %c0_146] : memref<3x4x32x8xbf16, #tpu.memory_space<vmem>>, vector<1x4x32x8xbf16>
    %260 = vector.shape_cast %259 : vector<1x4x32x8xbf16> to vector<4x32x8xbf16>
    "tpu.trace_start"() <{level = 10 : i32, message = "hte,hed->htd"}> : () -> ()
    %cst_147 = arith.constant dense<0.000000e+00> : vector<4x8x8xf32>
    %261 = tpu.matmul %258, %260, %cst_147 {dimension_numbers = #tpu.dot_dimension_numbers<[2], [1], [1], [2], [0, 0, 0, 1, 1, 2], [0], [0]>} : vector<4x8x32xbf16>, vector<4x32x8xbf16>, vector<4x8x8xf32> -> vector<4x8x8xf32>
    "tpu.trace_stop"() : () -> ()
    %c2_148 = arith.constant 2 : index
    %c0_149 = arith.constant 0 : index
    %c0_150 = arith.constant 0 : index
    %c0_151 = arith.constant 0 : index
    %262 = vector.load %arg5[%c2_148, %c0_149, %c0_150, %c0_151] : memref<3x4x32x8xbf16, #tpu.memory_space<vmem>>, vector<1x4x32x8xbf16>
    %263 = vector.shape_cast %262 : vector<1x4x32x8xbf16> to vector<4x32x8xbf16>
    "tpu.trace_start"() <{level = 10 : i32, message = "hte,hed->htd"}> : () -> ()
    %cst_152 = arith.constant dense<0.000000e+00> : vector<4x8x8xf32>
    %264 = tpu.matmul %258, %263, %cst_152 {dimension_numbers = #tpu.dot_dimension_numbers<[2], [1], [1], [2], [0, 0, 0, 1, 1, 2], [0], [0]>} : vector<4x8x32xbf16>, vector<4x32x8xbf16>, vector<4x8x8xf32> -> vector<4x8x8xf32>
    "tpu.trace_stop"() : () -> ()
    %c2_153 = arith.constant 2 : index
    %c0_154 = arith.constant 0 : index
    %c0_155 = arith.constant 0 : index
    %c0_156 = arith.constant 0 : index
    %265 = vector.load %arg6[%c2_153, %c0_154, %c0_155, %c0_156] : memref<3x4x32x8xbf16, #tpu.memory_space<vmem>>, vector<1x4x32x8xbf16>
    %266 = vector.shape_cast %265 : vector<1x4x32x8xbf16> to vector<4x32x8xbf16>
    "tpu.trace_start"() <{level = 10 : i32, message = "hte,hed->htd"}> : () -> ()
    %cst_157 = arith.constant dense<0.000000e+00> : vector<4x8x8xf32>
    %267 = tpu.matmul %258, %266, %cst_157 {dimension_numbers = #tpu.dot_dimension_numbers<[2], [1], [1], [2], [0, 0, 0, 1, 1, 2], [0], [0]>} : vector<4x8x32xbf16>, vector<4x32x8xbf16>, vector<4x8x8xf32> -> vector<4x8x8xf32>
    "tpu.trace_stop"() : () -> ()
    "tpu.trace_start"() <{level = 10 : i32, message = "htd,hkd->htk"}> : () -> ()
    %cst_158 = arith.constant dense<0.000000e+00> : vector<4x8x8xf32>
    %268 = tpu.matmul %261, %264, %cst_158 {dimension_numbers = #tpu.dot_dimension_numbers<[2], [2], [1], [1], [0, 0, 0, 1, 1, 1], [0], [0]>} : vector<4x8x8xf32>, vector<4x8x8xf32>, vector<4x8x8xf32> -> vector<4x8x8xf32>
    "tpu.trace_stop"() : () -> ()
    %cst_159 = arith.constant 0.353553385 : f32
    %269 = vector.broadcast %cst_159 : f32 to vector<4x8x8xf32>
    %270 = arith.mulf %268, %269 : vector<4x8x8xf32>
    %271 = vector.shape_cast %3 : vector<8x8xi1> to vector<1x8x8xi1>
    %cst_160 = arith.constant -1.000000e+30 : f32
    %272 = vector.shape_cast %271 : vector<1x8x8xi1> to vector<1x8x8xi1>
    %273 = vector.broadcast %272 : vector<1x8x8xi1> to vector<4x8x8xi1>
    %274 = vector.broadcast %cst_160 : f32 to vector<4x8x8xf32>
    %275 = arith.select %273, %270, %274 : vector<4x8x8xi1>, vector<4x8x8xf32>
    %cst_161 = arith.constant dense<0xFF800000> : vector<4x8xf32>
    %276 = vector.multi_reduction <maximumf>, %275, %cst_161 [2] : vector<4x8x8xf32> to vector<4x8xf32>
    %277 = vector.shape_cast %276 : vector<4x8xf32> to vector<4x8x1xf32>
    %278 = vector.broadcast %277 : vector<4x8x1xf32> to vector<4x8x8xf32>
    %279 = arith.subf %275, %278 : vector<4x8x8xf32>
    %280 = math.exp %279 : vector<4x8x8xf32>
    %cst_162 = arith.constant dense<0.000000e+00> : vector<4x8xf32>
    %281 = vector.multi_reduction <add>, %280, %cst_162 [2] : vector<4x8x8xf32> to vector<4x8xf32>
    %282 = vector.shape_cast %281 : vector<4x8xf32> to vector<4x8x1xf32>
    %283 = vector.broadcast %282 : vector<4x8x1xf32> to vector<4x8x8xf32>
    %284 = arith.divf %280, %283 : vector<4x8x8xf32>
    %285 = arith.truncf %284 : vector<4x8x8xf32> to vector<4x8x8xbf16>
    %286 = arith.truncf %267 : vector<4x8x8xf32> to vector<4x8x8xbf16>
    "tpu.trace_start"() <{level = 10 : i32, message = "htk,hkd->htd"}> : () -> ()
    %cst_163 = arith.constant dense<0.000000e+00> : vector<4x8x8xf32>
    %287 = tpu.matmul %285, %286, %cst_163 {dimension_numbers = #tpu.dot_dimension_numbers<[2], [1], [1], [2], [0, 0, 0, 1, 1, 2], [0], [0]>} : vector<4x8x8xbf16>, vector<4x8x8xbf16>, vector<4x8x8xf32> -> vector<4x8x8xf32>
    "tpu.trace_stop"() : () -> ()
    %288 = arith.truncf %287 : vector<4x8x8xf32> to vector<4x8x8xbf16>
    %c2_164 = arith.constant 2 : index
    %c0_165 = arith.constant 0 : index
    %c0_166 = arith.constant 0 : index
    %c0_167 = arith.constant 0 : index
    %289 = vector.load %arg7[%c2_164, %c0_165, %c0_166, %c0_167] : memref<3x4x8x32xbf16, #tpu.memory_space<vmem>>, vector<1x4x8x32xbf16>
    %290 = vector.shape_cast %289 : vector<1x4x8x32xbf16> to vector<4x8x32xbf16>
    "tpu.trace_start"() <{level = 10 : i32, message = "htd,hde->hte"}> : () -> ()
    %cst_168 = arith.constant dense<0.000000e+00> : vector<4x8x32xf32>
    %291 = tpu.matmul %288, %290, %cst_168 {dimension_numbers = #tpu.dot_dimension_numbers<[2], [1], [1], [2], [0, 0, 0, 1, 1, 2], [0], [0]>} : vector<4x8x8xbf16>, vector<4x8x32xbf16>, vector<4x8x32xf32> -> vector<4x8x32xf32>
    "tpu.trace_stop"() : () -> ()
    %cst_169 = arith.constant dense<0.000000e+00> : vector<8x32xf32>
    %292 = vector.multi_reduction <add>, %291, %cst_169 [0] : vector<4x8x32xf32> to vector<8x32xf32>
    %293 = arith.addf %229, %292 : vector<8x32xf32>
    %c2_170 = arith.constant 2 : index
    %c0_171 = arith.constant 0 : index
    %c0_172 = arith.constant 0 : index
    %294 = vector.load %arg8[%c2_170, %c0_171, %c0_172] : memref<3x1x32xf32, #tpu.memory_space<vmem>>, vector<1x1x32xf32>
    %295 = vector.shape_cast %294 : vector<1x1x32xf32> to vector<1x32xf32>
    %296 = vector.broadcast %295 : vector<1x32xf32> to vector<8x32xf32>
    %297 = arith.addf %293, %296 : vector<8x32xf32>
    %c2_173 = arith.constant 2 : index
    %c0_174 = arith.constant 0 : index
    %c0_175 = arith.constant 0 : index
    %298 = vector.load %arg9[%c2_173, %c0_174, %c0_175] : memref<3x1x32xf32, #tpu.memory_space<vmem>>, vector<1x1x32xf32>
    %299 = vector.shape_cast %298 : vector<1x1x32xf32> to vector<1x32xf32>
    %c2_176 = arith.constant 2 : index
    %c0_177 = arith.constant 0 : index
    %c0_178 = arith.constant 0 : index
    %300 = vector.load %arg10[%c2_176, %c0_177, %c0_178] : memref<3x1x32xf32, #tpu.memory_space<vmem>>, vector<1x1x32xf32>
    %301 = vector.shape_cast %300 : vector<1x1x32xf32> to vector<1x32xf32>
    %cst_179 = arith.constant dense<0.000000e+00> : vector<8xf32>
    %302 = vector.multi_reduction <add>, %297, %cst_179 [1] : vector<8x32xf32> to vector<8xf32>
    %303 = vector.shape_cast %302 : vector<8xf32> to vector<8x1xf32>
    %cst_180 = arith.constant 3.200000e+01 : f32
    %304 = vector.broadcast %cst_180 : f32 to vector<8x1xf32>
    %305 = arith.divf %303, %304 : vector<8x1xf32>
    %306 = vector.broadcast %305 : vector<8x1xf32> to vector<8x32xf32>
    %307 = arith.subf %297, %306 : vector<8x32xf32>
    %308 = arith.mulf %307, %307 : vector<8x32xf32>
    %cst_181 = arith.constant dense<0.000000e+00> : vector<8xf32>
    %309 = vector.multi_reduction <add>, %308, %cst_181 [1] : vector<8x32xf32> to vector<8xf32>
    %310 = vector.shape_cast %309 : vector<8xf32> to vector<8x1xf32>
    %cst_182 = arith.constant 3.200000e+01 : f32
    %311 = vector.broadcast %cst_182 : f32 to vector<8x1xf32>
    %312 = arith.divf %310, %311 : vector<8x1xf32>
    %313 = vector.broadcast %305 : vector<8x1xf32> to vector<8x32xf32>
    %314 = arith.subf %297, %313 : vector<8x32xf32>
    %cst_183 = arith.constant 9.99999974E-6 : f32
    %315 = vector.broadcast %cst_183 : f32 to vector<8x1xf32>
    %316 = arith.addf %312, %315 : vector<8x1xf32>
    %317 = math.rsqrt %316 : vector<8x1xf32>
    %318 = vector.broadcast %317 : vector<8x1xf32> to vector<8x32xf32>
    %319 = arith.mulf %314, %318 : vector<8x32xf32>
    %320 = vector.broadcast %299 : vector<1x32xf32> to vector<8x32xf32>
    %321 = arith.mulf %319, %320 : vector<8x32xf32>
    %322 = vector.broadcast %301 : vector<1x32xf32> to vector<8x32xf32>
    %323 = arith.addf %321, %322 : vector<8x32xf32>
    %324 = arith.truncf %323 : vector<8x32xf32> to vector<8x32xbf16>
    %c2_184 = arith.constant 2 : index
    %c0_185 = arith.constant 0 : index
    %c0_186 = arith.constant 0 : index
    %325 = vector.load %arg11[%c2_184, %c0_185, %c0_186] : memref<3x32x128xbf16, #tpu.memory_space<vmem>>, vector<1x32x128xbf16>
    %326 = vector.shape_cast %325 : vector<1x32x128xbf16> to vector<32x128xbf16>
    %cst_187 = arith.constant dense<0.000000e+00> : vector<8x128xf32>
    %327 = tpu.matmul %324, %326, %cst_187 {dimension_numbers = #tpu.dot_dimension_numbers<[1], [0], [0], [1], [0, 0, 1, 1], [], []>} : vector<8x32xbf16>, vector<32x128xbf16>, vector<8x128xf32> -> vector<8x128xf32>
    %c2_188 = arith.constant 2 : index
    %c0_189 = arith.constant 0 : index
    %c0_190 = arith.constant 0 : index
    %328 = vector.load %arg12[%c2_188, %c0_189, %c0_190] : memref<3x1x128xf32, #tpu.memory_space<vmem>>, vector<1x1x128xf32>
    %329 = vector.shape_cast %328 : vector<1x1x128xf32> to vector<1x128xf32>
    %330 = vector.broadcast %329 : vector<1x128xf32> to vector<8x128xf32>
    %331 = arith.addf %327, %330 : vector<8x128xf32>
    %cst_191 = arith.constant 0.000000e+00 : f32
    %332 = vector.broadcast %cst_191 : f32 to vector<8x128xf32>
    %333 = arith.maximumf %331, %332 : vector<8x128xf32>
    %334 = arith.truncf %333 : vector<8x128xf32> to vector<8x128xbf16>
    %c2_192 = arith.constant 2 : index
    %c0_193 = arith.constant 0 : index
    %c0_194 = arith.constant 0 : index
    %335 = vector.load %arg13[%c2_192, %c0_193, %c0_194] : memref<3x128x32xbf16, #tpu.memory_space<vmem>>, vector<1x128x32xbf16>
    %336 = vector.shape_cast %335 : vector<1x128x32xbf16> to vector<128x32xbf16>
    %cst_195 = arith.constant dense<0.000000e+00> : vector<8x32xf32>
    %337 = tpu.matmul %334, %336, %cst_195 {dimension_numbers = #tpu.dot_dimension_numbers<[1], [0], [0], [1], [0, 0, 1, 1], [], []>} : vector<8x128xbf16>, vector<128x32xbf16>, vector<8x32xf32> -> vector<8x32xf32>
    %338 = arith.addf %297, %337 : vector<8x32xf32>
    %c2_196 = arith.constant 2 : index
    %c0_197 = arith.constant 0 : index
    %c0_198 = arith.constant 0 : index
    %339 = vector.load %arg14[%c2_196, %c0_197, %c0_198] : memref<3x1x32xf32, #tpu.memory_space<vmem>>, vector<1x1x32xf32>
    %340 = vector.shape_cast %339 : vector<1x1x32xf32> to vector<1x32xf32>
    %341 = vector.broadcast %340 : vector<1x32xf32> to vector<8x32xf32>
    %342 = arith.addf %338, %341 : vector<8x32xf32>
    %c0_199 = arith.constant 0 : index
    %c0_200 = arith.constant 0 : index
    %343 = vector.load %arg15[%c0_199, %c0_200] : memref<1x32xf32, #tpu.memory_space<vmem>>, vector<1x32xf32>
    %c0_201 = arith.constant 0 : index
    %c0_202 = arith.constant 0 : index
    %344 = vector.load %arg16[%c0_201, %c0_202] : memref<1x32xf32, #tpu.memory_space<vmem>>, vector<1x32xf32>
    %cst_203 = arith.constant dense<0.000000e+00> : vector<8xf32>
    %345 = vector.multi_reduction <add>, %342, %cst_203 [1] : vector<8x32xf32> to vector<8xf32>
    %346 = vector.shape_cast %345 : vector<8xf32> to vector<8x1xf32>
    %cst_204 = arith.constant 3.200000e+01 : f32
    %347 = vector.broadcast %cst_204 : f32 to vector<8x1xf32>
    %348 = arith.divf %346, %347 : vector<8x1xf32>
    %349 = vector.broadcast %348 : vector<8x1xf32> to vector<8x32xf32>
    %350 = arith.subf %342, %349 : vector<8x32xf32>
    %351 = arith.mulf %350, %350 : vector<8x32xf32>
    %cst_205 = arith.constant dense<0.000000e+00> : vector<8xf32>
    %352 = vector.multi_reduction <add>, %351, %cst_205 [1] : vector<8x32xf32> to vector<8xf32>
    %353 = vector.shape_cast %352 : vector<8xf32> to vector<8x1xf32>
    %cst_206 = arith.constant 3.200000e+01 : f32
    %354 = vector.broadcast %cst_206 : f32 to vector<8x1xf32>
    %355 = arith.divf %353, %354 : vector<8x1xf32>
    %356 = vector.broadcast %348 : vector<8x1xf32> to vector<8x32xf32>
    %357 = arith.subf %342, %356 : vector<8x32xf32>
    %cst_207 = arith.constant 9.99999974E-6 : f32
    %358 = vector.broadcast %cst_207 : f32 to vector<8x1xf32>
    %359 = arith.addf %355, %358 : vector<8x1xf32>
    %360 = math.rsqrt %359 : vector<8x1xf32>
    %361 = vector.broadcast %360 : vector<8x1xf32> to vector<8x32xf32>
    %362 = arith.mulf %357, %361 : vector<8x32xf32>
    %363 = vector.broadcast %343 : vector<1x32xf32> to vector<8x32xf32>
    %364 = arith.mulf %362, %363 : vector<8x32xf32>
    %365 = vector.broadcast %344 : vector<1x32xf32> to vector<8x32xf32>
    %366 = arith.addf %364, %365 : vector<8x32xf32>
    %367 = arith.truncf %366 : vector<8x32xf32> to vector<8x32xbf16>
    %c0_208 = arith.constant 0 : index
    %c0_209 = arith.constant 0 : index
    %368 = vector.load %arg17[%c0_208, %c0_209] : memref<32x128xbf16, #tpu.memory_space<vmem>>, vector<32x128xbf16>
    %cst_210 = arith.constant dense<0.000000e+00> : vector<8x128xf32>
    %369 = tpu.matmul %367, %368, %cst_210 {dimension_numbers = #tpu.dot_dimension_numbers<[1], [0], [0], [1], [0, 0, 1, 1], [], []>} : vector<8x32xbf16>, vector<32x128xbf16>, vector<8x128xf32> -> vector<8x128xf32>
    %c0_211 = arith.constant 0 : index
    %c0_212 = arith.constant 0 : index
    %370 = vector.load %arg18[%c0_211, %c0_212] : memref<1x128xf32, #tpu.memory_space<vmem>>, vector<1x128xf32>
    %371 = vector.broadcast %370 : vector<1x128xf32> to vector<8x128xf32>
    %372 = arith.addf %369, %371 : vector<8x128xf32>
    %c0_213 = arith.constant 0 : index
    %c0_214 = arith.constant 0 : index
    %373 = vector.load %arg19[%c0_213, %c0_214] : memref<8x128xf32, #tpu.memory_space<vmem>>, vector<8x128xf32>
    tpu.vector_store %arg19[%c0_213, %c0_214], %372 {strides = array<i32>} : memref<8x128xf32, #tpu.memory_space<vmem>>, vector<8x128xf32>,
    return
  }
  func.func @transform_0(%arg0: i32) -> (i32, i32) {
    %c0_i32 = arith.constant 0 : i32
    %c0_i32_0 = arith.constant 0 : i32
    return %arg0, %c0_i32 : i32, i32
  }
  func.func @transform_1(%arg0: i32) -> (i32, i32, i32) {
    %c0_i32 = arith.constant 0 : i32
    %c0_i32_0 = arith.constant 0 : i32
    %c0_i32_1 = arith.constant 0 : i32
    %c0_i32_2 = arith.constant 0 : i32
    return %c0_i32, %c0_i32_0, %c0_i32_1 : i32, i32, i32
  }
  func.func @transform_2(%arg0: i32) -> (i32, i32, i32) {
    %c0_i32 = arith.constant 0 : i32
    %c0_i32_0 = arith.constant 0 : i32
    %c0_i32_1 = arith.constant 0 : i32
    %c0_i32_2 = arith.constant 0 : i32
    return %c0_i32, %c0_i32_0, %c0_i32_1 : i32, i32, i32
  }
  func.func @transform_3(%arg0: i32) -> (i32, i32, i32, i32) {
    %c0_i32 = arith.constant 0 : i32
    %c0_i32_0 = arith.constant 0 : i32
    %c0_i32_1 = arith.constant 0 : i32
    %c0_i32_2 = arith.constant 0 : i32
    %c0_i32_3 = arith.constant 0 : i32
    return %c0_i32, %c0_i32_0, %c0_i32_1, %c0_i32_2 : i32, i32, i32, i32
  }
  func.func @transform_4(%arg0: i32) -> (i32, i32, i32, i32) {
    %c0_i32 = arith.constant 0 : i32
    %c0_i32_0 = arith.constant 0 : i32
    %c0_i32_1 = arith.constant 0 : i32
    %c0_i32_2 = arith.constant 0 : i32
    %c0_i32_3 = arith.constant 0 : i32
    return %c0_i32, %c0_i32_0, %c0_i32_1, %c0_i32_2 : i32, i32, i32, i32
  }
  func.func @transform_5(%arg0: i32) -> (i32, i32, i32, i32) {
    %c0_i32 = arith.constant 0 : i32
    %c0_i32_0 = arith.constant 0 : i32
    %c0_i32_1 = arith.constant 0 : i32
    %c0_i32_2 = arith.constant 0 : i32
    %c0_i32_3 = arith.constant 0 : i32
    return %c0_i32, %c0_i32_0, %c0_i32_1, %c0_i32_2 : i32, i32, i32, i32
  }
  func.func @transform_6(%arg0: i32) -> (i32, i32, i32, i32) {
    %c0_i32 = arith.constant 0 : i32
    %c0_i32_0 = arith.constant 0 : i32
    %c0_i32_1 = arith.constant 0 : i32
    %c0_i32_2 = arith.constant 0 : i32
    %c0_i32_3 = arith.constant 0 : i32
    return %c0_i32, %c0_i32_0, %c0_i32_1, %c0_i32_2 : i32, i32, i32, i32
  }
  func.func @transform_7(%arg0: i32) -> (i32, i32, i32) {
    %c0_i32 = arith.constant 0 : i32
    %c0_i32_0 = arith.constant 0 : i32
    %c0_i32_1 = arith.constant 0 : i32
    %c0_i32_2 = arith.constant 0 : i32
    return %c0_i32, %c0_i32_0, %c0_i32_1 : i32, i32, i32
  }
  func.func @transform_8(%arg0: i32) -> (i32, i32, i32) {
    %c0_i32 = arith.constant 0 : i32
    %c0_i32_0 = arith.constant 0 : i32
    %c0_i32_1 = arith.constant 0 : i32
    %c0_i32_2 = arith.constant 0 : i32
    return %c0_i32, %c0_i32_0, %c0_i32_1 : i32, i32, i32
  }
  func.func @transform_9(%arg0: i32) -> (i32, i32, i32) {
    %c0_i32 = arith.constant 0 : i32
    %c0_i32_0 = arith.constant 0 : i32
    %c0_i32_1 = arith.constant 0 : i32
    %c0_i32_2 = arith.constant 0 : i32
    return %c0_i32, %c0_i32_0, %c0_i32_1 : i32, i32, i32
  }
  func.func @transform_10(%arg0: i32) -> (i32, i32, i32) {
    %c0_i32 = arith.constant 0 : i32
    %c0_i32_0 = arith.constant 0 : i32
    %c0_i32_1 = arith.constant 0 : i32
    %c0_i32_2 = arith.constant 0 : i32
    return %c0_i32, %c0_i32_0, %c0_i32_1 : i32, i32, i32
  }
  func.func @transform_11(%arg0: i32) -> (i32, i32, i32) {
    %c0_i32 = arith.constant 0 : i32
    %c0_i32_0 = arith.constant 0 : i32
    %c0_i32_1 = arith.constant 0 : i32
    %c0_i32_2 = arith.constant 0 : i32
    return %c0_i32, %c0_i32_0, %c0_i32_1 : i32, i32, i32
  }
  func.func @transform_12(%arg0: i32) -> (i32, i32, i32) {
    %c0_i32 = arith.constant 0 : i32
    %c0_i32_0 = arith.constant 0 : i32
    %c0_i32_1 = arith.constant 0 : i32
    %c0_i32_2 = arith.constant 0 : i32
    return %c0_i32, %c0_i32_0, %c0_i32_1 : i32, i32, i32
  }
  func.func @transform_13(%arg0: i32) -> (i32, i32, i32) {
    %c0_i32 = arith.constant 0 : i32
    %c0_i32_0 = arith.constant 0 : i32
    %c0_i32_1 = arith.constant 0 : i32
    %c0_i32_2 = arith.constant 0 : i32
    return %c0_i32, %c0_i32_0, %c0_i32_1 : i32, i32, i32
  }
  func.func @transform_14(%arg0: i32) -> (i32, i32) {
    %c0_i32 = arith.constant 0 : i32
    %c0_i32_0 = arith.constant 0 : i32
    %c0_i32_1 = arith.constant 0 : i32
    return %c0_i32, %c0_i32_0 : i32, i32
  }
  func.func @transform_15(%arg0: i32) -> (i32, i32) {
    %c0_i32 = arith.constant 0 : i32
    %c0_i32_0 = arith.constant 0 : i32
    %c0_i32_1 = arith.constant 0 : i32
    return %c0_i32, %c0_i32_0 : i32, i32
  }
  func.func @transform_16(%arg0: i32) -> (i32, i32) {
    %c0_i32 = arith.constant 0 : i32
    %c0_i32_0 = arith.constant 0 : i32
    %c0_i32_1 = arith.constant 0 : i32
    return %c0_i32, %c0_i32_0 : i32, i32
  }
  func.func @transform_17(%arg0: i32) -> (i32, i32) {
    %c0_i32 = arith.constant 0 : i32
    %c0_i32_0 = arith.constant 0 : i32
    %c0_i32_1 = arith.constant 0 : i32
    return %c0_i32, %c0_i32_0 : i32, i32
  }
  func.func @transform_18(%arg0: i32) -> (i32, i32) {
    %c0_i32 = arith.constant 0 : i32
    %c0_i32_0 = arith.constant 0 : i32
    return %arg0, %c0_i32 : i32, i32
  }
}

</mosaic_0001>

<bundles_post_ra>
// kernel: decoder_forward.1
= control target key start
LH: loop header
LB: loop body
LE: loop exit
PB: predicated region body
PF: predicated region fallthrough
CT: control target
= control target key end

     0   :  { %s7244_s27 = smov 0   ;;  %s8266_s0 = inlined_call_operand.vmem [shape: f32[16,32], index: 0, kind: input, shape index: {}]   ;;  %s8267_s1 = inlined_call_operand.vmem [shape: f32[3,1,32], index: 1, kind: input, shape index: {}]   ;;  %s8268_s2 = inlined_call_operand.vmem [shape: f32[3,1,32], index: 2, kind: input, shape index: {}]   ;;  %s8269_s3 = inlined_call_operand.vmem [shape: bf16[3,4,32,8], index: 3, kind: input, shape index: {}]   ;;  %s8270_s4 = inlined_call_operand.vmem [shape: bf16[3,4,32,8], index: 4, kind: input, shape index: {}]   ;;  %s8271_s5 = inlined_call_operand.vmem [shape: bf16[3,4,32,8], index: 5, kind: input, shape index: {}]   ;;  %s8272_s6 = inlined_call_operand.vmem [shape: bf16[3,4,8,32], index: 6, kind: input, shape index: {}]   ;;  %s8273_s7 = inlined_call_operand.vmem [shape: f32[3,1,32], index: 7, kind: input, shape index: {}]   ;;  %s8274_s8 = inlined_call_operand.vmem [shape: f32[3,1,32], index: 8, kind: input, shape index: {}]   ;;  %s8275_s9 = inlined_call_operand.vmem [shape: f32[3,1,32], index: 9, kind: input, shape index: {}]   ;;  %s8276_s10 = inlined_call_operand.vmem [shape: bf16[3,32,128], index: 10, kind: input, shape index: {}]   ;;  %s8277_s11 = inlined_call_operand.vmem [shape: f32[3,1,128], index: 11, kind: input, shape index: {}]   ;;  %s8278_s12 = inlined_call_operand.vmem [shape: bf16[3,128,32], index: 12, kind: input, shape index: {}]   ;;  %s8279_s13 = inlined_call_operand.vmem [shape: f32[3,1,32], index: 13, kind: input, shape index: {}]   ;;  %s8280_s14 = inlined_call_operand.vmem [shape: f32[1,32], index: 14, kind: input, shape index: {}]   ;;  %s8281_s15 = inlined_call_operand.vmem [shape: f32[1,32], index: 15, kind: input, shape index: {}]   ;;  %s8282_s16 = inlined_call_operand.vmem [shape: bf16[32,128], index: 16, kind: input, shape index: {}]   ;;  %s8283_s17 = inlined_call_operand.vmem [shape: f32[1,128], index: 17, kind: input, shape index: {}]   ;;  %s8284_s18 = inlined_call_operand.vmem [shape: f32[16,128], index: 18, kind: output, shape index: {}]  }
   0x1   :  { %8287 = sst [smem:[#allocation2_spill]] %s8266_s0 }
   0x2   :  { %8288 = sst [smem:[#allocation3_spill]] %s8267_s1 }
   0x3   :  { %8289 = sst [smem:[#allocation4_spill]] %s8268_s2 }
   0x4 LB: > { %s5776_s28 = sadd.s32 4294967295, %s7145_s27   ;;  %p5780_p0 = scmp.ge.s32.totalorder %s7145_s27, 1  ;;  %s7145_s27 = sphi %s7244_s27, %s28_s27  }
   0x5   : > { %p511_p1 = scmp.lt.s32.totalorder %s7145_s27, 3 }
   0x7   : > { %p512_p2 = pnand %p5780_p0, %p511_p1 }
   0x8   : > { %p563_p3 = scmp.lt.s32.totalorder (!%p512_p2), %s5776_s28, 1  ;;  %vm580_vm0 = vcmask (!%p512_p2), 261120   ;;  %s8290_s19 = sld [smem:[#allocation2_spill]] (!%p512_p2)  ;;  %v6972_v7 = vld [vmem:[%s8269_s3] sm:$0xff] (!%p512_p2)   ;;  %v6973_v8 = vld [vmem:[%s8269_s3 + $0x30] sm:$0xff] (!%p512_p2)   ;;  %v7147_v9 = vmov (!%p512_p2), 0.0  }
   0x9   : > { %515 = sbr.rel (%p512_p2) target bundleno = 7395 (0x1ce3), region = 92  ;;  %6378 = vmatprep.subr.bf16.mxu0 (!%p512_p2), %v7147_v9  ;;  %6402 = vmatprep.subr.bf16.mxu1 (!%p512_p2), %v7147_v9  ;;  %v6974_v10 = vld [vmem:[%s8269_s3 + $0x8] sm:$0xff] (!%p512_p2)   ;;  %v6975_v11 = vld [vmem:[%s8269_s3 + $0x38] sm:$0xff] (!%p512_p2)   ;;  %vm7148_vm1 = vmmov (!%p512_p2), 0   ;;  %s8292_s22 = sld [smem:[#allocation4_spill]] (!%p512_p2)  ;;  %v6976_v21 = vld [vmem:[%s8269_s3 + $0x10] sm:$0xff] (!%p512_p2)  }
   0xa   : > { %6379 = vmatpush3.bf16.msra.mxu0 (!%p512_p2), %v6972_v7  ;;  %6403 = vmatpush3.bf16.msra.mxu1 (!%p512_p2), %v6973_v8  ;;  %v6977_v22 = vld [vmem:[%s8270_s4 + $0x10] sm:$0xff] (!%p512_p2)   ;;  %v6978_v24 = vld [vmem:[%s8269_s3 + $0x18] sm:$0xff] (!%p512_p2)   ;;  %v6980_v26 = vld [vmem:[%s8269_s3 + $0x20] sm:$0xff] (!%p512_p2)   ;;  %vm1285_vm2 = vcmask (!%p512_p2), 64512   ;;  %vm1655_vm3 = vcmask (!%p512_p2), 1043456  }
   0xb   : > { %6380 = vmatprep.subr.bf16.mxu0 (!%p512_p2), %v7147_v9  ;;  %6404 = vmatprep.subr.bf16.mxu1 (!%p512_p2), %v7147_v9  ;;  %v6979_v25 = vld [vmem:[%s8270_s4 + $0x18] sm:$0xff] (!%p512_p2)   ;;  %v6981_v27 = vld [vmem:[%s8270_s4 + $0x30] sm:$0xff] (!%p512_p2)   ;;  %v6982_v28 = vld [vmem:[%s8269_s3 + $0x28] sm:$0xff] (!%p512_p2)  }
   0xc   : > { %6382 = vmatprep.mubr.msk.bf16.mxu0 (!%p512_p2), %vm7148_vm1, %v7147_v9  ;;  %6406 = vmatprep.mubr.msk.bf16.mxu1 (!%p512_p2), %vm7148_vm1, %v7147_v9  ;;  %v6983_v29 = vld [vmem:[%s8270_s4 + $0x38] sm:$0xff] (!%p512_p2)   ;;  %v6984_v30 = vld [vmem:[%s8270_s4] sm:$0xff] (!%p512_p2)   ;;  %v6985_v31 = vld [vmem:[%s8271_s5 + $0x10] sm:$0xff] (!%p512_p2)  }
   0xd   : > { %v6986_v32 = vld [vmem:[%s8270_s4 + $0x8] sm:$0xff] (!%p512_p2)   ;;  %v6987_v33 = vld [vmem:[%s8271_s5 + $0x18] sm:$0xff] (!%p512_p2)   ;;  %v6988_v34 = vld [vmem:[%s8270_s4 + $0x20] sm:$0xff] (!%p512_p2)  }
   0xe   : > { %6381 = vmatpush3.bf16.msra.mxu0 (!%p512_p2), %v6974_v10  ;;  %6405 = vmatpush3.bf16.msra.mxu1 (!%p512_p2), %v6975_v11  ;;  %v6989_v35 = vld [vmem:[%s8271_s5 + $0x30] sm:$0xff] (!%p512_p2)   ;;  %v6990_v36 = vld [vmem:[%s8270_s4 + $0x28] sm:$0xff] (!%p512_p2)   ;;  %v6991_v37 = vld [vmem:[%s8271_s5 + $0x38] sm:$0xff] (!%p512_p2)  }
   0xf   : > { %6386 = vmatprep.subr.bf16.mxu0 (!%p512_p2), %v7147_v9  ;;  %6418 = vmatprep.subr.bf16.mxu1 (!%p512_p2), %v7147_v9  ;;  %v5784_v18 = vld [vmem:[%s8292_s22] ss:$0 sm:$0xff] (!%p512_p2)  ;;  %v6993_v39 = vld [vmem:[%s8271_s5 + $0x8] sm:$0xff] (!%p512_p2)  }
  0x10   : > { %s8296_s28 = smov (!%p563_p3, %s5776_s28), 1  ;;  %v6992_v38 = vld [vmem:[%s8271_s5] sm:$0xff]   ;;  %v6995_v41 = vld [vmem:[%s8271_s5 + $0x28] sm:$0xff]  }
  0x11   : > { %s5781_s29 = sshll.u32 %s8296_s28, 3  ;;  %v6994_v40 = vld [vmem:[%s8271_s5 + $0x20] sm:$0xff]  }
  0x12   : > { %s7260_s1 = scalar_lea.vmem %s8290_s19, %s5781_s29  ;;  %s8291_s19 = sld [smem:[#allocation3_spill]] }
  0x13   : > { %v572_v0 = vld [vmem:[%s7260_s1] sm:$0xff]  ;;  %s570_s30 = scalar_lea.vmem %s8284_s18, %s5781_s29 }
  0x14   : > { %v581_v1 = vsel %vm580_vm0, %v572_v0, 0.0 }
  0x15   : > { %582 = vadd.xlane.f32.xlu0 %v581_v1 }
  0x18   : > { %v5783_v16 = vld [vmem:[%s8291_s19] ss:$0 sm:$0xff] }
  0xa2   : > { %v583_v2 = vpop.xlane.xlu0 %582 }
  0xa3   : > { %v585_v3 = vmul.f32 0.03125, %v583_v2 }
  0xa5   : > { %v586_v4 = vsub.f32 %v572_v0, %v585_v3 }
  0xa7   : > { %v587_v5 = vmul.f32 %v586_v4, %v586_v4 }
  0xa9   : > { %v588_v6 = vsel %vm580_vm0, %v587_v5, 0.0 }
  0xaa   : > { %589 = vadd.xlane.f32.xlu0 %v588_v6 }
 0x137   : > { %v590_v12 = vpop.xlane.xlu0 %589 }
 0x138   : > { %v591_v13 = vmul.f32 0.03125, %v590_v12 }
 0x13a   : > { %v592_v14 = vadd.f32 1e-05, %v591_v13 }
 0x13c   : > { %7076 = vrsqrt.f32 %v592_v14 }
 0x146   : > { %v7077_v15 = vpop.eup %7076 }
 0x147   : > { %v594_v17 = vmul.f32 %v7077_v15, %v586_v4 }
 0x149   : > { %v601_v19 = vmul.f32 %v5783_v16, %v594_v17 }
 0x14b   : > { %v608_v20 = vadd.f32 %v5784_v18, %v601_v19 }
 0x14d   : > { %v7299_v23 = vpack.c.bf16 %v608_v20, %v608_v20 }
 0x14f   : > { %6383 = vmatmul.mubr.msk.bf16.vlgmr.msra.gmra.mrb[0].mxu0 %vm580_vm0, %v7299_v23  ;;  %6407 = vmatmul.mubr.msk.bf16.vlgmr.msra.gmra.mrb[0].mxu1 %vm580_vm0, %v7299_v23 }
 0x150   : > { %6387 = vmatpush3.bf16.msra.mxu0 %v6976_v21  ;;  %6419 = vmatpush3.bf16.msra.mxu1 %v6977_v22 }
 0x151   : > { %6388 = vmatprep.subr.bf16.mxu0 %v7147_v9  ;;  %6420 = vmatprep.subr.bf16.mxu1 %v7147_v9 }
 0x152   : > { %6390 = vmatprep.mubr.msk.bf16.mxu0 %vm7148_vm1, %v7147_v9  ;;  %6422 = vmatprep.mubr.msk.bf16.mxu1 %vm7148_vm1, %v7147_v9 }
 0x154   : > { %6389 = vmatpush3.bf16.msra.mxu0 %v6978_v24  ;;  %6421 = vmatpush3.bf16.msra.mxu1 %v6979_v25 }
 0x155   : > { %6394 = vmatprep.subr.bf16.mxu0 %v7147_v9  ;;  %6434 = vmatprep.subr.bf16.mxu1 %v7147_v9 }
 0x157   : > { %6391 = vmatmul.mubr.msk.bf16.vlgmr.msra.gmra.mrb[4].mxu0 %vm580_vm0, %v7299_v23  ;;  %6423 = vmatmul.mubr.msk.bf16.vlgmr.msra.gmra.mrb[4].mxu1 %vm580_vm0, %v7299_v23 }
 0x158   : > { %6395 = vmatpush3.bf16.msra.mxu0 %v6980_v26  ;;  %6435 = vmatpush3.bf16.msra.mxu1 %v6981_v27 }
 0x159   : > { %6396 = vmatprep.subr.bf16.mxu0 %v7147_v9  ;;  %6436 = vmatprep.subr.bf16.mxu1 %v7147_v9 }
 0x15a   : > { %6398 = vmatprep.mubr.msk.bf16.mxu0 %vm7148_vm1, %v7147_v9  ;;  %6438 = vmatprep.mubr.msk.bf16.mxu1 %vm7148_vm1, %v7147_v9 }
 0x15c   : > { %6397 = vmatpush3.bf16.msra.mxu0 %v6982_v28  ;;  %6437 = vmatpush3.bf16.msra.mxu1 %v6983_v29 }
 0x15d   : > { %6410 = vmatprep.subr.bf16.mxu0 %v7147_v9  ;;  %6450 = vmatprep.subr.bf16.mxu1 %v7147_v9 }
 0x15f   : > { %6399 = vmatmul.mubr.msk.bf16.vlgmr.msra.gmra.mrb[8].mxu0 %vm580_vm0, %v7299_v23  ;;  %6439 = vmatmul.mubr.msk.bf16.vlgmr.msra.gmra.mrb[8].mxu1 %vm580_vm0, %v7299_v23 }
 0x160   : > { %6411 = vmatpush3.bf16.msra.mxu0 %v6984_v30  ;;  %6451 = vmatpush3.bf16.msra.mxu1 %v6985_v31 }
 0x161   : > { %6412 = vmatprep.subr.bf16.mxu0 %v7147_v9  ;;  %6452 = vmatprep.subr.bf16.mxu1 %v7147_v9 }
 0x162   : > { %6414 = vmatprep.mubr.msk.bf16.mxu0 %vm7148_vm1, %v7147_v9  ;;  %6454 = vmatprep.mubr.msk.bf16.mxu1 %vm7148_vm1, %v7147_v9 }
 0x164   : > { %6413 = vmatpush3.bf16.msra.mxu0 %v6986_v32  ;;  %6453 = vmatpush3.bf16.msra.mxu1 %v6987_v33 }
 0x165   : > { %6426 = vmatprep.subr.bf16.mxu0 %v7147_v9  ;;  %6466 = vmatprep.subr.bf16.mxu1 %v7147_v9 }
 0x167   : > { %6415 = vmatmul.mubr.msk.bf16.vlgmr.msra.gmra.mrb[12].mxu0 %vm580_vm0, %v7299_v23  ;;  %6455 = vmatmul.mubr.msk.bf16.vlgmr.msra.gmra.mrb[12].mxu1 %vm580_vm0, %v7299_v23 }
 0x168   : > { %6427 = vmatpush3.bf16.msra.mxu0 %v6988_v34  ;;  %6467 = vmatpush3.bf16.msra.mxu1 %v6989_v35  ;;  %v573_v35 = vlaneseq }
 0x169   : > { %6428 = vmatprep.subr.bf16.mxu0 %v7147_v9  ;;  %6468 = vmatprep.subr.bf16.mxu1 %v7147_v9 }
 0x16a   : > { %6430 = vmatprep.mubr.msk.bf16.mxu0 %vm7148_vm1, %v7147_v9  ;;  %6470 = vmatprep.mubr.msk.bf16.mxu1 %vm7148_vm1, %v7147_v9 }
 0x16c   : > { %6429 = vmatpush3.bf16.msra.mxu0 %v6990_v36  ;;  %6469 = vmatpush3.bf16.msra.mxu1 %v6991_v37  ;;  %v574_v36 = vshrl.u32 %v573_v35, 7  ;;  %v576_v37 = vand.u32 127, %v573_v35 }
 0x16d   : > { %6442 = vmatprep.subr.bf16.mxu0 %v7147_v9  ;;  %6479 = vmatprep.subr.mxu1 %v7147_v9 }
 0x16e   : > { %vm7451_vm4 = vcmp.ge.s32.totalorder %v574_v36, %v576_v37  ;;  %v1843_v36 = vld [vmem:[%s8272_s6 + $0x8] sm:$0xf] }
 0x16f   : > { %6431 = vmatmul.mubr.msk.bf16.vlgmr.msra.gmra.mrb[16].mxu0 %vm580_vm0, %v7299_v23  ;;  %6471 = vmatmul.mubr.msk.bf16.vlgmr.msra.gmra.mrb[16].mxu1 %vm580_vm0, %v7299_v23 }
 0x170   : > { %6443 = vmatpush3.bf16.msra.mxu0 %v6992_v38  ;;  %6446 = vmatprep.mubr.msk.bf16.mxu0 %vm7148_vm1, %v7147_v9 }
 0x171   : > { %6444 = vmatprep.subr.bf16.mxu0 %v7147_v9  ;;  %6481 = vmatprep.mubr.msk.f32.mxu1 %vm7148_vm1, %v7147_v9 }
 0x174   : > { %6445 = vmatpush3.bf16.msra.mxu0 %v6993_v39 }
 0x175   : > { %6458 = vmatprep.subr.bf16.mxu0 %v7147_v9 }
 0x177   : > { %6447 = vmatmul.mubr.msk.bf16.vlgmr.msra.gmra.mrb[20].mxu0 %vm580_vm0, %v7299_v23 }
 0x178   : > { %6459 = vmatpush3.bf16.msra.mxu0 %v6994_v40  ;;  %6462 = vmatprep.mubr.msk.bf16.mxu0 %vm7148_vm1, %v7147_v9 }
 0x179   : > { %6460 = vmatprep.subr.bf16.mxu0 %v7147_v9 }
 0x17c   : > { %6461 = vmatpush3.bf16.msra.mxu0 %v6995_v41 }
 0x17d   : > { %6474 = vmatprep.subr.mxu0 %v7147_v9 }
 0x17f   : > { %6463 = vmatmul.mubr.msk.bf16.vlgmr.msra.gmra.mrb[24].mxu0 %vm580_vm0, %v7299_v23 }
 0x180   : > { %6476 = vmatprep.mubr.msk.f32.mxu0 %vm7148_vm1, %v7147_v9 }
 0x222   : > { %v675_v42 = vpop.f32.mrb[0].mxu0  ;;  %v831_v43 = vpop.f32.mrb[0].mxu1 }
 0x223   : > { %v6384_v44 = vpop.f32.mrb[1].mxu0  ;;  %v6408_v45 = vpop.f32.mrb[1].mxu1 }
 0x224   : > { %v678_v46 = vpop.f32.mrb[2].mxu0  ;;  %v834_v47 = vpop.f32.mrb[2].mxu1 }
 0x225   : > { %v6385_v48 = vpop.f32.mrb[3].mxu0  ;;  %v6409_v49 = vpop.f32.mrb[3].mxu1 }
 0x22a   : > { %v727_v50 = vpop.f32.mrb[4].mxu0  ;;  %v951_v51 = vpop.f32.mrb[4].mxu1 }
 0x22b   : > { %v6392_v52 = vpop.f32.mrb[5].mxu0  ;;  %v6424_v53 = vpop.f32.mrb[5].mxu1  ;;  %6480 = vmatpush3.xpose.msk.msra.mxu1 %vm1285_vm2, %v951_v51 }
 0x22c   : > { %v730_v54 = vpop.f32.mrb[6].mxu0  ;;  %v954_v55 = vpop.f32.mrb[6].mxu1  ;;  %6489 = vmatprep.subr.mxu1 %v7147_v9 }
 0x22d   : > { %v6393_v56 = vpop.f32.mrb[7].mxu0  ;;  %v6425_v57 = vpop.f32.mrb[7].mxu1 }
 0x22e   : > { %6482 = vmatmul.mubr.msk.f32.vlgmr.msra.gmra.mrb[20].mxu1 %vm1285_vm2, %v727_v50 }
 0x22f   : > { %6491 = vmatprep.mubr.msk.f32.mxu1 %vm7148_vm1, %v7147_v9 }
 0x232   : > { %v779_v58 = vpop.f32.mrb[8].mxu0  ;;  %v1055_v59 = vpop.f32.mrb[8].mxu1 }
 0x233   : > { %v6400_v60 = vpop.f32.mrb[9].mxu0  ;;  %v6440_v61 = vpop.f32.mrb[9].mxu1  ;;  %6490 = vmatpush3.xpose.msk.msra.mxu1 %vm1285_vm2, %v1055_v59 }
 0x234   : > { %v782_v62 = vpop.f32.mrb[10].mxu0  ;;  %v1058_v63 = vpop.f32.mrb[10].mxu1  ;;  %6500 = vmatprep.subr.bf16.mxu1 %v7147_v9 }
 0x235   : > { %v6401_v0 = vpop.f32.mrb[11].mxu0  ;;  %v6441_v1 = vpop.f32.mrb[11].mxu1 }
 0x236   : > { %6492 = vmatmul.mubr.msk.f32.vlgmr.msra.gmra.mrb[22].mxu1 %vm1285_vm2, %v831_v43 }
 0x237   : > { %6502 = vmatprep.mubr.msk.bf16.mxu1 %vm7148_vm1, %v7147_v9 }
 0x23a   : > { %v899_v2 = vpop.f32.mrb[12].mxu0  ;;  %v1175_v3 = vpop.f32.mrb[12].mxu1 }
 0x23b   : > { %v1649_v4 = vpack.c.bf16 %v1175_v3, %v1175_v3  ;;  %v6416_v5 = vpop.f32.mrb[13].mxu0  ;;  %v6456_v6 = vpop.f32.mrb[13].mxu1  ;;  %6475 = vmatpush3.xpose.msk.msra.mxu0 %vm1285_vm2, %v899_v2 }
 0x23c   : > { %v902_v7 = vpop.f32.mrb[14].mxu0  ;;  %v1178_v8 = vpop.f32.mrb[14].mxu1  ;;  %6484 = vmatprep.subr.mxu0 %v7147_v9 }
 0x23d   : > { %v1703_v10 = vsel %vm1655_vm3, %v1649_v4, 0  ;;  %v6417_v11 = vpop.f32.mrb[15].mxu0  ;;  %v6457_v12 = vpop.f32.mrb[15].mxu1 }
 0x23e   : > { %6477 = vmatmul.mubr.msk.f32.vlgmr.msra.gmra.mrb[28].mxu0 %vm1285_vm2, %v675_v42  ;;  %6501 = vmatpush3.bf16.msra.mxu1 %v1703_v10 }
 0x23f   : > { %6486 = vmatprep.mubr.msk.f32.mxu0 %vm7148_vm1, %v7147_v9  ;;  %6512 = vmatprep.subr.bf16.mxu1 %v7147_v9 }
 0x242   : > { %v1003_v13 = vpop.f32.mrb[16].mxu0  ;;  %v7440_v14 = vpop.f32.mrb[16].mxu1 }
 0x243   : > { %v6432_v15 = vpop.f32.mrb[17].mxu0  ;;  %v6472_v16 = vpop.f32.mrb[17].mxu1  ;;  %6485 = vmatpush3.xpose.msk.msra.mxu0 %vm1285_vm2, %v1003_v13 }
 0x244   : > { %v1006_v17 = vpop.f32.mrb[18].mxu0  ;;  %v1282_v18 = vpop.f32.mrb[18].mxu1  ;;  %6494 = vmatprep.subr.bf16.mxu0 %v7147_v9 }
 0x245   : > { %v6433_v19 = vpop.f32.mrb[19].mxu0  ;;  %v6473_v20 = vpop.f32.mrb[19].mxu1 }
 0x246   : > { %6487 = vmatmul.mubr.msk.f32.vlgmr.msra.gmra.mrb[30].mxu0 %vm1285_vm2, %v779_v58 }
 0x247   : > { %6496 = vmatprep.mubr.msk.bf16.mxu0 %vm7148_vm1, %v7147_v9 }
 0x24a   : > { %v1123_v21 = vpop.f32.mrb[20].mxu0 }
 0x24b   : > { %v1648_v22 = vpack.c.bf16 %v1123_v21, %v1123_v21  ;;  %v6448_v23 = vpop.f32.mrb[21].mxu0 }
 0x24c   : > { %v1126_v24 = vpop.f32.mrb[22].mxu0 }
 0x24d   : > { %v1657_v25 = vsel %vm1655_vm3, %v1648_v22, 0  ;;  %v6449_v26 = vpop.f32.mrb[23].mxu0  ;;  %v1651_v22 = vpack.c.bf16 %v7440_v14, %v7440_v14 }
 0x24e   : > { %6495 = vmatpush3.bf16.msra.mxu0 %v1657_v25 }
 0x24f   : > { %6506 = vmatprep.subr.bf16.mxu0 %v7147_v9 }
 0x252   : > { %v7449_v27 = vpop.f32.mrb[24].mxu0 }
 0x253   : > { %v6464_v28 = vpop.f32.mrb[25].mxu0  ;;  %v1650_v18 = vpack.c.bf16 %v7449_v27, %v7449_v27 }
 0x254   : > { %v1230_v29 = vpop.f32.mrb[26].mxu0  ;;  %v1795_v28 = vsel %vm1655_vm3, %v1651_v22, 0  ;;  %v5837_v22 = vld [vmem:[%s8273_s7] ss:$0 sm:$0xff] }
 0x255   : > { %v6465_v30 = vpop.f32.mrb[27].mxu0  ;;  %v1749_v23 = vsel %vm1655_vm3, %v1650_v18, 0 }
 0x301   : > { %v1434_v31 = vpop.f32.mrb[20].mxu1 }
 0x302   : > { %v6483_v32 = vpop.f32.mrb[21].mxu1  ;;  %v1591_v39 = vmul.f32 0.35355338, %v1434_v31 }
 0x303   : > { %v1841_v32 = vld [vmem:[%s8272_s6] sm:$0xf] }
 0x304   : > { %v1597_v46 = vsel %vm7451_vm4, %v1591_v39, -1e+30 }
 0x305   : > { %v1603_v48 = vsel %vm1285_vm2, %v1597_v46, -inf }
 0x309   : > { %v1586_v33 = vpop.f32.mrb[22].mxu1 }
 0x30a   : > { %v6493_v34 = vpop.f32.mrb[23].mxu1  ;;  %v1593_v45 = vmul.f32 0.35355338, %v1586_v33  ;;  %v1849_v33 = vsel %vm1655_vm3, %v1841_v32, 0  ;;  %v6997_v32 = vld [vmem:[%s8276_s10 + $0x8] sm:$0xff]  }
 0x30b   : > { %v1842_v34 = vld [vmem:[%s8272_s6 + $0x4] sm:$0xf] }
 0x30c   : > { %v1599_v51 = vsel %vm7451_vm4, %v1593_v45, -1e+30  ;;  %v1895_v35 = vsel %vm1655_vm3, %v1842_v34, 0  ;;  %v6999_v34 = vld [vmem:[%s8278_s12 + $0x8] sm:$0xff]  }
 0x30d   : > { %v1609_v53 = vsel %vm1285_vm2, %v1599_v51, -inf }
 0x311   : > { %v1358_v38 = vpop.f32.mrb[28].mxu0 }
 0x312   : > { %v1590_v40 = vmul.f32 0.35355338, %v1358_v38  ;;  %v6478_v41 = vpop.f32.mrb[29].mxu0 }
 0x314   : > { %v1596_v43 = vsel %vm7451_vm4, %v1590_v40, -1e+30  ;;  %v1941_v40 = vsel %vm1655_vm3, %v1843_v36, 0  ;;  %v7001_v36 = vld [vmem:[%s8278_s12 + $0x18] sm:$0xff]  }
 0x315   : > { %v1600_v44 = vsel %vm1285_vm2, %v1596_v43, -inf }
 0x316   : > { %1601 = vmax.xlane.f32.xlu1 %v1600_v44 }
 0x319   : > { %v1510_v47 = vpop.f32.mrb[30].mxu0 }
 0x31a   : > { %v1592_v49 = vmul.f32 0.35355338, %v1510_v47  ;;  %1604 = vmax.xlane.f32.xlu1 %v1603_v48  ;;  %v6488_v50 = vpop.f32.mrb[31].mxu0 }
 0x31c   : > { %v1598_v52 = vsel %vm7451_vm4, %v1592_v49, -1e+30 }
 0x31d   : > { %v1606_v54 = vsel %vm1285_vm2, %v1598_v52, -inf }
 0x31e   : > { %1610 = vmax.xlane.f32.xlu1 %v1609_v53  ;;  %1607 = vmax.xlane.f32.xlu0 %v1606_v54 }
 0x3a3   : > { %v1602_v55 = vpop.xlane.xlu1 %1601 }
 0x3a4   : > { %v1612_v56 = vsub.f32 %v1596_v43, %v1602_v55  ;;  %v1844_v43 = vld [vmem:[%s8272_s6 + $0xc] sm:$0xf] }
 0x3a5   : > { %v1987_v48 = vsel %vm1655_vm3, %v1844_v43, 0 }
 0x3a6   : > { %v1616_v57 = vmul.f32 1.442695, %v1612_v56 }
 0x3a7   : > { %v1605_v58 = vpop.xlane.xlu1 %1604 }
 0x3a8   : > { %7078 = vpow2.f32 %v1616_v57  ;;  %v1613_v59 = vsub.f32 %v1597_v46, %v1605_v58 }
 0x3aa   : > { %v1618_v60 = vmul.f32 1.442695, %v1613_v59 }
 0x3ab   : > { %v1611_v61 = vpop.xlane.xlu1 %1610  ;;  %v1608_v62 = vpop.xlane.xlu0 %1607 }
 0x3ac   : > { %7080 = vpow2.f32 %v1618_v60  ;;  %v1615_v63 = vsub.f32 %v1599_v51, %v1611_v61  ;;  %v1614_v0 = vsub.f32 %v1598_v52, %v1608_v62 }
 0x3ae   : > { %v1622_v1 = vmul.f32 1.442695, %v1615_v63  ;;  %v1620_v2 = vmul.f32 1.442695, %v1614_v0 }
 0x3b0   : > { %7082 = vpow2.f32 %v1622_v1 }
 0x3b1   : > { %7084 = vpow2.f32 %v1620_v2 }
 0x3b2   : > { %v7079_v3 = vpop.eup %7078 }
 0x3b3   : > { %v1624_v4 = vsel %vm1285_vm2, %v7079_v3, 0.0 }
 0x3b4   : > { %1625 = vadd.xlane.f32.xlu0 %v1624_v4 }
 0x3b6   : > { %v7081_v5 = vpop.eup %7080 }
 0x3b7   : > { %v1627_v6 = vsel %vm1285_vm2, %v7081_v5, 0.0 }
 0x3b8   : > { %1628 = vadd.xlane.f32.xlu1 %v1627_v6 }
 0x3ba   : > { %v7083_v7 = vpop.eup %7082 }
 0x3bb   : > { %v7085_v8 = vpop.eup %7084  ;;  %v1633_v10 = vsel %vm1285_vm2, %v7083_v7, 0.0 }
 0x3bc   : > { %1634 = vadd.xlane.f32.xlu1 %v1633_v10  ;;  %v1630_v11 = vsel %vm1285_vm2, %v7085_v8, 0.0 }
 0x3bd   : > { %1631 = vadd.xlane.f32.xlu0 %v1630_v11 }
 0x441   : > { %v1626_v12 = vpop.xlane.xlu0 %1625 }
 0x442   : > { %7086 = vrcp.f32 %v1626_v12 }
 0x445   : > { %v1629_v13 = vpop.xlane.xlu1 %1628 }
 0x446   : > { %7088 = vrcp.f32 %v1629_v13 }
 0x449   : > { %v1635_v15 = vpop.xlane.xlu1 %1634 }
 0x44a   : > { %7090 = vrcp.f32 %v1635_v15  ;;  %v1632_v16 = vpop.xlane.xlu0 %1631 }
 0x44b   : > { %7092 = vrcp.f32 %v1632_v16 }
 0x44c   : > { %v7087_v17 = vpop.eup %7086 }
 0x44d   : > { %v1637_v19 = vmul.f32 %v7087_v17, %v7079_v3 }
 0x44f   : > { %v1644_v20 = vpack.c.bf16 %v1637_v19, %v1637_v19 }
 0x450   : > { %v7089_v21 = vpop.eup %7088 }
 0x451   : > { %v1639_v24 = vmul.f32 %v7089_v21, %v7081_v5  ;;  %6497 = vmatmul.mubr.msk.bf16.vlgmr.msra.gmra.mrb[32].mxu0 %vm1285_vm2, %v1644_v20 }
 0x452   : > { %6507 = vmatpush3.bf16.msra.mxu0 %v1749_v23  ;;  %6508 = vmatprep.mubr.msk.bf16.mxu0 %vm7148_vm1, %v7147_v9  ;;  %v7138_v23 = vld [vmem:[%s7260_s1] sm:$0xff] }
 0x453   : > { %v1645_v25 = vpack.c.bf16 %v1639_v24, %v1639_v24  ;;  %6518 = vmatprep.subr.bf16.mxu0 %v7147_v9 }
 0x454   : > { %v7091_v26 = vpop.eup %7090 }
 0x455   : > { %v7093_v27 = vpop.eup %7092  ;;  %6503 = vmatmul.mubr.msk.bf16.vlgmr.msra.gmra.mrb[24].mxu1 %vm1285_vm2, %v1645_v25  ;;  %v1643_v14 = vmul.f32 %v7091_v26, %v7083_v7 }
 0x456   : > { %v1641_v29 = vmul.f32 %v7093_v27, %v7085_v8  ;;  %6513 = vmatpush3.bf16.msra.mxu1 %v1795_v28  ;;  %6514 = vmatprep.mubr.msk.bf16.mxu1 %vm7148_vm1, %v7147_v9 }
 0x457   : > { %6524 = vmatprep.subr.bf16.mxu1 %v7147_v9  ;;  %v1647_v31 = vpack.c.bf16 %v1643_v14, %v1643_v14 }
 0x458   : > { %v1646_v30 = vpack.c.bf16 %v1641_v29, %v1641_v29 }
 0x45a   : > { %6509 = vmatmul.mubr.msk.bf16.vlgmr.msra.gmra.mrb[36].mxu0 %vm1285_vm2, %v1646_v30 }
 0x45b   : > { %6520 = vmatprep.mubr.msk.bf16.mxu0 %vm7148_vm1, %v7147_v9  ;;  %6519 = vmatpush3.bf16.msra.mxu0 %v1849_v33  ;;  %v6998_v33 = vld [vmem:[%s8278_s12] sm:$0xff]  }
 0x45c   : > { %6530 = vmatprep.subr.bf16.mxu0 %v7147_v9 }
 0x45d   : > { %6515 = vmatmul.mubr.msk.bf16.vlgmr.msra.gmra.mrb[28].mxu1 %vm1285_vm2, %v1647_v31  ;;  %v6996_v31 = vld [vmem:[%s8276_s10] sm:$0xff]  }
 0x45e   : > { %6526 = vmatprep.mubr.msk.bf16.mxu1 %vm7148_vm1, %v7147_v9  ;;  %6525 = vmatpush3.bf16.msra.mxu1 %v1895_v35  ;;  %v7000_v35 = vld [vmem:[%s8278_s12 + $0x10] sm:$0xff]  }
 0x45f   : > { %6536 = vmatprep.subr.bf16.mxu1 %v7147_v9 }
 0x524   : > { %v1693_v37 = vpop.f32.mrb[32].mxu0 }
 0x525   : > { %v1837_v38 = vpack.c.bf16 %v1693_v37, %v1693_v37  ;;  %v6498_v39 = vpop.f32.mrb[33].mxu0  ;;  %v7002_v37 = vld [vmem:[%s8278_s12 + $0x20] sm:$0xff]  }
 0x526   : > { %v1696_v41 = vpop.f32.mrb[34].mxu0 }
 0x527   : > { %v6499_v44 = vpop.f32.mrb[35].mxu0  ;;  %6521 = vmatmul.mubr.msk.bf16.vlgmr.msra.gmra.mrb[40].mxu0 %vm1285_vm2, %v1837_v38  ;;  %v7003_v38 = vld [vmem:[%s8278_s12 + $0x28] sm:$0xff]  }
 0x528   : > { %v1739_v45 = vpop.f32.mrb[24].mxu1  ;;  %6531 = vmatpush3.bf16.msra.mxu0 %v1941_v40  ;;  %6532 = vmatprep.mubr.msk.bf16.mxu0 %vm7148_vm1, %v7147_v9  ;;  %v5838_v44 = vld [vmem:[%s8274_s8] ss:$0 sm:$0xff] }
 0x529   : > { %v1838_v46 = vpack.c.bf16 %v1739_v45, %v1739_v45  ;;  %v6504_v47 = vpop.f32.mrb[25].mxu1  ;;  %6542 = vmatprep.subr.bf16.mxu0 %v7147_v9 }
 0x52a   : > { %v1742_v49 = vpop.f32.mrb[26].mxu1 }
 0x52b   : > { %v6505_v50 = vpop.f32.mrb[27].mxu1  ;;  %6527 = vmatmul.mubr.msk.bf16.vlgmr.msra.gmra.mrb[32].mxu1 %vm1285_vm2, %v1838_v46  ;;  %v5839_v46 = vld [vmem:[%s8275_s9] ss:$0 sm:$0xff] }
 0x52c   : > { %6537 = vmatpush3.bf16.msra.mxu1 %v1987_v48  ;;  %6538 = vmatprep.mubr.msk.bf16.mxu1 %vm7148_vm1, %v7147_v9  ;;  %v7004_v50 = vld [vmem:[%s8278_s12 + $0x30] sm:$0xff]  }
 0x52d   : > { %v1785_v51 = vpop.f32.mrb[36].mxu0  ;;  %6550 = vmatprep.subr.bf16.mxu1 %v7147_v9 }
 0x52e   : > { %v1839_v52 = vpack.c.bf16 %v1785_v51, %v1785_v51  ;;  %v6510_v53 = vpop.f32.mrb[37].mxu0  ;;  %v7005_v51 = vld [vmem:[%s8278_s12 + $0x38] sm:$0xff]  }
 0x52f   : > { %v1788_v54 = vpop.f32.mrb[38].mxu0 }
 0x530   : > { %v6511_v55 = vpop.f32.mrb[39].mxu0  ;;  %6533 = vmatmul.mubr.msk.bf16.vlgmr.msra.gmra.mrb[44].mxu0 %vm1285_vm2, %v1839_v52  ;;  %v1831_v56 = vpop.f32.mrb[28].mxu1  ;;  %v5840_v52 = vld [vmem:[%s8277_s11] ss:$0 sm:$0xff] }
 0x531   : > { %v1840_v57 = vpack.c.bf16 %v1831_v56, %v1831_v56  ;;  %v6516_v58 = vpop.f32.mrb[29].mxu1  ;;  %6546 = vmatprep.mubr.msk.bf16.mxu0 %vm7148_vm1, %v7147_v9  ;;  %6543 = vmatpush3.bf16.msra.mxu0 %v6996_v31  ;;  %v7017_v31 = vld [vmem:[%s8271_s5 + $0x48] sm:$0xff]  }
 0x532   : > { %v1834_v59 = vpop.f32.mrb[30].mxu1  ;;  %6544 = vmatprep.subr.bf16.mxu0 %v7147_v9 }
 0x533   : > { %v6517_v60 = vpop.f32.mrb[31].mxu1  ;;  %6539 = vmatmul.mubr.msk.bf16.vlgmr.msra.gmra.mrb[36].mxu1 %vm1285_vm2, %v1840_v57 }
 0x534   : > { %6566 = vmatprep.mubr.msk.bf16.mxu1 %vm7148_vm1, %v7147_v9  ;;  %6551 = vmatpush3.bf16.msra.mxu1 %v6998_v33  ;;  %v7019_v33 = vld [vmem:[%s8271_s5 + $0x60] sm:$0xff]  }
 0x535   : > { %6545 = vmatpush3.bf16.msra.mxu0 %v6997_v32  ;;  %6552 = vmatprep.subr.bf16.mxu1 %v7147_v9  ;;  %v7018_v32 = vld [vmem:[%s8269_s3 + $0x70] sm:$0xff]  }
 0x536   : > { %6570 = vmatprep.subr.bf16.mxu0 %v7147_v9 }
 0x538   : > { %6553 = vmatpush3.bf16.msra.mxu1 %v6999_v34  ;;  %v7020_v34 = vld [vmem:[%s8269_s3 + $0x78] sm:$0xff]  }
 0x539   : > { %6554 = vmatprep.subr.bf16.mxu1 %v7147_v9 }
 0x53c   : > { %6555 = vmatpush3.bf16.msra.mxu1 %v7000_v35  ;;  %v7021_v35 = vld [vmem:[%s8271_s5 + $0x68] sm:$0xff]  }
 0x53d   : > { %6556 = vmatprep.subr.bf16.mxu1 %v7147_v9 }
 0x540   : > { %6557 = vmatpush3.bf16.msra.mxu1 %v7001_v36  ;;  %v7022_v36 = vld [vmem:[%s8270_s4 + $0x50] sm:$0xff]  }
 0x541   : > { %6558 = vmatprep.subr.bf16.mxu1 %v7147_v9 }
 0x544   : > { %6559 = vmatpush3.bf16.msra.mxu1 %v7002_v37  ;;  %v7023_v37 = vld [vmem:[%s8270_s4 + $0x58] sm:$0xff]  }
 0x545   : > { %6560 = vmatprep.subr.bf16.mxu1 %v7147_v9 }
 0x548   : > { %6561 = vmatpush3.bf16.msra.mxu1 %v7003_v38  ;;  %v7024_v38 = vld [vmem:[%s8270_s4 + $0x70] sm:$0xff]  }
 0x549   : > { %6562 = vmatprep.subr.bf16.mxu1 %v7147_v9 }
 0x54c   : > { %6563 = vmatpush3.bf16.msra.mxu1 %v7004_v50 }
 0x54d   : > { %6564 = vmatprep.subr.bf16.mxu1 %v7147_v9 }
 0x550   : > { %6565 = vmatpush3.bf16.msra.mxu1 %v7005_v51 }
 0x551   : > { %6602 = vmatprep.subr.bf16.mxu1 %v7147_v9 }
 0x5fa   : > { %v1885_v61 = vpop.f32.mrb[40].mxu0 }
 0x5fb   : > { %v6522_v62 = vpop.f32.mrb[41].mxu0  ;;  %v2029_v2 = vsel %vm580_vm0, %v1885_v61, 0.0  ;;  %v5852_v61 = vld [vmem:[%s8279_s13] ss:$0 sm:$0xff] }
 0x5fc   : > { %v1888_v63 = vpop.f32.mrb[42].mxu0 }
 0x5fd   : > { %v6523_v0 = vpop.f32.mrb[43].mxu0 }
 0x5fe   : > { %v1931_v1 = vpop.f32.mrb[32].mxu1 }
 0x5ff   : > { %v2030_v3 = vsel %vm580_vm0, %v1931_v1, 0.0  ;;  %v6528_v4 = vpop.f32.mrb[33].mxu1 }
 0x600   : > { %v2031_v5 = vadd.f32 %v2030_v3, %v2029_v2  ;;  %v1934_v6 = vpop.f32.mrb[34].mxu1 }
 0x601   : > { %v6529_v7 = vpop.f32.mrb[35].mxu1 }
 0x603   : > { %v1977_v8 = vpop.f32.mrb[44].mxu0 }
 0x604   : > { %v2032_v10 = vsel %vm580_vm0, %v1977_v8, 0.0  ;;  %v6534_v11 = vpop.f32.mrb[45].mxu0 }
 0x605   : > { %v2033_v12 = vadd.f32 %v2032_v10, %v2031_v5  ;;  %v1980_v13 = vpop.f32.mrb[46].mxu0  ;;  %v7006_v10 = vld [vmem:[%s8269_s3 + $0x40] sm:$0xff]  }
 0x606   : > { %v6535_v15 = vpop.f32.mrb[47].mxu0  ;;  %v2023_v16 = vpop.f32.mrb[36].mxu1  ;;  %v7007_v11 = vld [vmem:[%s8270_s4 + $0x40] sm:$0xff]   ;;  %v7009_v13 = vld [vmem:[%s8270_s4 + $0x48] sm:$0xff]  }
 0x607   : > { %v2034_v17 = vsel %vm580_vm0, %v2023_v16, 0.0  ;;  %v6540_v18 = vpop.f32.mrb[37].mxu1 }
 0x608   : > { %v2035_v19 = vadd.f32 %v2034_v17, %v2033_v12  ;;  %v2026_v20 = vpop.f32.mrb[38].mxu1  ;;  %v7008_v12 = vld [vmem:[%s8269_s3 + $0x48] sm:$0xff]  }
 0x609   : > { %v6541_v21 = vpop.f32.mrb[39].mxu1 }
 0x60a   : > { %v2036_v24 = vadd.f32 %v7138_v23, %v2035_v19  ;;  %v5855_v19 = vld [vmem:[%s8291_s19 + $0x1] ss:$0 sm:$0xff] }
 0x60b   : > { %v5856_v21 = vld [vmem:[%s8292_s22 + $0x1] ss:$0 sm:$0xff] }
 0x60c   : > { %v7531_v25 = vadd.f32 %v5837_v22, %v2036_v24  ;;  %v7010_v24 = vld [vmem:[%s8269_s3 + $0x50] sm:$0xff]  }
 0x60e   : > { %v2047_v26 = vsel %vm580_vm0, %v7531_v25, 0.0 }
 0x60f   : > { %2048 = vadd.xlane.f32.xlu0 %v2047_v26 }
 0x69c   : > { %v2049_v27 = vpop.xlane.xlu0 %2048 }
 0x69d   : > { %v2050_v28 = vmul.f32 0.03125, %v2049_v27  ;;  %v7012_v27 = vld [vmem:[%s8269_s3 + $0x58] sm:$0xff]  }
 0x69f   : > { %v2051_v29 = vsub.f32 %v7531_v25, %v2050_v28  ;;  %v7013_v28 = vld [vmem:[%s8270_s4 + $0x68] sm:$0xff]  }
 0x6a1   : > { %v2052_v14 = vmul.f32 %v2051_v29, %v2051_v29 }
 0x6a3   : > { %v2053_v30 = vsel %vm580_vm0, %v2052_v14, 0.0  ;;  %v7015_v14 = vld [vmem:[%s8271_s5 + $0x40] sm:$0xff]  }
 0x6a4   : > { %2054 = vadd.xlane.f32.xlu1 %v2053_v30  ;;  %v7016_v30 = vld [vmem:[%s8269_s3 + $0x68] sm:$0xff]  }
 0x731   : > { %v2055_v39 = vpop.xlane.xlu1 %2054 }
 0x732   : > { %v2056_v40 = vmul.f32 0.03125, %v2055_v39  ;;  %v7025_v39 = vld [vmem:[%s8270_s4 + $0x78] sm:$0xff]  }
 0x734   : > { %v2057_v41 = vadd.f32 1e-05, %v2056_v40  ;;  %v7026_v40 = vld [vmem:[%s8271_s5 + $0x50] sm:$0xff]  }
 0x736   : > { %7094 = vrsqrt.f32 %v2057_v41  ;;  %v7027_v41 = vld [vmem:[%s8271_s5 + $0x58] sm:$0xff]  }
 0x740   : > { %v7095_v43 = vpop.eup %7094 }
 0x741   : > { %v2059_v45 = vmul.f32 %v7095_v43, %v2051_v29  ;;  %v7014_v29 = vld [vmem:[%s8269_s3 + $0x60] sm:$0xff]   ;;  %v7028_v43 = vld [vmem:[%s8271_s5 + $0x70] sm:$0xff]  }
 0x743   : > { %v2066_v47 = vmul.f32 %v5838_v44, %v2059_v45  ;;  %v7029_v44 = vld [vmem:[%s8271_s5 + $0x78] sm:$0xff]  }
 0x745   : > { %v2073_v48 = vadd.f32 %v5839_v46, %v2066_v47 }
 0x747   : > { %v2074_v49 = vpack.c.bf16 %v2073_v48, %v2073_v48 }
 0x749   : > { %6547 = vmatmul.mubr.msk.bf16.vlgmr.msra.gmra.mrb[48].mxu0 %vm580_vm0, %v2074_v49 }
 0x74a   : > { %6574 = vmatprep.mubr.msk.bf16.mxu0 %vm7148_vm1, %v7147_v9  ;;  %6571 = vmatpush3.bf16.msra.mxu0 %v7006_v10 }
 0x74b   : > { %6572 = vmatprep.subr.bf16.mxu0 %v7147_v9 }
 0x74e   : > { %6573 = vmatpush3.bf16.msra.mxu0 %v7008_v12 }
 0x74f   : > { %6578 = vmatprep.subr.bf16.mxu0 %v7147_v9 }
 0x81c   : > { %v2135_v53 = vpop.f32.mrb[48].mxu0 }
 0x81d   : > { %v2136_v54 = vadd.f32 %v5840_v52, %v2135_v53  ;;  %v6548_v55 = vpop.f32.mrb[49].mxu0 }
 0x81e   : > { %v2138_v56 = vpop.f32.mrb[50].mxu0 }
 0x81f   : > { %v2141_v57 = vmax.f32 %v2136_v54, 0.0  ;;  %v6549_v58 = vpop.f32.mrb[51].mxu0 }
 0x821   : > { %v2142_v59 = vpack.c.bf16 %v2141_v57, %v2141_v57 }
 0x823   : > { %6567 = vmatmul.mubr.bf16.vlgmr.msra.gmra.mrb[40].mxu1 %v2142_v59 }
 0x824   : > { %6606 = vmatprep.mubr.msk.bf16.mxu1 %vm7148_vm1, %v7147_v9  ;;  %6603 = vmatpush3.bf16.msra.mxu1 %v7007_v11 }
 0x825   : > { %6604 = vmatprep.subr.bf16.mxu1 %v7147_v9 }
 0x828   : > { %6605 = vmatpush3.bf16.msra.mxu1 %v7009_v13 }
 0x829   : > { %6618 = vmatprep.subr.bf16.mxu1 %v7147_v9 }
 0x8f6   : > { %v2241_v60 = vpop.f32.mrb[40].mxu1 }
 0x8f7   : > { %v2247_v62 = vadd.f32 %v2241_v60, %v7531_v25  ;;  %v6568_v63 = vpop.f32.mrb[41].mxu1  ;;  %v7011_v25 = vld [vmem:[%s8270_s4 + $0x60] sm:$0xff]  }
 0x8f8   : > { %v2244_v0 = vpop.f32.mrb[42].mxu1 }
 0x8f9   : > { %v7595_v1 = vadd.f32 %v5852_v61, %v2247_v62  ;;  %v6569_v2 = vpop.f32.mrb[43].mxu1 }
 0x8fb   : > { %v2260_v3 = vsel %vm580_vm0, %v7595_v1, 0.0 }
 0x8fc   : > { %2261 = vadd.xlane.f32.xlu0 %v2260_v3 }
 0x989   : > { %v2262_v4 = vpop.xlane.xlu0 %2261 }
 0x98a   : > { %v2263_v5 = vmul.f32 0.03125, %v2262_v4 }
 0x98c   : > { %v2264_v6 = vsub.f32 %v7595_v1, %v2263_v5 }
 0x98e   : > { %v2265_v7 = vmul.f32 %v2264_v6, %v2264_v6 }
 0x990   : > { %v2266_v8 = vsel %vm580_vm0, %v2265_v7, 0.0 }
 0x991   : > { %2267 = vadd.xlane.f32.xlu1 %v2266_v8 }
 0xa1e   : > { %v2268_v15 = vpop.xlane.xlu1 %2267 }
 0xa1f   : > { %v2269_v16 = vmul.f32 0.03125, %v2268_v15 }
 0xa21   : > { %v2270_v17 = vadd.f32 1e-05, %v2269_v16 }
 0xa23   : > { %7096 = vrsqrt.f32 %v2270_v17 }
 0xa2d   : > { %v7097_v18 = vpop.eup %7096 }
 0xa2e   : > { %v2272_v20 = vmul.f32 %v7097_v18, %v2264_v6 }
 0xa30   : > { %v2279_v22 = vmul.f32 %v5855_v19, %v2272_v20 }
 0xa32   : > { %v2286_v23 = vadd.f32 %v5856_v21, %v2279_v22 }
 0xa34   : > { %v7629_v26 = vpack.c.bf16 %v2286_v23, %v2286_v23 }
 0xa36   : > { %6575 = vmatmul.mubr.msk.bf16.vlgmr.msra.gmra.mrb[52].mxu0 %vm580_vm0, %v7629_v26  ;;  %6607 = vmatmul.mubr.msk.bf16.vlgmr.msra.gmra.mrb[44].mxu1 %vm580_vm0, %v7629_v26 }
 0xa37   : > { %6579 = vmatpush3.bf16.msra.mxu0 %v7010_v24  ;;  %6619 = vmatpush3.bf16.msra.mxu1 %v7011_v25 }
 0xa38   : > { %6580 = vmatprep.subr.bf16.mxu0 %v7147_v9  ;;  %6620 = vmatprep.subr.bf16.mxu1 %v7147_v9 }
 0xa39   : > { %6582 = vmatprep.mubr.msk.bf16.mxu0 %vm7148_vm1, %v7147_v9  ;;  %6622 = vmatprep.mubr.msk.bf16.mxu1 %vm7148_vm1, %v7147_v9 }
 0xa3b   : > { %6581 = vmatpush3.bf16.msra.mxu0 %v7012_v27  ;;  %6621 = vmatpush3.bf16.msra.mxu1 %v7013_v28 }
 0xa3c   : > { %6586 = vmatprep.subr.bf16.mxu0 %v7147_v9  ;;  %6634 = vmatprep.subr.bf16.mxu1 %v7147_v9 }
 0xa3e   : > { %6583 = vmatmul.mubr.msk.bf16.vlgmr.msra.gmra.mrb[56].mxu0 %vm580_vm0, %v7629_v26  ;;  %6623 = vmatmul.mubr.msk.bf16.vlgmr.msra.gmra.mrb[48].mxu1 %vm580_vm0, %v7629_v26 }
 0xa3f   : > { %6587 = vmatpush3.bf16.msra.mxu0 %v7014_v29  ;;  %6635 = vmatpush3.bf16.msra.mxu1 %v7015_v14 }
 0xa40   : > { %6588 = vmatprep.subr.bf16.mxu0 %v7147_v9  ;;  %6636 = vmatprep.subr.bf16.mxu1 %v7147_v9 }
 0xa41   : > { %6590 = vmatprep.mubr.msk.bf16.mxu0 %vm7148_vm1, %v7147_v9  ;;  %6638 = vmatprep.mubr.msk.bf16.mxu1 %vm7148_vm1, %v7147_v9 }
 0xa43   : > { %6589 = vmatpush3.bf16.msra.mxu0 %v7016_v30  ;;  %6637 = vmatpush3.bf16.msra.mxu1 %v7017_v31 }
 0xa44   : > { %6594 = vmatprep.subr.bf16.mxu0 %v7147_v9  ;;  %6650 = vmatprep.subr.bf16.mxu1 %v7147_v9 }
 0xa46   : > { %6591 = vmatmul.mubr.msk.bf16.vlgmr.msra.gmra.mrb[60].mxu0 %vm580_vm0, %v7629_v26  ;;  %6639 = vmatmul.mubr.msk.bf16.vlgmr.msra.gmra.mrb[52].mxu1 %vm580_vm0, %v7629_v26 }
 0xa47   : > { %6595 = vmatpush3.bf16.msra.mxu0 %v7018_v32  ;;  %6651 = vmatpush3.bf16.msra.mxu1 %v7019_v33 }
 0xa48   : > { %6596 = vmatprep.subr.bf16.mxu0 %v7147_v9  ;;  %6652 = vmatprep.subr.bf16.mxu1 %v7147_v9 }
 0xa49   : > { %6598 = vmatprep.mubr.msk.bf16.mxu0 %vm7148_vm1, %v7147_v9  ;;  %6654 = vmatprep.mubr.msk.bf16.mxu1 %vm7148_vm1, %v7147_v9 }
 0xa4b   : > { %6597 = vmatpush3.bf16.msra.mxu0 %v7020_v34  ;;  %6653 = vmatpush3.bf16.msra.mxu1 %v7021_v35 }
 0xa4c   : > { %6610 = vmatprep.subr.bf16.mxu0 %v7147_v9  ;;  %6666 = vmatprep.subr.mxu1 %v7147_v9 }
 0xa4e   : > { %6599 = vmatmul.mubr.msk.bf16.vlgmr.msra.gmra.mrb[64].mxu0 %vm580_vm0, %v7629_v26  ;;  %6655 = vmatmul.mubr.msk.bf16.vlgmr.msra.gmra.mrb[56].mxu1 %vm580_vm0, %v7629_v26 }
 0xa4f   : > { %6611 = vmatpush3.bf16.msra.mxu0 %v7022_v36  ;;  %6614 = vmatprep.mubr.msk.bf16.mxu0 %vm7148_vm1, %v7147_v9 }
 0xa50   : > { %6612 = vmatprep.subr.bf16.mxu0 %v7147_v9  ;;  %6668 = vmatprep.mubr.msk.f32.mxu1 %vm7148_vm1, %v7147_v9 }
 0xa53   : > { %6613 = vmatpush3.bf16.msra.mxu0 %v7023_v37 }
 0xa54   : > { %6626 = vmatprep.subr.bf16.mxu0 %v7147_v9 }
 0xa56   : > { %6615 = vmatmul.mubr.msk.bf16.vlgmr.msra.gmra.mrb[68].mxu0 %vm580_vm0, %v7629_v26 }
 0xa57   : > { %6627 = vmatpush3.bf16.msra.mxu0 %v7024_v38  ;;  %6630 = vmatprep.mubr.msk.bf16.mxu0 %vm7148_vm1, %v7147_v9 }
 0xa58   : > { %6628 = vmatprep.subr.bf16.mxu0 %v7147_v9 }
 0xa5b   : > { %6629 = vmatpush3.bf16.msra.mxu0 %v7025_v39 }
 0xa5c   : > { %6642 = vmatprep.subr.bf16.mxu0 %v7147_v9 }
 0xa5e   : > { %6631 = vmatmul.mubr.msk.bf16.vlgmr.msra.gmra.mrb[72].mxu0 %vm580_vm0, %v7629_v26 }
 0xa5f   : > { %6643 = vmatpush3.bf16.msra.mxu0 %v7026_v40  ;;  %6646 = vmatprep.mubr.msk.bf16.mxu0 %vm7148_vm1, %v7147_v9 }
 0xa60   : > { %6644 = vmatprep.subr.bf16.mxu0 %v7147_v9 }
 0xa63   : > { %6645 = vmatpush3.bf16.msra.mxu0 %v7027_v41 }
 0xa64   : > { %6658 = vmatprep.subr.bf16.mxu0 %v7147_v9 }
 0xa66   : > { %6647 = vmatmul.mubr.msk.bf16.vlgmr.msra.gmra.mrb[76].mxu0 %vm580_vm0, %v7629_v26 }
 0xa67   : > { %6659 = vmatpush3.bf16.msra.mxu0 %v7028_v43  ;;  %6662 = vmatprep.mubr.msk.bf16.mxu0 %vm7148_vm1, %v7147_v9 }
 0xa68   : > { %6660 = vmatprep.subr.bf16.mxu0 %v7147_v9 }
 0xa6b   : > { %6661 = vmatpush3.bf16.msra.mxu0 %v7029_v44 }
 0xa6c   : > { %6676 = vmatprep.subr.mxu0 %v7147_v9 }
 0xa6e   : > { %6663 = vmatmul.mubr.msk.bf16.vlgmr.msra.gmra.mrb[80].mxu0 %vm580_vm0, %v7629_v26 }
 0xa6f   : > { %6678 = vmatprep.mubr.msk.f32.mxu0 %vm7148_vm1, %v7147_v9 }
 0xb09   : > { %v2354_v45 = vpop.f32.mrb[52].mxu0  ;;  %v2579_v46 = vpop.f32.mrb[44].mxu1 }
 0xb0a   : > { %v6576_v47 = vpop.f32.mrb[53].mxu0  ;;  %v6608_v48 = vpop.f32.mrb[45].mxu1  ;;  %6667 = vmatpush3.xpose.msk.msra.mxu1 %vm1285_vm2, %v2579_v46 }
 0xb0b   : > { %v2357_v49 = vpop.f32.mrb[54].mxu0  ;;  %v2582_v50 = vpop.f32.mrb[46].mxu1  ;;  %6671 = vmatprep.subr.mxu1 %v7147_v9 }
 0xb0c   : > { %v6577_v51 = vpop.f32.mrb[55].mxu0  ;;  %v6609_v52 = vpop.f32.mrb[47].mxu1 }
 0xb0d   : > { %6669 = vmatmul.mubr.msk.f32.vlgmr.msra.gmra.mrb[60].mxu1 %vm1285_vm2, %v2354_v45 }
 0xb0e   : > { %6673 = vmatprep.mubr.msk.f32.mxu1 %vm7148_vm1, %v7147_v9 }
 0xb11   : > { %v2406_v53 = vpop.f32.mrb[56].mxu0  ;;  %v2683_v54 = vpop.f32.mrb[48].mxu1 }
 0xb12   : > { %v6584_v55 = vpop.f32.mrb[57].mxu0  ;;  %v6624_v56 = vpop.f32.mrb[49].mxu1  ;;  %6677 = vmatpush3.xpose.msk.msra.mxu0 %vm1285_vm2, %v2683_v54 }
 0xb13   : > { %v2409_v57 = vpop.f32.mrb[58].mxu0  ;;  %v2686_v58 = vpop.f32.mrb[50].mxu1  ;;  %6686 = vmatprep.subr.bf16.mxu0 %v7147_v9 }
 0xb14   : > { %v6585_v59 = vpop.f32.mrb[59].mxu0  ;;  %v6625_v60 = vpop.f32.mrb[51].mxu1 }
 0xb19   : > { %v2458_v61 = vpop.f32.mrb[60].mxu0  ;;  %v2804_v62 = vpop.f32.mrb[52].mxu1 }
 0xb1a   : > { %v3326_v63 = vpack.c.bf16 %v2804_v62, %v2804_v62  ;;  %v6592_v0 = vpop.f32.mrb[61].mxu0  ;;  %v6640_v2 = vpop.f32.mrb[53].mxu1  ;;  %6679 = vmatmul.mubr.msk.f32.vlgmr.msra.gmra.mrb[84].mxu0 %vm1285_vm2, %v2458_v61 }
 0xb1b   : > { %v2461_v3 = vpop.f32.mrb[62].mxu0  ;;  %v2807_v4 = vpop.f32.mrb[54].mxu1  ;;  %6688 = vmatprep.mubr.msk.bf16.mxu0 %vm7148_vm1, %v7147_v9 }
 0xb1c   : > { %v3334_v5 = vsel %vm1655_vm3, %v3326_v63, 0  ;;  %v6593_v6 = vpop.f32.mrb[63].mxu0  ;;  %v6641_v7 = vpop.f32.mrb[55].mxu1 }
 0xb1d   : > { %6687 = vmatpush3.bf16.msra.mxu0 %v3334_v5 }
 0xb1e   : > { %6698 = vmatprep.subr.bf16.mxu0 %v7147_v9 }
 0xb21   : > { %v2510_v8 = vpop.f32.mrb[64].mxu0  ;;  %v7765_v10 = vpop.f32.mrb[56].mxu1 }
 0xb22   : > { %v6600_v11 = vpop.f32.mrb[65].mxu0  ;;  %v6656_v12 = vpop.f32.mrb[57].mxu1 }
 0xb23   : > { %v2513_v13 = vpop.f32.mrb[66].mxu0  ;;  %v2911_v15 = vpop.f32.mrb[58].mxu1 }
 0xb24   : > { %v6601_v16 = vpop.f32.mrb[67].mxu0  ;;  %v6657_v17 = vpop.f32.mrb[59].mxu1 }
 0xb29   : > { %v2631_v18 = vpop.f32.mrb[68].mxu0 }
 0xb2a   : > { %v6616_v19 = vpop.f32.mrb[69].mxu0  ;;  %6672 = vmatpush3.xpose.msk.msra.mxu1 %vm1285_vm2, %v2631_v18  ;;  %v3328_v18 = vpack.c.bf16 %v7765_v10, %v7765_v10 }
 0xb2b   : > { %v2634_v20 = vpop.f32.mrb[70].mxu0  ;;  %6681 = vmatprep.subr.mxu1 %v7147_v9 }
 0xb2c   : > { %v6617_v21 = vpop.f32.mrb[71].mxu0 }
 0xb2d   : > { %6674 = vmatmul.mubr.msk.f32.vlgmr.msra.gmra.mrb[62].mxu1 %vm1285_vm2, %v2406_v53 }
 0xb2e   : > { %6683 = vmatprep.mubr.msk.f32.mxu1 %vm7148_vm1, %v7147_v9 }
 0xb31   : > { %v2735_v22 = vpop.f32.mrb[72].mxu0 }
 0xb32   : > { %v6632_v23 = vpop.f32.mrb[73].mxu0  ;;  %6682 = vmatpush3.xpose.msk.msra.mxu1 %vm1285_vm2, %v2735_v22  ;;  %v3426_v22 = vsel %vm1655_vm3, %v3328_v18, 0 }
 0xb33   : > { %v2738_v24 = vpop.f32.mrb[74].mxu0  ;;  %6692 = vmatprep.subr.bf16.mxu1 %v7147_v9 }
 0xb34   : > { %v6633_v25 = vpop.f32.mrb[75].mxu0 }
 0xb35   : > { %6684 = vmatmul.mubr.msk.f32.vlgmr.msra.gmra.mrb[64].mxu1 %vm1285_vm2, %v2510_v8 }
 0xb36   : > { %6694 = vmatprep.mubr.msk.bf16.mxu1 %vm7148_vm1, %v7147_v9 }
 0xb39   : > { %v2856_v26 = vpop.f32.mrb[76].mxu0 }
 0xb3a   : > { %v3327_v27 = vpack.c.bf16 %v2856_v26, %v2856_v26  ;;  %v6648_v28 = vpop.f32.mrb[77].mxu0 }
 0xb3b   : > { %v2859_v29 = vpop.f32.mrb[78].mxu0 }
 0xb3c   : > { %v3380_v14 = vsel %vm1655_vm3, %v3327_v27, 0  ;;  %v6649_v30 = vpop.f32.mrb[79].mxu0 }
 0xb3d   : > { %6693 = vmatpush3.bf16.msra.mxu1 %v3380_v14 }
 0xb3e   : > { %6704 = vmatprep.subr.bf16.mxu1 %v7147_v9 }
 0xb41   : > { %v7779_v31 = vpop.f32.mrb[80].mxu0 }
 0xb42   : > { %v6664_v32 = vpop.f32.mrb[81].mxu0  ;;  %v3329_v28 = vpack.c.bf16 %v7779_v31, %v7779_v31  ;;  %v5953_v31 = vld [vmem:[%s8272_s6 + $0x10] sm:$0xf] }
 0xb43   : > { %v2963_v33 = vpop.f32.mrb[82].mxu0 }
 0xb44   : > { %v6665_v34 = vpop.f32.mrb[83].mxu0  ;;  %v3472_v30 = vsel %vm1655_vm3, %v3329_v28, 0 }
 0xbe0   : > { %v3038_v35 = vpop.f32.mrb[60].mxu1 }
 0xbe1   : > { %v3270_v36 = vmul.f32 0.35355338, %v3038_v35  ;;  %v6670_v37 = vpop.f32.mrb[61].mxu1  ;;  %v3527_v35 = vsel %vm1655_vm3, %v5953_v31, 0  ;;  %v7032_v31 = vld [vmem:[%s8278_s12 + $0x40] sm:$0xff]  }
 0xbe3   : > { %v3274_v38 = vsel %vm7451_vm4, %v3270_v36, -1e+30  ;;  %v5954_v36 = vld [vmem:[%s8272_s6 + $0x14] sm:$0xf] }
 0xbe4   : > { %v3278_v39 = vsel %vm1285_vm2, %v3274_v38, -inf  ;;  %v3573_v37 = vsel %vm1655_vm3, %v5954_v36, 0  ;;  %v7034_v36 = vld [vmem:[%s8278_s12 + $0x50] sm:$0xff]  }
 0xbe5   : > { %3279 = vmax.xlane.f32.xlu0 %v3278_v39 }
 0xbed   : > { %v3190_v40 = vpop.f32.mrb[84].mxu0 }
 0xbee   : > { %v3272_v41 = vmul.f32 0.35355338, %v3190_v40  ;;  %v6680_v43 = vpop.f32.mrb[85].mxu0 }
 0xbf0   : > { %v3276_v44 = vsel %vm7451_vm4, %v3272_v41, -1e+30 }
 0xbf1   : > { %v3284_v45 = vsel %vm1285_vm2, %v3276_v44, -inf }
 0xbf2   : > { %3285 = vmax.xlane.f32.xlu0 %v3284_v45 }
 0xc00   : > { %v3114_v46 = vpop.f32.mrb[62].mxu1 }
 0xc01   : > { %v3271_v47 = vmul.f32 0.35355338, %v3114_v46  ;;  %v6675_v48 = vpop.f32.mrb[63].mxu1 }
 0xc03   : > { %v3275_v49 = vsel %vm7451_vm4, %v3271_v47, -1e+30 }
 0xc04   : > { %v3281_v50 = vsel %vm1285_vm2, %v3275_v49, -inf }
 0xc05   : > { %3282 = vmax.xlane.f32.xlu1 %v3281_v50 }
 0xc08   : > { %v3266_v51 = vpop.f32.mrb[64].mxu1 }
 0xc09   : > { %v3273_v52 = vmul.f32 0.35355338, %v3266_v51  ;;  %v6685_v53 = vpop.f32.mrb[65].mxu1  ;;  %v5956_v51 = vld [vmem:[%s8272_s6 + $0x1c] sm:$0xf] }
 0xc0b   : > { %v3277_v54 = vsel %vm7451_vm4, %v3273_v52, -1e+30 }
 0xc0c   : > { %v3287_v55 = vsel %vm1285_vm2, %v3277_v54, -inf }
 0xc0d   : > { %3288 = vmax.xlane.f32.xlu1 %v3287_v55  ;;  %v3665_v55 = vsel %vm1655_vm3, %v5956_v51, 0  ;;  %v7038_v51 = vld [vmem:[%s8278_s12 + $0x70] sm:$0xff]  }
 0xc72   : > { %v3280_v56 = vpop.xlane.xlu0 %3279 }
 0xc73   : > { %v3290_v57 = vsub.f32 %v3274_v38, %v3280_v56  ;;  %v5955_v38 = vld [vmem:[%s8272_s6 + $0x18] sm:$0xf] }
 0xc74   : > { %v3619_v43 = vsel %vm1655_vm3, %v5955_v38, 0  ;;  %v7036_v38 = vld [vmem:[%s8278_s12 + $0x60] sm:$0xff]  }
 0xc75   : > { %v3294_v58 = vmul.f32 1.442695, %v3290_v57 }
 0xc77   : > { %7098 = vpow2.f32 %v3294_v58 }
 0xc7f   : > { %v3286_v59 = vpop.xlane.xlu0 %3285 }
 0xc80   : > { %v3292_v60 = vsub.f32 %v3276_v44, %v3286_v59 }
 0xc81   : > { %v7099_v61 = vpop.eup %7098 }
 0xc82   : > { %v3298_v62 = vmul.f32 1.442695, %v3292_v60  ;;  %v3302_v63 = vsel %vm1285_vm2, %v7099_v61, 0.0 }
 0xc83   : > { %3303 = vadd.xlane.f32.xlu0 %v3302_v63 }
 0xc84   : > { %7100 = vpow2.f32 %v3298_v62 }
 0xc8e   : > { %v7101_v0 = vpop.eup %7100 }
 0xc8f   : > { %v3308_v2 = vsel %vm1285_vm2, %v7101_v0, 0.0 }
 0xc90   : > { %3309 = vadd.xlane.f32.xlu0 %v3308_v2 }
 0xc92   : > { %v3283_v3 = vpop.xlane.xlu1 %3282 }
 0xc93   : > { %v3291_v4 = vsub.f32 %v3275_v49, %v3283_v3 }
 0xc95   : > { %v3296_v5 = vmul.f32 1.442695, %v3291_v4 }
 0xc97   : > { %7102 = vpow2.f32 %v3296_v5 }
 0xc9a   : > { %v3289_v6 = vpop.xlane.xlu1 %3288 }
 0xc9b   : > { %v3293_v7 = vsub.f32 %v3277_v54, %v3289_v6 }
 0xc9d   : > { %v3300_v8 = vmul.f32 1.442695, %v3293_v7 }
 0xc9f   : > { %7104 = vpow2.f32 %v3300_v8 }
 0xca1   : > { %v7103_v11 = vpop.eup %7102 }
 0xca2   : > { %v3305_v12 = vsel %vm1285_vm2, %v7103_v11, 0.0 }
 0xca3   : > { %3306 = vadd.xlane.f32.xlu1 %v3305_v12 }
 0xca9   : > { %v7105_v13 = vpop.eup %7104 }
 0xcaa   : > { %v3311_v15 = vsel %vm1285_vm2, %v7105_v13, 0.0 }
 0xcab   : > { %3312 = vadd.xlane.f32.xlu1 %v3311_v15 }
 0xd10   : > { %v3304_v16 = vpop.xlane.xlu0 %3303 }
 0xd11   : > { %7106 = vrcp.f32 %v3304_v16 }
 0xd1b   : > { %v7107_v17 = vpop.eup %7106 }
 0xd1c   : > { %v3315_v19 = vmul.f32 %v7107_v17, %v7099_v61 }
 0xd1d   : > { %v3310_v20 = vpop.xlane.xlu0 %3309 }
 0xd1e   : > { %7108 = vrcp.f32 %v3310_v20  ;;  %v3322_v21 = vpack.c.bf16 %v3315_v19, %v3315_v19 }
 0xd20   : > { %6689 = vmatmul.mubr.msk.bf16.vlgmr.msra.gmra.mrb[88].mxu0 %vm1285_vm2, %v3322_v21 }
 0xd21   : > { %6699 = vmatpush3.bf16.msra.mxu0 %v3426_v22  ;;  %6700 = vmatprep.mubr.msk.bf16.mxu0 %vm7148_vm1, %v7147_v9 }
 0xd22   : > { %6710 = vmatprep.subr.bf16.mxu0 %v7147_v9 }
 0xd28   : > { %v7109_v23 = vpop.eup %7108 }
 0xd29   : > { %v3319_v24 = vmul.f32 %v7109_v23, %v7101_v0 }
 0xd2b   : > { %v3324_v25 = vpack.c.bf16 %v3319_v24, %v3319_v24 }
 0xd2d   : > { %6701 = vmatmul.mubr.msk.bf16.vlgmr.msra.gmra.mrb[92].mxu0 %vm1285_vm2, %v3324_v25 }
 0xd2e   : > { %6712 = vmatprep.mubr.msk.bf16.mxu0 %vm7148_vm1, %v7147_v9  ;;  %6711 = vmatpush3.bf16.msra.mxu0 %v3527_v35  ;;  %v7033_v35 = vld [vmem:[%s8278_s12 + $0x48] sm:$0xff]  }
 0xd2f   : > { %6722 = vmatprep.subr.bf16.mxu0 %v7147_v9 }
 0xd30   : > { %v3307_v10 = vpop.xlane.xlu1 %3306 }
 0xd31   : > { %7110 = vrcp.f32 %v3307_v10  ;;  %v5962_v10 = vld [vmem:[%s8273_s7 + $0x1] ss:$0 sm:$0xff] }
 0xd38   : > { %v3313_v26 = vpop.xlane.xlu1 %3312 }
 0xd39   : > { %7112 = vrcp.f32 %v3313_v26 }
 0xd3b   : > { %v7111_v27 = vpop.eup %7110 }
 0xd3c   : > { %v3317_v29 = vmul.f32 %v7111_v27, %v7103_v11 }
 0xd3e   : > { %v3323_v14 = vpack.c.bf16 %v3317_v29, %v3317_v29 }
 0xd40   : > { %6695 = vmatmul.mubr.msk.bf16.vlgmr.msra.gmra.mrb[68].mxu1 %vm1285_vm2, %v3323_v14 }
 0xd41   : > { %6705 = vmatpush3.bf16.msra.mxu1 %v3472_v30  ;;  %6706 = vmatprep.mubr.msk.bf16.mxu1 %vm7148_vm1, %v7147_v9 }
 0xd42   : > { %6716 = vmatprep.subr.bf16.mxu1 %v7147_v9 }
 0xd43   : > { %v7113_v32 = vpop.eup %7112 }
 0xd44   : > { %v3321_v33 = vmul.f32 %v7113_v32, %v7105_v13 }
 0xd46   : > { %v3325_v34 = vpack.c.bf16 %v3321_v33, %v3321_v33 }
 0xd48   : > { %6707 = vmatmul.mubr.msk.bf16.vlgmr.msra.gmra.mrb[72].mxu1 %vm1285_vm2, %v3325_v34  ;;  %v7030_v34 = vld [vmem:[%s8276_s10 + $0x10] sm:$0xff]  }
 0xd49   : > { %6718 = vmatprep.mubr.msk.bf16.mxu1 %vm7148_vm1, %v7147_v9  ;;  %6717 = vmatpush3.bf16.msra.mxu1 %v3573_v37  ;;  %v7035_v37 = vld [vmem:[%s8278_s12 + $0x58] sm:$0xff]  }
 0xd4a   : > { %6728 = vmatprep.subr.bf16.mxu1 %v7147_v9 }
 0xdf3   : > { %v3370_v39 = vpop.f32.mrb[88].mxu0 }
 0xdf4   : > { %v3514_v40 = vpack.c.bf16 %v3370_v39, %v3370_v39  ;;  %v6690_v41 = vpop.f32.mrb[89].mxu0  ;;  %v7037_v39 = vld [vmem:[%s8278_s12 + $0x68] sm:$0xff]  }
 0xdf5   : > { %v3373_v44 = vpop.f32.mrb[90].mxu0 }
 0xdf6   : > { %v6691_v45 = vpop.f32.mrb[91].mxu0  ;;  %6713 = vmatmul.mubr.msk.bf16.vlgmr.msra.gmra.mrb[96].mxu0 %vm1285_vm2, %v3514_v40 }
 0xdf7   : > { %6723 = vmatpush3.bf16.msra.mxu0 %v3619_v43  ;;  %6724 = vmatprep.mubr.msk.bf16.mxu0 %vm7148_vm1, %v7147_v9  ;;  %v5965_v45 = vld [vmem:[%s8274_s8 + $0x1] ss:$0 sm:$0xff] }
 0xdf8   : > { %6734 = vmatprep.subr.bf16.mxu0 %v7147_v9 }
 0xe00   : > { %v3462_v46 = vpop.f32.mrb[92].mxu0 }
 0xe01   : > { %v3516_v47 = vpack.c.bf16 %v3462_v46, %v3462_v46  ;;  %v6702_v48 = vpop.f32.mrb[93].mxu0 }
 0xe02   : > { %v3465_v49 = vpop.f32.mrb[94].mxu0 }
 0xe03   : > { %v6703_v50 = vpop.f32.mrb[95].mxu0  ;;  %6725 = vmatmul.mubr.msk.bf16.vlgmr.msra.gmra.mrb[100].mxu0 %vm1285_vm2, %v3516_v47  ;;  %v5966_v47 = vld [vmem:[%s8275_s9 + $0x1] ss:$0 sm:$0xff] }
 0xe04   : > { %6738 = vmatprep.mubr.msk.bf16.mxu0 %vm7148_vm1, %v7147_v9  ;;  %6735 = vmatpush3.bf16.msra.mxu0 %v7030_v34  ;;  %v7051_v34 = vld [vmem:[%s8271_s5 + $0x88] sm:$0xff]  }
 0xe05   : > { %6736 = vmatprep.subr.bf16.mxu0 %v7147_v9 }
 0xe13   : > { %v3416_v52 = vpop.f32.mrb[68].mxu1 }
 0xe14   : > { %v3515_v53 = vpack.c.bf16 %v3416_v52, %v3416_v52  ;;  %v6696_v54 = vpop.f32.mrb[69].mxu1  ;;  %v7039_v52 = vld [vmem:[%s8278_s12 + $0x78] sm:$0xff]  }
 0xe15   : > { %v3419_v56 = vpop.f32.mrb[70].mxu1 }
 0xe16   : > { %v6697_v57 = vpop.f32.mrb[71].mxu1  ;;  %6719 = vmatmul.mubr.msk.bf16.vlgmr.msra.gmra.mrb[76].mxu1 %vm1285_vm2, %v3515_v53  ;;  %v5972_v53 = vld [vmem:[%s8277_s11 + $0x1] ss:$0 sm:$0xff] }
 0xe17   : > { %6729 = vmatpush3.bf16.msra.mxu1 %v3665_v55  ;;  %6730 = vmatprep.mubr.msk.bf16.mxu1 %vm7148_vm1, %v7147_v9 }
 0xe18   : > { %6742 = vmatprep.subr.bf16.mxu1 %v7147_v9 }
 0xe1b   : > { %v3508_v58 = vpop.f32.mrb[72].mxu1 }
 0xe1c   : > { %v3517_v59 = vpack.c.bf16 %v3508_v58, %v3508_v58  ;;  %v6708_v60 = vpop.f32.mrb[73].mxu1 }
 0xe1d   : > { %v3511_v61 = vpop.f32.mrb[74].mxu1 }
 0xe1e   : > { %v6709_v62 = vpop.f32.mrb[75].mxu1  ;;  %6731 = vmatmul.mubr.msk.bf16.vlgmr.msra.gmra.mrb[80].mxu1 %vm1285_vm2, %v3517_v59 }
 0xe1f   : > { %6758 = vmatprep.mubr.msk.bf16.mxu1 %vm7148_vm1, %v7147_v9  ;;  %6743 = vmatpush3.bf16.msra.mxu1 %v7032_v31  ;;  %v6001_v62 = vld [vmem:[%s8279_s13 + $0x1] ss:$0 sm:$0xff] }
 0xe20   : > { %6744 = vmatprep.subr.bf16.mxu1 %v7147_v9  ;;  %v7053_v31 = vld [vmem:[%s8271_s5 + $0xa0] sm:$0xff]  }
 0xe23   : > { %6745 = vmatpush3.bf16.msra.mxu1 %v7033_v35  ;;  %v7054_v35 = vld [vmem:[%s8269_s3 + $0xb8] sm:$0xff]  }
 0xe24   : > { %6746 = vmatprep.subr.bf16.mxu1 %v7147_v9 }
 0xe27   : > { %6747 = vmatpush3.bf16.msra.mxu1 %v7034_v36  ;;  %v7055_v36 = vld [vmem:[%s8271_s5 + $0xa8] sm:$0xff]  }
 0xe28   : > { %6748 = vmatprep.subr.bf16.mxu1 %v7147_v9 }
 0xe2b   : > { %6749 = vmatpush3.bf16.msra.mxu1 %v7035_v37  ;;  %v7056_v37 = vld [vmem:[%s8270_s4 + $0x90] sm:$0xff]  }
 0xe2c   : > { %6750 = vmatprep.subr.bf16.mxu1 %v7147_v9 }
 0xe2f   : > { %6751 = vmatpush3.bf16.msra.mxu1 %v7036_v38  ;;  %v7057_v38 = vld [vmem:[%s8270_s4 + $0x98] sm:$0xff]  }
 0xe30   : > { %6752 = vmatprep.subr.bf16.mxu1 %v7147_v9 }
 0xe33   : > { %6753 = vmatpush3.bf16.msra.mxu1 %v7037_v39  ;;  %v7058_v39 = vld [vmem:[%s8270_s4 + $0xb0] sm:$0xff]  }
 0xe34   : > { %6754 = vmatprep.subr.bf16.mxu1 %v7147_v9 }
 0xe37   : > { %6755 = vmatpush3.bf16.msra.mxu1 %v7038_v51 }
 0xe38   : > { %6756 = vmatprep.subr.bf16.mxu1 %v7147_v9 }
 0xe3b   : > { %6757 = vmatpush3.bf16.msra.mxu1 %v7039_v52 }
 0xe3c   : > { %6794 = vmatprep.subr.bf16.mxu1 %v7147_v9 }
 0xec9   : > { %v3563_v63 = vpop.f32.mrb[96].mxu0 }
 0xeca   : > { %v6714_v0 = vpop.f32.mrb[97].mxu0  ;;  %v3707_v11 = vsel %vm580_vm0, %v3563_v63, 0.0 }
 0xecb   : > { %v3566_v2 = vpop.f32.mrb[98].mxu0 }
 0xecc   : > { %v6715_v3 = vpop.f32.mrb[99].mxu0 }
 0xed6   : > { %v3655_v4 = vpop.f32.mrb[100].mxu0 }
 0xed7   : > { %v6726_v5 = vpop.f32.mrb[101].mxu0  ;;  %v3710_v17 = vsel %vm580_vm0, %v3655_v4, 0.0 }
 0xed8   : > { %v3658_v6 = vpop.f32.mrb[102].mxu0 }
 0xed9   : > { %v6727_v7 = vpop.f32.mrb[103].mxu0 }
 0xee9   : > { %v3609_v8 = vpop.f32.mrb[76].mxu1 }
 0xeea   : > { %v3708_v12 = vsel %vm580_vm0, %v3609_v8, 0.0  ;;  %v6720_v13 = vpop.f32.mrb[77].mxu1 }
 0xeeb   : > { %v3709_v15 = vadd.f32 %v3708_v12, %v3707_v11  ;;  %v3612_v16 = vpop.f32.mrb[78].mxu1  ;;  %v7040_v13 = vld [vmem:[%s8269_s3 + $0x80] sm:$0xff]  }
 0xeec   : > { %v6721_v18 = vpop.f32.mrb[79].mxu1  ;;  %v7042_v16 = vld [vmem:[%s8269_s3 + $0x88] sm:$0xff]  }
 0xeed   : > { %v3711_v19 = vadd.f32 %v3710_v17, %v3709_v15  ;;  %v7041_v15 = vld [vmem:[%s8270_s4 + $0x80] sm:$0xff]   ;;  %v7043_v17 = vld [vmem:[%s8270_s4 + $0x88] sm:$0xff]  }
 0xef1   : > { %v3701_v20 = vpop.f32.mrb[80].mxu1 }
 0xef2   : > { %v3712_v21 = vsel %vm580_vm0, %v3701_v20, 0.0  ;;  %v6732_v22 = vpop.f32.mrb[81].mxu1 }
 0xef3   : > { %v3713_v23 = vadd.f32 %v3712_v21, %v3711_v19  ;;  %v3704_v24 = vpop.f32.mrb[82].mxu1  ;;  %v6004_v22 = vld [vmem:[%s8291_s19 + $0x2] ss:$0 sm:$0xff] }
 0xef4   : > { %v6733_v25 = vpop.f32.mrb[83].mxu1  ;;  %v6005_v24 = vld [vmem:[%s8292_s22 + $0x2] ss:$0 sm:$0xff] }
 0xef5   : > { %v3714_v26 = vadd.f32 %v3713_v23, %v7595_v1  ;;  %v7031_v1 = vld [vmem:[%s8276_s10 + $0x18] sm:$0xff]  }
 0xef6   : > { %6737 = vmatpush3.bf16.msra.mxu0 %v7031_v1  ;;  %v7052_v1 = vld [vmem:[%s8269_s3 + $0xb0] sm:$0xff]  }
 0xef7   : > { %v7857_v27 = vadd.f32 %v5962_v10, %v3714_v26  ;;  %6762 = vmatprep.subr.bf16.mxu0 %v7147_v9  ;;  %v7044_v26 = vld [vmem:[%s8269_s3 + $0x90] sm:$0xff]  }
 0xef9   : > { %v3728_v28 = vsel %vm580_vm0, %v7857_v27, 0.0 }
 0xefa   : > { %3729 = vadd.xlane.f32.xlu0 %v3728_v28 }
 0xf87   : > { %v3730_v29 = vpop.xlane.xlu0 %3729 }
 0xf88   : > { %v3731_v14 = vmul.f32 0.03125, %v3730_v29  ;;  %v7046_v29 = vld [vmem:[%s8269_s3 + $0x98] sm:$0xff]  }
 0xf8a   : > { %v3732_v30 = vsub.f32 %v7857_v27, %v3731_v14  ;;  %v7047_v14 = vld [vmem:[%s8270_s4 + $0xa8] sm:$0xff]  }
 0xf8c   : > { %v3733_v32 = vmul.f32 %v3732_v30, %v3732_v30 }
 0xf8e   : > { %v3734_v33 = vsel %vm580_vm0, %v3733_v32, 0.0  ;;  %v7049_v32 = vld [vmem:[%s8271_s5 + $0x80] sm:$0xff]  }
 0xf8f   : > { %3735 = vadd.xlane.f32.xlu1 %v3734_v33  ;;  %v7050_v33 = vld [vmem:[%s8269_s3 + $0xa8] sm:$0xff]  }
0x101c   : > { %v3736_v40 = vpop.xlane.xlu1 %3735 }
0x101d   : > { %v3737_v41 = vmul.f32 0.03125, %v3736_v40  ;;  %v7059_v40 = vld [vmem:[%s8270_s4 + $0xb8] sm:$0xff]  }
0x101f   : > { %v3738_v43 = vadd.f32 1e-05, %v3737_v41  ;;  %v7060_v41 = vld [vmem:[%s8271_s5 + $0x90] sm:$0xff]  }
0x1021   : > { %7114 = vrsqrt.f32 %v3738_v43  ;;  %v7061_v43 = vld [vmem:[%s8271_s5 + $0x98] sm:$0xff]  }
0x102b   : > { %v7115_v44 = vpop.eup %7114 }
0x102c   : > { %v3740_v46 = vmul.f32 %v7115_v44, %v3732_v30  ;;  %v7048_v30 = vld [vmem:[%s8269_s3 + $0xa0] sm:$0xff]   ;;  %v7062_v44 = vld [vmem:[%s8271_s5 + $0xb0] sm:$0xff]  }
0x102e   : > { %v3747_v48 = vmul.f32 %v5965_v45, %v3740_v46  ;;  %v7063_v45 = vld [vmem:[%s8271_s5 + $0xb8] sm:$0xff]  }
0x1030   : > { %v3754_v49 = vadd.f32 %v5966_v47, %v3747_v48 }
0x1032   : > { %v3755_v50 = vpack.c.bf16 %v3754_v49, %v3754_v49 }
0x1034   : > { %6739 = vmatmul.mubr.msk.bf16.vlgmr.msra.gmra.mrb[104].mxu0 %vm580_vm0, %v3755_v50 }
0x1035   : > { %6766 = vmatprep.mubr.msk.bf16.mxu0 %vm7148_vm1, %v7147_v9  ;;  %6763 = vmatpush3.bf16.msra.mxu0 %v7040_v13 }
0x1036   : > { %6764 = vmatprep.subr.bf16.mxu0 %v7147_v9 }
0x1039   : > { %6765 = vmatpush3.bf16.msra.mxu0 %v7042_v16 }
0x103a   : > { %6770 = vmatprep.subr.bf16.mxu0 %v7147_v9 }
0x1107   : > { %v3818_v54 = vpop.f32.mrb[104].mxu0 }
0x1108   : > { %v3819_v55 = vadd.f32 %v5972_v53, %v3818_v54  ;;  %v6740_v56 = vpop.f32.mrb[105].mxu0 }
0x1109   : > { %v3821_v57 = vpop.f32.mrb[106].mxu0 }
0x110a   : > { %v3824_v58 = vmax.f32 %v3819_v55, 0.0  ;;  %v6741_v59 = vpop.f32.mrb[107].mxu0 }
0x110c   : > { %v3825_v60 = vpack.c.bf16 %v3824_v58, %v3824_v58 }
0x110e   : > { %6759 = vmatmul.mubr.bf16.vlgmr.msra.gmra.mrb[84].mxu1 %v3825_v60 }
0x110f   : > { %6798 = vmatprep.mubr.msk.bf16.mxu1 %vm7148_vm1, %v7147_v9  ;;  %6795 = vmatpush3.bf16.msra.mxu1 %v7041_v15 }
0x1110   : > { %6796 = vmatprep.subr.bf16.mxu1 %v7147_v9 }
0x1113   : > { %6797 = vmatpush3.bf16.msra.mxu1 %v7043_v17 }
0x1114   : > { %6810 = vmatprep.subr.bf16.mxu1 %v7147_v9 }
0x11e1   : > { %v3925_v61 = vpop.f32.mrb[84].mxu1 }
0x11e2   : > { %v3931_v63 = vadd.f32 %v3925_v61, %v7857_v27  ;;  %v6760_v0 = vpop.f32.mrb[85].mxu1  ;;  %v7045_v27 = vld [vmem:[%s8270_s4 + $0xa0] sm:$0xff]  }
0x11e3   : > { %v3928_v2 = vpop.f32.mrb[86].mxu1 }
0x11e4   : > { %v7921_v3 = vadd.f32 %v6001_v62, %v3931_v63  ;;  %v6761_v4 = vpop.f32.mrb[87].mxu1 }
0x11e6   : > { %v3945_v5 = vsel %vm580_vm0, %v7921_v3, 0.0 }
0x11e7   : > { %3946 = vadd.xlane.f32.xlu0 %v3945_v5 }
0x1274   : > { %v3947_v6 = vpop.xlane.xlu0 %3946 }
0x1275   : > { %v3948_v7 = vmul.f32 0.03125, %v3947_v6 }
0x1277   : > { %v3949_v8 = vsub.f32 %v7921_v3, %v3948_v7 }
0x1279   : > { %v3950_v11 = vmul.f32 %v3949_v8, %v3949_v8 }
0x127b   : > { %v3951_v12 = vsel %vm580_vm0, %v3950_v11, 0.0 }
0x127c   : > { %3952 = vadd.xlane.f32.xlu1 %v3951_v12 }
0x1309   : > { %v3953_v18 = vpop.xlane.xlu1 %3952 }
0x130a   : > { %v3954_v19 = vmul.f32 0.03125, %v3953_v18 }
0x130c   : > { %v3955_v20 = vadd.f32 1e-05, %v3954_v19 }
0x130e   : > { %7116 = vrsqrt.f32 %v3955_v20 }
0x1318   : > { %v7117_v21 = vpop.eup %7116 }
0x1319   : > { %v3957_v23 = vmul.f32 %v7117_v21, %v3949_v8 }
0x131b   : > { %v3964_v25 = vmul.f32 %v6004_v22, %v3957_v23 }
0x131d   : > { %v3971_v10 = vadd.f32 %v6005_v24, %v3964_v25 }
0x131f   : > { %v7955_v28 = vpack.c.bf16 %v3971_v10, %v3971_v10 }
0x1321   : > { %6767 = vmatmul.mubr.msk.bf16.vlgmr.msra.gmra.mrb[108].mxu0 %vm580_vm0, %v7955_v28  ;;  %6799 = vmatmul.mubr.msk.bf16.vlgmr.msra.gmra.mrb[88].mxu1 %vm580_vm0, %v7955_v28 }
0x1322   : > { %6771 = vmatpush3.bf16.msra.mxu0 %v7044_v26  ;;  %6811 = vmatpush3.bf16.msra.mxu1 %v7045_v27 }
0x1323   : > { %6772 = vmatprep.subr.bf16.mxu0 %v7147_v9  ;;  %6812 = vmatprep.subr.bf16.mxu1 %v7147_v9 }
0x1324   : > { %6774 = vmatprep.mubr.msk.bf16.mxu0 %vm7148_vm1, %v7147_v9  ;;  %6814 = vmatprep.mubr.msk.bf16.mxu1 %vm7148_vm1, %v7147_v9 }
0x1326   : > { %6773 = vmatpush3.bf16.msra.mxu0 %v7046_v29  ;;  %6813 = vmatpush3.bf16.msra.mxu1 %v7047_v14 }
0x1327   : > { %6778 = vmatprep.subr.bf16.mxu0 %v7147_v9  ;;  %6826 = vmatprep.subr.bf16.mxu1 %v7147_v9 }
0x1329   : > { %6775 = vmatmul.mubr.msk.bf16.vlgmr.msra.gmra.mrb[112].mxu0 %vm580_vm0, %v7955_v28  ;;  %6815 = vmatmul.mubr.msk.bf16.vlgmr.msra.gmra.mrb[92].mxu1 %vm580_vm0, %v7955_v28 }
0x132a   : > { %6779 = vmatpush3.bf16.msra.mxu0 %v7048_v30  ;;  %6827 = vmatpush3.bf16.msra.mxu1 %v7049_v32 }
0x132b   : > { %6780 = vmatprep.subr.bf16.mxu0 %v7147_v9  ;;  %6828 = vmatprep.subr.bf16.mxu1 %v7147_v9 }
0x132c   : > { %6782 = vmatprep.mubr.msk.bf16.mxu0 %vm7148_vm1, %v7147_v9  ;;  %6830 = vmatprep.mubr.msk.bf16.mxu1 %vm7148_vm1, %v7147_v9 }
0x132e   : > { %6781 = vmatpush3.bf16.msra.mxu0 %v7050_v33  ;;  %6829 = vmatpush3.bf16.msra.mxu1 %v7051_v34 }
0x132f   : > { %6786 = vmatprep.subr.bf16.mxu0 %v7147_v9  ;;  %6842 = vmatprep.subr.bf16.mxu1 %v7147_v9 }
0x1331   : > { %6783 = vmatmul.mubr.msk.bf16.vlgmr.msra.gmra.mrb[116].mxu0 %vm580_vm0, %v7955_v28  ;;  %6831 = vmatmul.mubr.msk.bf16.vlgmr.msra.gmra.mrb[96].mxu1 %vm580_vm0, %v7955_v28 }
0x1332   : > { %6787 = vmatpush3.bf16.msra.mxu0 %v7052_v1  ;;  %6843 = vmatpush3.bf16.msra.mxu1 %v7053_v31 }
0x1333   : > { %6788 = vmatprep.subr.bf16.mxu0 %v7147_v9  ;;  %6844 = vmatprep.subr.bf16.mxu1 %v7147_v9 }
0x1334   : > { %6790 = vmatprep.mubr.msk.bf16.mxu0 %vm7148_vm1, %v7147_v9  ;;  %6846 = vmatprep.mubr.msk.bf16.mxu1 %vm7148_vm1, %v7147_v9 }
0x1336   : > { %6789 = vmatpush3.bf16.msra.mxu0 %v7054_v35  ;;  %6845 = vmatpush3.bf16.msra.mxu1 %v7055_v36 }
0x1337   : > { %6802 = vmatprep.subr.bf16.mxu0 %v7147_v9  ;;  %6858 = vmatprep.subr.mxu1 %v7147_v9 }
0x1339   : > { %6791 = vmatmul.mubr.msk.bf16.vlgmr.msra.gmra.mrb[120].mxu0 %vm580_vm0, %v7955_v28  ;;  %6847 = vmatmul.mubr.msk.bf16.vlgmr.msra.gmra.mrb[100].mxu1 %vm580_vm0, %v7955_v28 }
0x133a   : > { %6803 = vmatpush3.bf16.msra.mxu0 %v7056_v37  ;;  %6806 = vmatprep.mubr.msk.bf16.mxu0 %vm7148_vm1, %v7147_v9 }
0x133b   : > { %6804 = vmatprep.subr.bf16.mxu0 %v7147_v9  ;;  %6860 = vmatprep.mubr.msk.f32.mxu1 %vm7148_vm1, %v7147_v9 }
0x133e   : > { %6805 = vmatpush3.bf16.msra.mxu0 %v7057_v38 }
0x133f   : > { %6818 = vmatprep.subr.bf16.mxu0 %v7147_v9 }
0x1341   : > { %6807 = vmatmul.mubr.msk.bf16.vlgmr.msra.gmra.mrb[124].mxu0 %vm580_vm0, %v7955_v28 }
0x1342   : > { %6819 = vmatpush3.bf16.msra.mxu0 %v7058_v39  ;;  %6822 = vmatprep.mubr.msk.bf16.mxu0 %vm7148_vm1, %v7147_v9 }
0x1343   : > { %6820 = vmatprep.subr.bf16.mxu0 %v7147_v9 }
0x1346   : > { %6821 = vmatpush3.bf16.msra.mxu0 %v7059_v40 }
0x1347   : > { %6834 = vmatprep.subr.bf16.mxu0 %v7147_v9 }
0x1349   : > { %6823 = vmatmul.mubr.msk.bf16.vlgmr.msra.gmra.mrb[128].mxu0 %vm580_vm0, %v7955_v28 }
0x134a   : > { %6835 = vmatpush3.bf16.msra.mxu0 %v7060_v41  ;;  %6838 = vmatprep.mubr.msk.bf16.mxu0 %vm7148_vm1, %v7147_v9 }
0x134b   : > { %6836 = vmatprep.subr.bf16.mxu0 %v7147_v9 }
0x134e   : > { %6837 = vmatpush3.bf16.msra.mxu0 %v7061_v43 }
0x134f   : > { %6850 = vmatprep.subr.bf16.mxu0 %v7147_v9 }
0x1351   : > { %6839 = vmatmul.mubr.msk.bf16.vlgmr.msra.gmra.mrb[132].mxu0 %vm580_vm0, %v7955_v28 }
0x1352   : > { %6851 = vmatpush3.bf16.msra.mxu0 %v7062_v44  ;;  %6854 = vmatprep.mubr.msk.bf16.mxu0 %vm7148_vm1, %v7147_v9 }
0x1353   : > { %6852 = vmatprep.subr.bf16.mxu0 %v7147_v9 }
0x1356   : > { %6853 = vmatpush3.bf16.msra.mxu0 %v7063_v45 }
0x1357   : > { %6868 = vmatprep.subr.mxu0 %v7147_v9 }
0x1359   : > { %6855 = vmatmul.mubr.msk.bf16.vlgmr.msra.gmra.mrb[136].mxu0 %vm580_vm0, %v7955_v28 }
0x135a   : > { %6870 = vmatprep.mubr.msk.f32.mxu0 %vm7148_vm1, %v7147_v9 }
0x13f4   : > { %v4039_v46 = vpop.f32.mrb[108].mxu0  ;;  %v4264_v47 = vpop.f32.mrb[88].mxu1 }
0x13f5   : > { %v6768_v48 = vpop.f32.mrb[109].mxu0  ;;  %v6800_v49 = vpop.f32.mrb[89].mxu1  ;;  %6859 = vmatpush3.xpose.msk.msra.mxu1 %vm1285_vm2, %v4264_v47 }
0x13f6   : > { %v4042_v50 = vpop.f32.mrb[110].mxu0  ;;  %v4267_v51 = vpop.f32.mrb[90].mxu1  ;;  %6863 = vmatprep.subr.mxu1 %v7147_v9 }
0x13f7   : > { %v6769_v52 = vpop.f32.mrb[111].mxu0  ;;  %v6801_v53 = vpop.f32.mrb[91].mxu1 }
0x13f8   : > { %6861 = vmatmul.mubr.msk.f32.vlgmr.msra.gmra.mrb[66].mxu1 %vm1285_vm2, %v4039_v46 }
0x13f9   : > { %6865 = vmatprep.mubr.msk.f32.mxu1 %vm7148_vm1, %v7147_v9 }
0x13fc   : > { %v4091_v54 = vpop.f32.mrb[112].mxu0  ;;  %v4368_v55 = vpop.f32.mrb[92].mxu1 }
0x13fd   : > { %v6776_v56 = vpop.f32.mrb[113].mxu0  ;;  %v6816_v57 = vpop.f32.mrb[93].mxu1  ;;  %6869 = vmatpush3.xpose.msk.msra.mxu0 %vm1285_vm2, %v4368_v55 }
0x13fe   : > { %v4094_v58 = vpop.f32.mrb[114].mxu0  ;;  %v4371_v59 = vpop.f32.mrb[94].mxu1  ;;  %6878 = vmatprep.subr.bf16.mxu0 %v7147_v9 }
0x13ff   : > { %v6777_v60 = vpop.f32.mrb[115].mxu0  ;;  %v6817_v61 = vpop.f32.mrb[95].mxu1 }
0x1404   : > { %v4143_v62 = vpop.f32.mrb[116].mxu0  ;;  %v4489_v63 = vpop.f32.mrb[96].mxu1 }
0x1405   : > { %v5011_v0 = vpack.c.bf16 %v4489_v63, %v4489_v63  ;;  %v6784_v2 = vpop.f32.mrb[117].mxu0  ;;  %v6832_v4 = vpop.f32.mrb[97].mxu1  ;;  %6871 = vmatmul.mubr.msk.f32.vlgmr.msra.gmra.mrb[86].mxu0 %vm1285_vm2, %v4143_v62 }
0x1406   : > { %v4146_v5 = vpop.f32.mrb[118].mxu0  ;;  %v4492_v6 = vpop.f32.mrb[98].mxu1  ;;  %6880 = vmatprep.mubr.msk.bf16.mxu0 %vm7148_vm1, %v7147_v9 }
0x1407   : > { %v5019_v7 = vsel %vm1655_vm3, %v5011_v0, 0  ;;  %v6785_v8 = vpop.f32.mrb[119].mxu0  ;;  %v6833_v11 = vpop.f32.mrb[99].mxu1 }
0x1408   : > { %6879 = vmatpush3.bf16.msra.mxu0 %v5019_v7 }
0x1409   : > { %6890 = vmatprep.subr.bf16.mxu0 %v7147_v9 }
0x140c   : > { %v4195_v12 = vpop.f32.mrb[120].mxu0  ;;  %v8091_v13 = vpop.f32.mrb[100].mxu1 }
0x140d   : > { %v6792_v15 = vpop.f32.mrb[121].mxu0  ;;  %v6848_v16 = vpop.f32.mrb[101].mxu1 }
0x140e   : > { %v4198_v17 = vpop.f32.mrb[122].mxu0  ;;  %v4596_v18 = vpop.f32.mrb[102].mxu1 }
0x140f   : > { %v6793_v19 = vpop.f32.mrb[123].mxu0  ;;  %v6849_v20 = vpop.f32.mrb[103].mxu1 }
0x1410   : > { %v5013_v20 = vpack.c.bf16 %v8091_v13, %v8091_v13 }
0x1414   : > { %v4316_v21 = vpop.f32.mrb[124].mxu0 }
0x1415   : > { %v6808_v22 = vpop.f32.mrb[125].mxu0  ;;  %6864 = vmatpush3.xpose.msk.msra.mxu1 %vm1285_vm2, %v4316_v21 }
0x1416   : > { %v4319_v23 = vpop.f32.mrb[126].mxu0  ;;  %6873 = vmatprep.subr.mxu1 %v7147_v9 }
0x1417   : > { %v6809_v24 = vpop.f32.mrb[127].mxu0 }
0x1418   : > { %6866 = vmatmul.mubr.msk.f32.vlgmr.msra.gmra.mrb[104].mxu1 %vm1285_vm2, %v4091_v54  ;;  %v5111_v24 = vsel %vm1655_vm3, %v5013_v20, 0 }
0x1419   : > { %6875 = vmatprep.mubr.msk.f32.mxu1 %vm7148_vm1, %v7147_v9 }
0x141c   : > { %v4420_v25 = vpop.f32.mrb[128].mxu0 }
0x141d   : > { %v6824_v10 = vpop.f32.mrb[129].mxu0  ;;  %6874 = vmatpush3.xpose.msk.msra.mxu1 %vm1285_vm2, %v4420_v25 }
0x141e   : > { %v4423_v26 = vpop.f32.mrb[130].mxu0  ;;  %6884 = vmatprep.subr.bf16.mxu1 %v7147_v9 }
0x141f   : > { %v6825_v27 = vpop.f32.mrb[131].mxu0 }
0x1420   : > { %6876 = vmatmul.mubr.msk.f32.vlgmr.msra.gmra.mrb[106].mxu1 %vm1285_vm2, %v4195_v12 }
0x1421   : > { %6886 = vmatprep.mubr.msk.bf16.mxu1 %vm7148_vm1, %v7147_v9 }
0x1424   : > { %v4541_v28 = vpop.f32.mrb[132].mxu0 }
0x1425   : > { %v5012_v29 = vpack.c.bf16 %v4541_v28, %v4541_v28  ;;  %v6840_v14 = vpop.f32.mrb[133].mxu0 }
0x1426   : > { %v4544_v30 = vpop.f32.mrb[134].mxu0 }
0x1427   : > { %v5065_v32 = vsel %vm1655_vm3, %v5012_v29, 0  ;;  %v6841_v33 = vpop.f32.mrb[135].mxu0 }
0x1428   : > { %6885 = vmatpush3.bf16.msra.mxu1 %v5065_v32 }
0x1429   : > { %6896 = vmatprep.subr.bf16.mxu1 %v7147_v9 }
0x142c   : > { %v8105_v34 = vpop.f32.mrb[136].mxu0 }
0x142d   : > { %v6856_v1 = vpop.f32.mrb[137].mxu0  ;;  %v5014_v29 = vpack.c.bf16 %v8105_v34, %v8105_v34  ;;  %v6102_v34 = vld [vmem:[%s8272_s6 + $0x20] sm:$0xf] }
0x142e   : > { %v4648_v31 = vpop.f32.mrb[138].mxu0 }
0x142f   : > { %v6857_v35 = vpop.f32.mrb[139].mxu0  ;;  %v5157_v32 = vsel %vm1655_vm3, %v5014_v29, 0 }
0x1430   : > { %v5212_v35 = vsel %vm1655_vm3, %v6102_v34, 0  ;;  %v7067_v34 = vld [vmem:[%s8278_s12 + $0x88] sm:$0xff]  }
0x14cb   : > { %v4723_v36 = vpop.f32.mrb[66].mxu1 }
0x14cc   : > { %v4955_v37 = vmul.f32 0.35355338, %v4723_v36  ;;  %v6862_v38 = vpop.f32.mrb[67].mxu1  ;;  %v6103_v36 = vld [vmem:[%s8272_s6 + $0x24] sm:$0xf] }
0x14cd   : > { %v6104_v38 = vld [vmem:[%s8272_s6 + $0x28] sm:$0xf] }
0x14ce   : > { %v4959_v39 = vsel %vm7451_vm4, %v4955_v37, -1e+30  ;;  %v5258_v37 = vsel %vm1655_vm3, %v6103_v36, 0  ;;  %v7069_v36 = vld [vmem:[%s8278_s12 + $0x98] sm:$0xff]  }
0x14cf   : > { %v4963_v40 = vsel %vm1285_vm2, %v4959_v39, -inf }
0x14d0   : > { %4964 = vmax.xlane.f32.xlu0 %v4963_v40 }
0x14d8   : > { %v4875_v41 = vpop.f32.mrb[86].mxu0 }
0x14d9   : > { %v4957_v43 = vmul.f32 0.35355338, %v4875_v41  ;;  %v6872_v44 = vpop.f32.mrb[87].mxu0 }
0x14db   : > { %v4961_v45 = vsel %vm7451_vm4, %v4957_v43, -1e+30  ;;  %v5304_v43 = vsel %vm1655_vm3, %v6104_v38, 0  ;;  %v7071_v38 = vld [vmem:[%s8278_s12 + $0xa8] sm:$0xff]  }
0x14dc   : > { %v4969_v46 = vsel %vm1285_vm2, %v4961_v45, -inf }
0x14dd   : > { %4970 = vmax.xlane.f32.xlu0 %v4969_v46 }
0x14eb   : > { %v4799_v47 = vpop.f32.mrb[104].mxu1 }
0x14ec   : > { %v4956_v48 = vmul.f32 0.35355338, %v4799_v47  ;;  %v6867_v49 = vpop.f32.mrb[105].mxu1 }
0x14ee   : > { %v4960_v50 = vsel %vm7451_vm4, %v4956_v48, -1e+30 }
0x14ef   : > { %v4966_v51 = vsel %vm1285_vm2, %v4960_v50, -inf }
0x14f0   : > { %4967 = vmax.xlane.f32.xlu1 %v4966_v51  ;;  %v6105_v51 = vld [vmem:[%s8272_s6 + $0x2c] sm:$0xf] }
0x14f3   : > { %v4951_v52 = vpop.f32.mrb[106].mxu1 }
0x14f4   : > { %v4958_v53 = vmul.f32 0.35355338, %v4951_v52  ;;  %v6877_v54 = vpop.f32.mrb[107].mxu1 }
0x14f6   : > { %v4962_v55 = vsel %vm7451_vm4, %v4958_v53, -1e+30 }
0x14f7   : > { %v4972_v56 = vsel %vm1285_vm2, %v4962_v55, -inf }
0x14f8   : > { %4973 = vmax.xlane.f32.xlu1 %v4972_v56 }
0x155d   : > { %v4965_v57 = vpop.xlane.xlu0 %4964 }
0x155e   : > { %v4975_v58 = vsub.f32 %v4959_v39, %v4965_v57 }
0x1560   : > { %v4979_v59 = vmul.f32 1.442695, %v4975_v58 }
0x1562   : > { %7118 = vpow2.f32 %v4979_v59 }
0x156a   : > { %v4971_v60 = vpop.xlane.xlu0 %4970 }
0x156b   : > { %v4977_v61 = vsub.f32 %v4961_v45, %v4971_v60 }
0x156c   : > { %v7119_v62 = vpop.eup %7118 }
0x156d   : > { %v4983_v63 = vmul.f32 1.442695, %v4977_v61  ;;  %v4987_v0 = vsel %vm1285_vm2, %v7119_v62, 0.0 }
0x156e   : > { %4988 = vadd.xlane.f32.xlu0 %v4987_v0 }
0x156f   : > { %7120 = vpow2.f32 %v4983_v63 }
0x1579   : > { %v7121_v2 = vpop.eup %7120 }
0x157a   : > { %v4993_v4 = vsel %vm1285_vm2, %v7121_v2, 0.0 }
0x157b   : > { %4994 = vadd.xlane.f32.xlu0 %v4993_v4 }
0x157d   : > { %v4968_v42 = vpop.xlane.xlu1 %4967 }
0x157e   : > { %v4976_v5 = vsub.f32 %v4960_v50, %v4968_v42 }
0x1580   : > { %v4981_v6 = vmul.f32 1.442695, %v4976_v5 }
0x1582   : > { %7122 = vpow2.f32 %v4981_v6 }
0x1585   : > { %v4974_v7 = vpop.xlane.xlu1 %4973 }
0x1586   : > { %v4978_v8 = vsub.f32 %v4962_v55, %v4974_v7  ;;  %v5350_v55 = vsel %vm1655_vm3, %v6105_v51, 0  ;;  %v7073_v51 = vld [vmem:[%s8278_s12 + $0xb8] sm:$0xff]  }
0x1588   : > { %v4985_v11 = vmul.f32 1.442695, %v4978_v8 }
0x158a   : > { %7124 = vpow2.f32 %v4985_v11 }
0x158c   : > { %v7123_v12 = vpop.eup %7122 }
0x158d   : > { %v4990_v15 = vsel %vm1285_vm2, %v7123_v12, 0.0 }
0x158e   : > { %4991 = vadd.xlane.f32.xlu1 %v4990_v15 }
0x1594   : > { %v7125_v16 = vpop.eup %7124 }
0x1595   : > { %v4996_v17 = vsel %vm1285_vm2, %v7125_v16, 0.0 }
0x1596   : > { %4997 = vadd.xlane.f32.xlu1 %v4996_v17 }
0x15fb   : > { %v4989_v18 = vpop.xlane.xlu0 %4988 }
0x15fc   : > { %7126 = vrcp.f32 %v4989_v18 }
0x1606   : > { %v7127_v19 = vpop.eup %7126 }
0x1607   : > { %v5000_v21 = vmul.f32 %v7127_v19, %v7119_v62 }
0x1608   : > { %v4995_v22 = vpop.xlane.xlu0 %4994 }
0x1609   : > { %7128 = vrcp.f32 %v4995_v22  ;;  %v5007_v23 = vpack.c.bf16 %v5000_v21, %v5000_v21 }
0x160b   : > { %6881 = vmatmul.mubr.msk.bf16.vlgmr.msra.gmra.mrb[140].mxu0 %vm1285_vm2, %v5007_v23 }
0x160c   : > { %6891 = vmatpush3.bf16.msra.mxu0 %v5111_v24  ;;  %6892 = vmatprep.mubr.msk.bf16.mxu0 %vm7148_vm1, %v7147_v9 }
0x160d   : > { %6902 = vmatprep.subr.bf16.mxu0 %v7147_v9 }
0x1613   : > { %v7129_v25 = vpop.eup %7128 }
0x1614   : > { %v5004_v10 = vmul.f32 %v7129_v25, %v7121_v2 }
0x1616   : > { %v5009_v26 = vpack.c.bf16 %v5004_v10, %v5004_v10 }
0x1618   : > { %6893 = vmatmul.mubr.msk.bf16.vlgmr.msra.gmra.mrb[144].mxu0 %vm1285_vm2, %v5009_v26  ;;  %v6111_v26 = vld [vmem:[%s8273_s7 + $0x2] ss:$0 sm:$0xff] }
0x1619   : > { %6904 = vmatprep.mubr.msk.bf16.mxu0 %vm7148_vm1, %v7147_v9  ;;  %6903 = vmatpush3.bf16.msra.mxu0 %v5212_v35  ;;  %v7068_v35 = vld [vmem:[%s8278_s12 + $0x90] sm:$0xff]  }
0x161a   : > { %6914 = vmatprep.subr.bf16.mxu0 %v7147_v9 }
0x161b   : > { %v4992_v13 = vpop.xlane.xlu1 %4991 }
0x161c   : > { %7130 = vrcp.f32 %v4992_v13 }
0x1623   : > { %v4998_v27 = vpop.xlane.xlu1 %4997 }
0x1624   : > { %7132 = vrcp.f32 %v4998_v27 }
0x1626   : > { %v7131_v28 = vpop.eup %7130 }
0x1627   : > { %v5002_v14 = vmul.f32 %v7131_v28, %v7123_v12 }
0x1629   : > { %v5008_v30 = vpack.c.bf16 %v5002_v14, %v5002_v14 }
0x162b   : > { %6887 = vmatmul.mubr.msk.bf16.vlgmr.msra.gmra.mrb[108].mxu1 %vm1285_vm2, %v5008_v30 }
0x162c   : > { %6897 = vmatpush3.bf16.msra.mxu1 %v5157_v32  ;;  %6898 = vmatprep.mubr.msk.bf16.mxu1 %vm7148_vm1, %v7147_v9 }
0x162d   : > { %6908 = vmatprep.subr.bf16.mxu1 %v7147_v9 }
0x162e   : > { %v7133_v33 = vpop.eup %7132 }
0x162f   : > { %v5006_v1 = vmul.f32 %v7133_v33, %v7125_v16 }
0x1631   : > { %v5010_v31 = vpack.c.bf16 %v5006_v1, %v5006_v1  ;;  %v7064_v1 = vld [vmem:[%s8276_s10 + $0x20] sm:$0xff]  }
0x1633   : > { %6899 = vmatmul.mubr.msk.bf16.vlgmr.msra.gmra.mrb[112].mxu1 %vm1285_vm2, %v5010_v31  ;;  %v7066_v31 = vld [vmem:[%s8278_s12 + $0x80] sm:$0xff]  }
0x1634   : > { %6910 = vmatprep.mubr.msk.bf16.mxu1 %vm7148_vm1, %v7147_v9  ;;  %6909 = vmatpush3.bf16.msra.mxu1 %v5258_v37  ;;  %v7070_v37 = vld [vmem:[%s8278_s12 + $0xa0] sm:$0xff]  }
0x1635   : > { %6920 = vmatprep.subr.bf16.mxu1 %v7147_v9 }
0x16de   : > { %v5055_v39 = vpop.f32.mrb[140].mxu0 }
0x16df   : > { %v5199_v40 = vpack.c.bf16 %v5055_v39, %v5055_v39  ;;  %v6882_v41 = vpop.f32.mrb[141].mxu0 }
0x16e0   : > { %v5058_v44 = vpop.f32.mrb[142].mxu0 }
0x16e1   : > { %v6883_v45 = vpop.f32.mrb[143].mxu0  ;;  %6905 = vmatmul.mubr.msk.bf16.vlgmr.msra.gmra.mrb[148].mxu0 %vm1285_vm2, %v5199_v40  ;;  %v6114_v44 = vld [vmem:[%s8274_s8 + $0x2] ss:$0 sm:$0xff] }
0x16e2   : > { %6915 = vmatpush3.bf16.msra.mxu0 %v5304_v43  ;;  %6916 = vmatprep.mubr.msk.bf16.mxu0 %vm7148_vm1, %v7147_v9 }
0x16e3   : > { %6926 = vmatprep.subr.bf16.mxu0 %v7147_v9 }
0x16eb   : > { %v5147_v46 = vpop.f32.mrb[144].mxu0 }
0x16ec   : > { %v5201_v47 = vpack.c.bf16 %v5147_v46, %v5147_v46  ;;  %v6894_v48 = vpop.f32.mrb[145].mxu0  ;;  %v6115_v46 = vld [vmem:[%s8275_s9 + $0x2] ss:$0 sm:$0xff] }
0x16ed   : > { %v5150_v49 = vpop.f32.mrb[146].mxu0 }
0x16ee   : > { %v6895_v50 = vpop.f32.mrb[147].mxu0  ;;  %6917 = vmatmul.mubr.msk.bf16.vlgmr.msra.gmra.mrb[152].mxu0 %vm1285_vm2, %v5201_v47 }
0x16ef   : > { %6930 = vmatprep.mubr.msk.bf16.mxu0 %vm7148_vm1, %v7147_v9  ;;  %6927 = vmatpush3.bf16.msra.mxu0 %v7064_v1  ;;  %v7072_v50 = vld [vmem:[%s8278_s12 + $0xb0] sm:$0xff]  }
0x16f0   : > { %6928 = vmatprep.subr.bf16.mxu0 %v7147_v9 }
0x16fe   : > { %v5101_v52 = vpop.f32.mrb[108].mxu1 }
0x16ff   : > { %v5200_v53 = vpack.c.bf16 %v5101_v52, %v5101_v52  ;;  %v6888_v54 = vpop.f32.mrb[109].mxu1  ;;  %v6121_v52 = vld [vmem:[%s8277_s11 + $0x2] ss:$0 sm:$0xff] }
0x1700   : > { %v5104_v56 = vpop.f32.mrb[110].mxu1 }
0x1701   : > { %v6889_v57 = vpop.f32.mrb[111].mxu1  ;;  %6911 = vmatmul.mubr.msk.bf16.vlgmr.msra.gmra.mrb[116].mxu1 %vm1285_vm2, %v5200_v53 }
0x1702   : > { %6921 = vmatpush3.bf16.msra.mxu1 %v5350_v55  ;;  %6922 = vmatprep.mubr.msk.bf16.mxu1 %vm7148_vm1, %v7147_v9 }
0x1703   : > { %6934 = vmatprep.subr.bf16.mxu1 %v7147_v9 }
0x1706   : > { %v5193_v58 = vpop.f32.mrb[112].mxu1 }
0x1707   : > { %v5202_v59 = vpack.c.bf16 %v5193_v58, %v5193_v58  ;;  %v6900_v60 = vpop.f32.mrb[113].mxu1 }
0x1708   : > { %v5196_v61 = vpop.f32.mrb[114].mxu1 }
0x1709   : > { %v6901_v62 = vpop.f32.mrb[115].mxu1  ;;  %6923 = vmatmul.mubr.msk.bf16.vlgmr.msra.gmra.mrb[120].mxu1 %vm1285_vm2, %v5202_v59  ;;  %v6150_v61 = vld [vmem:[%s8279_s13 + $0x2] ss:$0 sm:$0xff] }
0x170a   : > { %6950 = vmatprep.mubr.msk.bf16.mxu1 %vm7148_vm1, %v7147_v9  ;;  %6935 = vmatpush3.bf16.msra.mxu1 %v7066_v31 }
0x170b   : > { %6936 = vmatprep.subr.bf16.mxu1 %v7147_v9 }
0x170e   : > { %6937 = vmatpush3.bf16.msra.mxu1 %v7067_v34 }
0x170f   : > { %6938 = vmatprep.subr.bf16.mxu1 %v7147_v9 }
0x1712   : > { %6939 = vmatpush3.bf16.msra.mxu1 %v7068_v35 }
0x1713   : > { %6940 = vmatprep.subr.bf16.mxu1 %v7147_v9 }
0x1716   : > { %6941 = vmatpush3.bf16.msra.mxu1 %v7069_v36 }
0x1717   : > { %6942 = vmatprep.subr.bf16.mxu1 %v7147_v9 }
0x171a   : > { %6943 = vmatpush3.bf16.msra.mxu1 %v7070_v37 }
0x171b   : > { %6944 = vmatprep.subr.bf16.mxu1 %v7147_v9 }
0x171e   : > { %6945 = vmatpush3.bf16.msra.mxu1 %v7071_v38 }
0x171f   : > { %6946 = vmatprep.subr.bf16.mxu1 %v7147_v9 }
0x1722   : > { %6947 = vmatpush3.bf16.msra.mxu1 %v7072_v50 }
0x1723   : > { %6948 = vmatprep.subr.bf16.mxu1 %v7147_v9 }
0x1726   : > { %6949 = vmatpush3.bf16.msra.mxu1 %v7073_v51 }
0x17b4   : > { %v5248_v63 = vpop.f32.mrb[148].mxu0 }
0x17b5   : > { %v6906_v0 = vpop.f32.mrb[149].mxu0  ;;  %v5392_v11 = vsel %vm580_vm0, %v5248_v63, 0.0 }
0x17b6   : > { %v5251_v2 = vpop.f32.mrb[150].mxu0 }
0x17b7   : > { %v6907_v4 = vpop.f32.mrb[151].mxu0 }
0x17c1   : > { %v5340_v42 = vpop.f32.mrb[152].mxu0 }
0x17c2   : > { %v6918_v5 = vpop.f32.mrb[153].mxu0  ;;  %v5395_v18 = vsel %vm580_vm0, %v5340_v42, 0.0 }
0x17c3   : > { %v5343_v6 = vpop.f32.mrb[154].mxu0 }
0x17c4   : > { %v6919_v7 = vpop.f32.mrb[155].mxu0 }
0x17d4   : > { %v5294_v8 = vpop.f32.mrb[116].mxu1 }
0x17d5   : > { %v5393_v12 = vsel %vm580_vm0, %v5294_v8, 0.0  ;;  %v6912_v15 = vpop.f32.mrb[117].mxu1 }
0x17d6   : > { %v5394_v16 = vadd.f32 %v5393_v12, %v5392_v11  ;;  %v5297_v17 = vpop.f32.mrb[118].mxu1  ;;  %v7074_v12 = vld [vmem:[%s8282_s16] sm:$0xff]   ;;  %v7075_v15 = vld [vmem:[%s8282_s16 + $0x8] sm:$0xff]  }
0x17d7   : > { %v6913_v19 = vpop.f32.mrb[119].mxu1 }
0x17d8   : > { %v5396_v20 = vadd.f32 %v5395_v18, %v5394_v16 }
0x17dc   : > { %v5386_v21 = vpop.f32.mrb[120].mxu1 }
0x17dd   : > { %v5397_v22 = vsel %vm580_vm0, %v5386_v21, 0.0  ;;  %v6924_v23 = vpop.f32.mrb[121].mxu1 }
0x17de   : > { %v5398_v24 = vadd.f32 %v5397_v22, %v5396_v20  ;;  %v5389_v25 = vpop.f32.mrb[122].mxu1  ;;  %v6151_v20 = vld [vmem:[%s8280_s14] ss:$0 sm:$0xff] }
0x17df   : > { %v6925_v10 = vpop.f32.mrb[123].mxu1  ;;  %v6152_v22 = vld [vmem:[%s8281_s15] ss:$0 sm:$0xff] }
0x17e0   : > { %v5399_v13 = vadd.f32 %v5398_v24, %v7921_v3  ;;  %v7065_v3 = vld [vmem:[%s8276_s10 + $0x28] sm:$0xff]  }
0x17e1   : > { %6929 = vmatpush3.bf16.msra.mxu0 %v7065_v3 }
0x17e2   : > { %v5408_v27 = vadd.f32 %v6111_v26, %v5399_v13  ;;  %6954 = vmatprep.subr.bf16.mxu0 %v7147_v9 }
0x17e4   : > { %v5413_v28 = vsel %vm580_vm0, %v5408_v27, 0.0 }
0x17e5   : > { %5414 = vadd.xlane.f32.xlu0 %v5413_v28 }
0x1872   : > { %v5415_v29 = vpop.xlane.xlu0 %5414 }
0x1873   : > { %v5416_v14 = vmul.f32 0.03125, %v5415_v29 }
0x1875   : > { %v5417_v30 = vsub.f32 %v5408_v27, %v5416_v14 }
0x1877   : > { %v5418_v32 = vmul.f32 %v5417_v30, %v5417_v30 }
0x1879   : > { %v5419_v33 = vsel %vm580_vm0, %v5418_v32, 0.0 }
0x187a   : > { %5420 = vadd.xlane.f32.xlu1 %v5419_v33 }
0x1907   : > { %v5421_v39 = vpop.xlane.xlu1 %5420 }
0x1908   : > { %v5422_v40 = vmul.f32 0.03125, %v5421_v39 }
0x190a   : > { %v5423_v41 = vadd.f32 1e-05, %v5422_v40 }
0x190c   : > { %7134 = vrsqrt.f32 %v5423_v41 }
0x1916   : > { %v7135_v43 = vpop.eup %7134 }
0x1917   : > { %v5425_v45 = vmul.f32 %v7135_v43, %v5417_v30 }
0x1919   : > { %v5432_v47 = vmul.f32 %v6114_v44, %v5425_v45 }
0x191b   : > { %v5439_v48 = vadd.f32 %v6115_v46, %v5432_v47 }
0x191d   : > { %v5440_v49 = vpack.c.bf16 %v5439_v48, %v5439_v48 }
0x191f   : > { %6931 = vmatmul.mubr.msk.bf16.vlgmr.msra.gmra.mrb[156].mxu0 %vm580_vm0, %v5440_v49 }
0x1920   : > { %6958 = vmatprep.mubr.msk.bf16.mxu0 %vm7148_vm1, %v7147_v9  ;;  %6955 = vmatpush3.bf16.msra.mxu0 %v7074_v12 }
0x1921   : > { %6956 = vmatprep.subr.bf16.mxu0 %v7147_v9  ;;  %v6153_v9 = vld [vmem:[%s8283_s17] ss:$0 sm:$0xff] }
0x1924   : > { %6957 = vmatpush3.bf16.msra.mxu0 %v7075_v15 }
0x19f2   : > { %v5503_v53 = vpop.f32.mrb[156].mxu0 }
0x19f3   : > { %v5504_v54 = vadd.f32 %v6121_v52, %v5503_v53  ;;  %v6932_v55 = vpop.f32.mrb[157].mxu0 }
0x19f4   : > { %v5506_v56 = vpop.f32.mrb[158].mxu0 }
0x19f5   : > { %v5509_v57 = vmax.f32 %v5504_v54, 0.0  ;;  %v6933_v58 = vpop.f32.mrb[159].mxu0 }
0x19f7   : > { %v5510_v59 = vpack.c.bf16 %v5509_v57, %v5509_v57 }
0x19f9   : > { %6951 = vmatmul.mubr.bf16.vlgmr.msra.gmra.mrb[124].mxu1 %v5510_v59 }
0x1acc   : > { %v5610_v60 = vpop.f32.mrb[124].mxu1 }
0x1acd   : > { %v5616_v62 = vadd.f32 %v5610_v60, %v5408_v27  ;;  %v6952_v63 = vpop.f32.mrb[125].mxu1 }
0x1ace   : > { %v5613_v0 = vpop.f32.mrb[126].mxu1 }
0x1acf   : > { %v6953_v2 = vpop.f32.mrb[127].mxu1  ;;  %v5625_v4 = vadd.f32 %v6150_v61, %v5616_v62 }
0x1ad1   : > { %v5628_v42 = vsel %vm580_vm0, %v5625_v4, 0.0 }
0x1ad2   : > { %5629 = vadd.xlane.f32.xlu0 %v5628_v42 }
0x1b5f   : > { %v5630_v5 = vpop.xlane.xlu0 %5629 }
0x1b60   : > { %v5631_v6 = vmul.f32 0.03125, %v5630_v5 }
0x1b62   : > { %v5632_v7 = vsub.f32 %v5625_v4, %v5631_v6 }
0x1b64   : > { %v5633_v8 = vmul.f32 %v5632_v7, %v5632_v7 }
0x1b66   : > { %v5634_v11 = vsel %vm580_vm0, %v5633_v8, 0.0 }
0x1b67   : > { %5635 = vadd.xlane.f32.xlu1 %v5634_v11 }
0x1bf4   : > { %v5636_v16 = vpop.xlane.xlu1 %5635 }
0x1bf5   : > { %v5637_v17 = vmul.f32 0.03125, %v5636_v16 }
0x1bf7   : > { %v5638_v18 = vadd.f32 1e-05, %v5637_v17 }
0x1bf9   : > { %7136 = vrsqrt.f32 %v5638_v18 }
0x1c03   : > { %v7137_v19 = vpop.eup %7136 }
0x1c04   : > { %v5640_v21 = vmul.f32 %v7137_v19, %v5632_v7 }
0x1c06   : > { %v5647_v23 = vmul.f32 %v6151_v20, %v5640_v21 }
0x1c08   : > { %v5654_v24 = vadd.f32 %v6152_v22, %v5647_v23 }
0x1c0a   : > { %v5655_v25 = vpack.c.bf16 %v5654_v24, %v5654_v24 }
0x1c0c   : > { %6959 = vmatmul.mubr.msk.bf16.vlgmr.msra.gmra.mrb[160].mxu0 %vm580_vm0, %v5655_v25 }
0x1cdf   : > { %v5716_v10 = vpop.f32.mrb[160].mxu0 }
0x1ce0   : > { %v5717_v26 = vadd.f32 %v6153_v9, %v5716_v10  ;;  %v6960_v13 = vpop.f32.mrb[161].mxu0 }
0x1ce1   : > { %v5719_v27 = vpop.f32.mrb[162].mxu0 }
0x1ce2   : > { %5722 = vst [vmem:[%s570_s30] sm:$0xff] %v5717_v26  ;;  %v6961_v28 = vpop.f32.mrb[163].mxu0 }
0x1ce3 PF: > { %s28_s27 = sadd.s32 1, %s7145_s27  }
0x1ce4   : > { %p25_p4 = scmp.ge.s32.totalorder %s28_s27, 4  }
0x1ce6   :  { %27 = sbr.rel (!%p25_p4) target bundleno = 4 (0x4), region = 148 }

</bundles_post_ra>
